<compile_context>
chip_gen: v6e
topology: v6e:2x2x1
jax: 0.10.0
libtpu: 0.0.40
codegen_flags: <defaults>
</compile_context>

<pallas_src>
import functools

import jax
import jax.numpy as jnp
from jax.experimental import pallas as pl
from jax.experimental.pallas import tpu as pltpu


def _dec_fused_kernel(x_ref, w1_ref, b1_ref, w2_ref, b2_ref, w3_ref, b3_ref,
                      w4_ref, o_ref):
    """Entire Dec forward for one M-tile; every operand is VMEM-resident."""
    wdt = w1_ref.dtype  # bf16 weights; matmuls accumulate in f32 on the MXU.

    # Layer 1: Linear(n_latent, 512, no bias) -> BN(folded) -> ReLU
    h = jnp.dot(x_ref[...], w1_ref[...], preferred_element_type=jnp.float32)
    h = jnp.maximum(h + b1_ref[...], 0.0)

    # Layer 2: Linear(512, 512, no bias) -> BN(folded) -> ReLU
    h = jnp.dot(h.astype(wdt), w2_ref[...], preferred_element_type=jnp.float32)
    h = jnp.maximum(h + b2_ref[...], 0.0)

    # Layer 3: Linear(512, 1024, no bias) -> BN(folded) -> ReLU
    h = jnp.dot(h.astype(wdt), w3_ref[...], preferred_element_type=jnp.float32)
    h = jnp.maximum(h + b3_ref[...], 0.0)

    # Layer 4: plain Linear(1024, n_out, no bias)
    o_ref[...] = jnp.dot(h.astype(wdt), w4_ref[...],
                         preferred_element_type=jnp.float32).astype(o_ref.dtype)


def _default_tile_m():
    """Per-generation M tile: 512 on v7x (64 MiB VMEM), 1024 on v5e/v6e."""
    try:
        kind = jax.devices()[0].device_kind.lower()
    except Exception:  # pragma: no cover
        return 512
    if "v7" in kind:
        return 512
    return 1024


def _cost_estimate(M, n_latent, n_out, params, x_bytes, out_bytes):
    flops = 2 * M * (n_latent * 512 + 512 * 512 + 512 * 1024 + 1024 * n_out)
    weight_bytes = 0
    for p in params:
        weight_bytes += p["w"].size * p["w"].dtype.itemsize
        weight_bytes += p["shift"].size * p["shift"].dtype.itemsize
    return pl.CostEstimate(flops=flops, transcendentals=0,
                           bytes_accessed=weight_bytes + x_bytes + out_bytes)


def dec_forward(params, x, *, tile_m=None):
    """x: (M, n_latent) -> (M, n_out) f32.

    Small M (<= 512): one fused grid-less pallas_call, everything in VMEM.
    Large M: M grid axis with x/out tiled and weights held VMEM-resident
    (constant index_map), dimension_semantics=("parallel",).
    """
    M, n_latent = x.shape
    assert params[0]["w"].shape[0] == n_latent
    n_out = params[3]["w"].shape[1]
    # Lane-friendliness checks (all feature dims are multiples of 128 here).
    for p in params:
        assert p["w"].shape[0] % 128 == 0 and p["w"].shape[1] % 128 == 0

    wdt = params[0]["w"].dtype
    # Cast activations to bf16 on the host side: halves x HBM traffic and
    # removes the in-kernel pack before the first matmul.
    x_in = x.astype(wdt)

    weight_args = (params[0]["w"], params[0]["shift"],
                   params[1]["w"], params[1]["shift"],
                   params[2]["w"], params[2]["shift"],
                   params[3]["w"])

    if tile_m is None:
        tile_m = _default_tile_m()

    if M <= 512:
        # --- Small-batch path: single fused, grid-less call. ---------------
        cost = _cost_estimate(M, n_latent, n_out, params,
                              x_bytes=x_in.size * x_in.dtype.itemsize,
                              out_bytes=M * n_out * 4)
        vmem = pl.BlockSpec(memory_space=pltpu.MemorySpace.VMEM)
        return pl.pallas_call(
            _dec_fused_kernel,
            out_shape=jax.ShapeDtypeStruct((M, n_out), jnp.float32),
            in_specs=[vmem] * 8,
            out_specs=vmem,
            cost_estimate=cost,
        )(x_in, *weight_args)

    # --- Large-batch path: M grid axis, weights resident in VMEM. ----------
    num_tiles = pl.cdiv(M, tile_m)
    M_pad = num_tiles * tile_m
    if M_pad != M:
        x_in = jnp.pad(x_in, ((0, M_pad - M), (0, 0)))

    cost = _cost_estimate(M_pad, n_latent, n_out, params,
                          x_bytes=x_in.size * x_in.dtype.itemsize,
                          out_bytes=M_pad * n_out * 4)

    def resident(arr):
        # Whole-array block with a constant block index: fetched once from HBM
        # and kept in VMEM for the entire grid (no re-DMA across M tiles).
        return pl.BlockSpec(arr.shape, lambda i: (0,) * arr.ndim)

    in_specs = [pl.BlockSpec((tile_m, n_latent), lambda i: (i, 0))]
    in_specs += [resident(a) for a in weight_args]
    out_spec = pl.BlockSpec((tile_m, n_out), lambda i: (i, 0))

    # tile_m=1024 (v5e/v6e) needs ~26 MiB of VMEM with double-buffered x/out;
    # raise the scoped limit there. v7x uses tile_m=512 (~15 MiB, default OK).
    vmem_limit = (64 << 20) if tile_m >= 1024 else None

    out = pl.pallas_call(
        _dec_fused_kernel,
        out_shape=jax.ShapeDtypeStruct((M_pad, n_out), jnp.float32),
        grid=(num_tiles,),
        in_specs=in_specs,
        out_specs=out_spec,
        cost_estimate=cost,
        compiler_params=pltpu.CompilerParams(
            dimension_semantics=("parallel",),
            vmem_limit_bytes=vmem_limit),
    )(x_in, *weight_args)

    return out[:M] if M_pad != M else out


def init_dec_params(key, n_out, n_latent=512, weight_dtype=jnp.bfloat16):
    """Deterministic params. Weights stored as (n_in, n_out) with BN scale folded in."""
    dims = [(n_latent, 512), (512, 512), (512, 1024), (1024, n_out)]
    eps = 1e-5
    params = []
    for li, (din, dout) in enumerate(dims):
        key, kw, kg, kb, km, kv = jax.random.split(key, 6)
        bound = 1.0 / jnp.sqrt(jnp.asarray(din, jnp.float32))
        w = jax.random.uniform(kw, (din, dout), jnp.float32, -bound, bound)
        if li < 3:
            gamma = 1.0 + 0.1 * jax.random.normal(kg, (dout,), jnp.float32)
            beta = 0.1 * jax.random.normal(kb, (dout,), jnp.float32)
            running_mean = 0.1 * jax.random.normal(km, (dout,), jnp.float32)
            running_var = 1.0 + 0.1 * jax.random.uniform(kv, (dout,), jnp.float32)
            scale = gamma / jnp.sqrt(running_var + eps)
            shift = beta - running_mean * scale
        else:
            # Final Linear: no BN, no activation.
            scale = jnp.ones((dout,), jnp.float32)
            shift = jnp.zeros((dout,), jnp.float32)
        w_folded = (w * scale[None, :]).astype(weight_dtype)
        params.append(dict(w=w_folded, shift=shift.reshape(1, dout)))
    return params


def dec_reference(params, x):
    """Pure-JAX reference using the identical folded bf16 weights."""
    h = x.astype(params[0]["w"].dtype)
    for li, p in enumerate(params):
        h = jnp.dot(h, p["w"], preferred_element_type=jnp.float32)
        if li < 3:
            h = jnp.maximum(h + p["shift"], 0.0)
            h = h.astype(p["w"].dtype)
    return h.astype(jnp.float32)


if __name__ == "__main__":
    key = jax.random.PRNGKey(0)
    kx, kp, kx2 = jax.random.split(key, 3)

    n_latent, n_out = 512, 1024
    params = init_dec_params(kp, n_out, n_latent)

    # --- Small-batch (grid-less fused) path ---------------------------------
    batch = 8
    x = jax.random.normal(kx, (batch, n_latent), jnp.float32)
    out = jax.block_until_ready(dec_forward(params, x))
    ref = dec_reference(params, x)
    assert out.shape == (batch, n_out), out.shape
    assert jnp.allclose(out, ref, atol=2e-2, rtol=2e-2), (
        float(jnp.max(jnp.abs(out - ref)))
    )

    # --- Large-batch (M-gridded, weights resident) path ---------------------
    batch_big = 1024 + 96  # also exercises the padding path
    x_big = jax.random.normal(kx2, (batch_big, n_latent), jnp.float32)
    out_big = jax.block_until_ready(dec_forward(params, x_big))
    ref_big = dec_reference(params, x_big)
    assert out_big.shape == (batch_big, n_out), out_big.shape
    assert jnp.allclose(out_big, ref_big, atol=2e-2, rtol=2e-2), (
        float(jnp.max(jnp.abs(out_big - ref_big)))
    )

    print("KERNEL_OK")
</pallas_src>

<mosaic_0001>
module attributes {stable_mosaic.version = 11 : i64} {
  func.func @_dec_fused_kernel(%arg0: memref<8x512xbf16, #tpu.memory_space<vmem>>, %arg1: memref<512x512xbf16, #tpu.memory_space<vmem>>, %arg2: memref<1x512xf32, #tpu.memory_space<vmem>>, %arg3: memref<512x512xbf16, #tpu.memory_space<vmem>>, %arg4: memref<1x512xf32, #tpu.memory_space<vmem>>, %arg5: memref<512x1024xbf16, #tpu.memory_space<vmem>>, %arg6: memref<1x1024xf32, #tpu.memory_space<vmem>>, %arg7: memref<1024x1024xbf16, #tpu.memory_space<vmem>>, %arg8: memref<8x1024xf32, #tpu.memory_space<vmem>>) attributes {dimension_semantics = [], scalar_prefetch = 0 : i64, scratch_operands = 0 : i64, tpu.core_type = #tpu.core_type<tc>} {
    %c0 = arith.constant 0 : index
    %c0_0 = arith.constant 0 : index
    %0 = vector.load %arg0[%c0, %c0_0] : memref<8x512xbf16, #tpu.memory_space<vmem>>, vector<8x512xbf16>
    %c0_1 = arith.constant 0 : index
    %c0_2 = arith.constant 0 : index
    %1 = vector.load %arg1[%c0_1, %c0_2] : memref<512x512xbf16, #tpu.memory_space<vmem>>, vector<512x512xbf16>
    %cst = arith.constant dense<0.000000e+00> : vector<8x512xf32>
    %2 = tpu.matmul %0, %1, %cst {dimension_numbers = #tpu.dot_dimension_numbers<[1], [0], [0], [1], [0, 0, 1, 1], [], []>} : vector<8x512xbf16>, vector<512x512xbf16>, vector<8x512xf32> -> vector<8x512xf32>
    %c0_3 = arith.constant 0 : index
    %c0_4 = arith.constant 0 : index
    %3 = vector.load %arg2[%c0_3, %c0_4] : memref<1x512xf32, #tpu.memory_space<vmem>>, vector<1x512xf32>
    %4 = vector.broadcast %3 : vector<1x512xf32> to vector<8x512xf32>
    %5 = arith.addf %2, %4 : vector<8x512xf32>
    %cst_5 = arith.constant 0.000000e+00 : f32
    %6 = vector.broadcast %cst_5 : f32 to vector<8x512xf32>
    %7 = arith.maximumf %5, %6 : vector<8x512xf32>
    %8 = arith.truncf %7 : vector<8x512xf32> to vector<8x512xbf16>
    %c0_6 = arith.constant 0 : index
    %c0_7 = arith.constant 0 : index
    %9 = vector.load %arg3[%c0_6, %c0_7] : memref<512x512xbf16, #tpu.memory_space<vmem>>, vector<512x512xbf16>
    %cst_8 = arith.constant dense<0.000000e+00> : vector<8x512xf32>
    %10 = tpu.matmul %8, %9, %cst_8 {dimension_numbers = #tpu.dot_dimension_numbers<[1], [0], [0], [1], [0, 0, 1, 1], [], []>} : vector<8x512xbf16>, vector<512x512xbf16>, vector<8x512xf32> -> vector<8x512xf32>
    %c0_9 = arith.constant 0 : index
    %c0_10 = arith.constant 0 : index
    %11 = vector.load %arg4[%c0_9, %c0_10] : memref<1x512xf32, #tpu.memory_space<vmem>>, vector<1x512xf32>
    %12 = vector.broadcast %11 : vector<1x512xf32> to vector<8x512xf32>
    %13 = arith.addf %10, %12 : vector<8x512xf32>
    %cst_11 = arith.constant 0.000000e+00 : f32
    %14 = vector.broadcast %cst_11 : f32 to vector<8x512xf32>
    %15 = arith.maximumf %13, %14 : vector<8x512xf32>
    %16 = arith.truncf %15 : vector<8x512xf32> to vector<8x512xbf16>
    %c0_12 = arith.constant 0 : index
    %c0_13 = arith.constant 0 : index
    %17 = vector.load %arg5[%c0_12, %c0_13] : memref<512x1024xbf16, #tpu.memory_space<vmem>>, vector<512x1024xbf16>
    %cst_14 = arith.constant dense<0.000000e+00> : vector<8x1024xf32>
    %18 = tpu.matmul %16, %17, %cst_14 {dimension_numbers = #tpu.dot_dimension_numbers<[1], [0], [0], [1], [0, 0, 1, 1], [], []>} : vector<8x512xbf16>, vector<512x1024xbf16>, vector<8x1024xf32> -> vector<8x1024xf32>
    %c0_15 = arith.constant 0 : index
    %c0_16 = arith.constant 0 : index
    %19 = vector.load %arg6[%c0_15, %c0_16] : memref<1x1024xf32, #tpu.memory_space<vmem>>, vector<1x1024xf32>
    %20 = vector.broadcast %19 : vector<1x1024xf32> to vector<8x1024xf32>
    %21 = arith.addf %18, %20 : vector<8x1024xf32>
    %cst_17 = arith.constant 0.000000e+00 : f32
    %22 = vector.broadcast %cst_17 : f32 to vector<8x1024xf32>
    %23 = arith.maximumf %21, %22 : vector<8x1024xf32>
    %24 = arith.truncf %23 : vector<8x1024xf32> to vector<8x1024xbf16>
    %c0_18 = arith.constant 0 : index
    %c0_19 = arith.constant 0 : index
    %25 = vector.load %arg7[%c0_18, %c0_19] : memref<1024x1024xbf16, #tpu.memory_space<vmem>>, vector<1024x1024xbf16>
    %cst_20 = arith.constant dense<0.000000e+00> : vector<8x1024xf32>
    %26 = tpu.matmul %24, %25, %cst_20 {dimension_numbers = #tpu.dot_dimension_numbers<[1], [0], [0], [1], [0, 0, 1, 1], [], []>} : vector<8x1024xbf16>, vector<1024x1024xbf16>, vector<8x1024xf32> -> vector<8x1024xf32>
    %c0_21 = arith.constant 0 : index
    %c0_22 = arith.constant 0 : index
    %27 = vector.load %arg8[%c0_21, %c0_22] : memref<8x1024xf32, #tpu.memory_space<vmem>>, vector<8x1024xf32>
    tpu.vector_store %arg8[%c0_21, %c0_22], %26 {strides = array<i32>} : memref<8x1024xf32, #tpu.memory_space<vmem>>, vector<8x1024xf32>,
    return
  }
}

</mosaic_0001>

<bundles_post_ra>
// kernel: tpu_custom_call.1
= control target key start
LH: loop header
LB: loop body
LE: loop exit
PB: predicated region body
PF: predicated region fallthrough
CT: control target
= control target key end

     0   :  { %13 = vsyncpa [#allocation3], 0  ;;  %s9728_s0 = inlined_call_operand.hbm [shape: bf16[8,512], index: 0, kind: input, shape index: {}]   ;;  %s9729_s1 = inlined_call_operand.hbm [shape: bf16[512,512], index: 1, kind: input, shape index: {}]   ;;  %s9730_s2 = inlined_call_operand.hbm [shape: f32[1,512], index: 2, kind: input, shape index: {}]   ;;  %s9731_s3 = inlined_call_operand.hbm [shape: bf16[512,512], index: 3, kind: input, shape index: {}]   ;;  %s9732_s4 = inlined_call_operand.hbm [shape: f32[1,512], index: 4, kind: input, shape index: {}]   ;;  %s9733_s5 = inlined_call_operand.hbm [shape: bf16[512,1024], index: 5, kind: input, shape index: {}]   ;;  %s9734_s6 = inlined_call_operand.hbm [shape: f32[1,1024], index: 6, kind: input, shape index: {}]   ;;  %s9735_s7 = inlined_call_operand.hbm [shape: bf16[1024,1024], index: 7, kind: input, shape index: {}]   ;;  %s9736_s8 = inlined_call_operand.hbm [shape: f32[8,1024], index: 8, kind: output, shape index: {}]  }
   0x1   :  { %14 = vsyncpa [#allocation6], 0 }
   0x2   :  { %15 = vsyncpa [#allocation9], 0 }
   0x3   :  { %16 = vsyncpa [#allocation12], 0 }
   0x4   :  { %17 = vsyncpa [#allocation15], 0 }
   0x5   :  { %18 = vsyncpa [#allocation4], 0  ;;  %s9369_s27 = smov [#allocation5]  }
   0x6   :  { %s34_s28 = sshll.u32 %s9369_s27, 4  ;;  %s35_s28 = int_to_ptr.vmem [resolvable:$true] %s34_s28 }
   0x7   :  { %s9185_s29 = scalar_lea.vmem %s35_s28, 16384  ;;  %p9190_p1 = scmp.lt.s32.totalorder %s35_s28, %s35_s28 }
   0x8   :  { %p9186_p0 = scmp.ne.s32.totalorder %s35_s28, %s9185_s29  ;;  %p9191_p2 = scmp.lt.s32.totalorder %s9185_s29, %s9185_s29 }
   0xa   :  { %p9192_p3 = por %p9191_p2, %p9190_p1 }
   0xc   :  { %p9193_p4 = pnand %p9192_p3, %p9186_p0 }
   0xe   :  { %9196 = shalt.err (!%p9193_p4)
}
   0xf   :  { %s9370_s30 = smov 256   ;;  %s9371_s9 = smov 16  }
  0x10   :  { %40 = dma.hbm_to_vmem [thread:$0]  %s9729_s1, 16384, %s35_s28, [#allocation6], %s9370_s30, %s9370_s30, %s9371_s9  }
  0x11   :  { %s9372_s12 = smov [#allocation8]   ;;  %s9373_s14 = smov [#allocation11]  }
  0x12   :  { %s56_s13 = sshll.u32 %s9372_s12, 4  ;;  %s78_s15 = sshll.u32 %s9373_s14, 4  ;;  %s57_s13 = int_to_ptr.vmem [resolvable:$true] %s56_s13  ;;  %s79_s15 = int_to_ptr.vmem [resolvable:$true] %s78_s15 }
  0x13   :  { %s9205_s16 = scalar_lea.vmem %s57_s13, 16384  ;;  %p9210_p6 = scmp.lt.s32.totalorder %s57_s13, %s57_s13 }
  0x14   :  { %p9206_p5 = scmp.ne.s32.totalorder %s57_s13, %s9205_s16  ;;  %p9211_p7 = scmp.lt.s32.totalorder %s9205_s16, %s9205_s16 }
  0x16   :  { %p9212_p8 = por %p9211_p7, %p9210_p6 }
  0x18   :  { %p9213_p9 = pnand %p9212_p8, %p9206_p5 }
  0x1a   :  { %9216 = shalt.err (!%p9213_p9)
}
  0x1b   :  { %62 = dma.hbm_to_vmem [thread:$0]  %s9731_s3, 16384, %s57_s13, [#allocation9], %s9370_s30, %s9370_s30, %s9371_s9  }
  0x1c   :  { %s9225_s19 = scalar_lea.vmem %s79_s15, 32768  ;;  %p9230_p11 = scmp.lt.s32.totalorder %s79_s15, %s79_s15 }
  0x1d   :  { %p9226_p10 = scmp.ne.s32.totalorder %s79_s15, %s9225_s19  ;;  %p9231_p12 = scmp.lt.s32.totalorder %s9225_s19, %s9225_s19 }
  0x1f   :  { %p9232_p13 = por %p9231_p12, %p9230_p11 }
  0x21   :  { %p9233_p0 = pnand %p9232_p13, %p9226_p10 }
  0x23   :  { %9236 = shalt.err (!%p9233_p0)
}
  0x24   :  { %s9374_s1 = smov 512   ;;  %s9375_s20 = smov 32  }
  0x25   :  { %84 = dma.hbm_to_vmem [thread:$0]  %s9733_s5, 32768, %s79_s15, [#allocation12], %s9374_s1, %s9374_s1, %s9375_s20  }
  0x26   :  { %s9376_s23 = smov [#allocation2]   ;;  %s9377_s3 = smov [#allocation7]  }
  0x27   :  { %s25_s24 = sshll.u32 %s9376_s23, 4  ;;  %s47_s25 = sshll.u32 %s9377_s3, 4  ;;  %s26_s24 = int_to_ptr.vmem [resolvable:$true] %s25_s24  ;;  %s48_s25 = int_to_ptr.vmem [resolvable:$true] %s47_s25 }
  0x28   :  { %s9245_s26 = scalar_lea.vmem %s26_s24, 256  ;;  %p9250_p2 = scmp.lt.s32.totalorder %s26_s24, %s26_s24 }
  0x29   :  { %p9246_p1 = scmp.ne.s32.totalorder %s26_s24, %s9245_s26  ;;  %p9251_p3 = scmp.lt.s32.totalorder %s9245_s26, %s9245_s26 }
  0x2b   :  { %p9252_p4 = por %p9251_p3, %p9250_p2 }
  0x2d   :  { %p9253_p5 = pnand %p9252_p4, %p9246_p1 }
  0x2f   :  { %9256 = shalt.err (!%p9253_p5)
}
  0x30   :  { %28 = dma.hbm_to_vmem [thread:$0]  %s9728_s0, 256, %s26_s24, [#allocation3]  }
  0x31   :  { %s9265_s29 = scalar_lea.vmem %s48_s25, 64  ;;  %p9270_p7 = scmp.lt.s32.totalorder %s48_s25, %s48_s25 }
  0x32   :  { %p9266_p6 = scmp.ne.s32.totalorder %s48_s25, %s9265_s29  ;;  %p9271_p8 = scmp.lt.s32.totalorder %s9265_s29, %s9265_s29 }
  0x34   :  { %p9272_p9 = por %p9271_p8, %p9270_p7 }
  0x36   :  { %p9273_p10 = pnand %p9272_p9, %p9266_p6 }
  0x38   :  { %9276 = shalt.err (!%p9273_p10)
}
  0x39   :  { %50 = dma.hbm_to_vmem [thread:$0]  %s9730_s2, 64, %s48_s25, [#allocation6]  }
  0x3a   :  { %s9378_s9 = smov [#allocation10]   ;;  %s9379_s11 = smov [#allocation13]  }
  0x3b   :  { %s69_s10 = sshll.u32 %s9378_s9, 4  ;;  %s91_s12 = sshll.u32 %s9379_s11, 4  ;;  %s70_s10 = int_to_ptr.vmem [resolvable:$true] %s69_s10  ;;  %s92_s12 = int_to_ptr.vmem [resolvable:$true] %s91_s12 }
  0x3c   :  { %s9285_s13 = scalar_lea.vmem %s70_s10, 64  ;;  %p9290_p12 = scmp.lt.s32.totalorder %s70_s10, %s70_s10 }
  0x3d   :  { %p9286_p11 = scmp.ne.s32.totalorder %s70_s10, %s9285_s13  ;;  %p9291_p13 = scmp.lt.s32.totalorder %s9285_s13, %s9285_s13 }
  0x3f   :  { %p9292_p0 = por %p9291_p13, %p9290_p12 }
  0x41   :  { %p9293_p1 = pnand %p9292_p0, %p9286_p11 }
  0x43   :  { %9296 = shalt.err (!%p9293_p1)
}
  0x44   :  { %72 = dma.hbm_to_vmem [thread:$0]  %s9732_s4, 64, %s70_s10, [#allocation9]  }
  0x45   :  { %s9305_s15 = scalar_lea.vmem %s92_s12, 128  ;;  %p9310_p3 = scmp.lt.s32.totalorder %s92_s12, %s92_s12 }
  0x46   :  { %p9306_p2 = scmp.ne.s32.totalorder %s92_s12, %s9305_s15  ;;  %p9311_p4 = scmp.lt.s32.totalorder %s9305_s15, %s9305_s15 }
  0x48   :  { %p9312_p5 = por %p9311_p4, %p9310_p3 }
  0x4a   :  { %p9313_p6 = pnand %p9312_p5, %p9306_p2 }
  0x4c   :  { %9316 = shalt.err (!%p9313_p6)
}
  0x4d   :  { %94 = dma.hbm_to_vmem [thread:$0]  %s9734_s6, 128, %s92_s12, [#allocation12]  }
  0x4e   :  { %s9380_s17 = smov [#allocation14]  }
  0x4f   :  { %s100_s18 = sshll.u32 %s9380_s17, 4  ;;  %s101_s18 = int_to_ptr.vmem [resolvable:$true] %s100_s18 }
  0x50   :  { %s9325_s19 = scalar_lea.vmem %s101_s18, 65536  ;;  %p9330_p8 = scmp.lt.s32.totalorder %s101_s18, %s101_s18 }
  0x51   :  { %p9326_p7 = scmp.ne.s32.totalorder %s101_s18, %s9325_s19  ;;  %p9331_p9 = scmp.lt.s32.totalorder %s9325_s19, %s9325_s19 }
  0x53   :  { %p9332_p10 = por %p9331_p9, %p9330_p8 }
  0x55   :  { %p9333_p11 = pnand %p9332_p10, %p9326_p7 }
  0x57   :  { %9336 = shalt.err (!%p9333_p11)
}
  0x58   :  { %106 = dma.hbm_to_vmem [thread:$0]  %s9735_s7, 65536, %s101_s18, [#allocation15], %s9374_s1, %s9374_s1, %s9375_s20  }
  0x59   :  { %9357 = dma.done.wait [#allocation3], 256  }
  0x5a   :  { %9358 = vsyncadd [#allocation3], 4294967040 }
  0x5b   :  { %9359 = dma.done.wait [#allocation6], 16448  }
  0x5c   :  { %9360 = vsyncadd [#allocation6], 4294950848 }
  0x5d   :  { %9361 = dma.done.wait [#allocation9], 16448  }
  0x5e   :  { %9362 = vsyncadd [#allocation9], 4294950848 }
  0x5f   :  { %9363 = dma.done.wait [#allocation12], 32896  }
  0x60   :  { %9364 = vsyncadd [#allocation12], 4294934400 }
  0x61   :  { %9365 = dma.done.wait [#allocation15], 65536  }
  0x62   :  { %9366 = vsyncadd [#allocation15], 4294901760  ;;  %v8789_v0 = vld [vmem:[#allocation5 + $0xe4] ss:$16 sps:$4 sm:$0xff]   ;;  %v8793_v2 = vld [vmem:[#allocation5 + $0xe0] ss:$16 sps:$4 sm:$0xff]  }
  0x63   :  { %v8791_v1 = vld [vmem:[#allocation5 + $0x2e4] ss:$16 sps:$4 sm:$0xff]   ;;  %937 = vmatprep.subr.bf16.mxu0 %v8789_v0  ;;  %v8794_v3 = vld [vmem:[#allocation5 + $0x2e0] ss:$16 sps:$4 sm:$0xff]   ;;  %v132_v48 = vld [vmem:[#allocation2 + $0x8] sm:$0xff]  ;;  %s9381_s6 = smov [#allocation16]  }
  0x64   :  { %978 = vmatprep.subr.bf16.mxu1 %v8791_v1  ;;  %v8795_v4 = vld [vmem:[#allocation5 + $0xc4] ss:$16 sps:$4 sm:$0xff]   ;;  %938 = vmatpush1.bf16.msra.mxu0 %v8793_v2  ;;  %v8799_v6 = vld [vmem:[#allocation5 + $0xc0] ss:$16 sps:$4 sm:$0xff]   ;;  %v7751_v51 = vcombine.high %v132_v48, %v132_v48  ;;  %s7735_s7 = sshll.u32 %s9381_s6, 4  ;;  %s7736_s7 = int_to_ptr.vmem [resolvable:$true] %s7735_s7 }
  0x65   :  { %979 = vmatpush1.bf16.msra.mxu1 %v8794_v3  ;;  %v8797_v5 = vld [vmem:[#allocation5 + $0x2c4] ss:$16 sps:$4 sm:$0xff]   ;;  %939 = vmatprep.subr.bf16.mxu0 %v8795_v4  ;;  %v8800_v7 = vld [vmem:[#allocation5 + $0x2c0] ss:$16 sps:$4 sm:$0xff]   ;;  %v8891_v4 = vld [vmem:[#allocation5 + $0xec] ss:$16 sps:$4 sm:$0xff]   ;;  %p9342_p13 = scmp.lt.s32.totalorder %s7736_s7, %s7736_s7 }
  0x66   :  { %980 = vmatprep.subr.bf16.mxu1 %v8797_v5  ;;  %v8801_v8 = vld [vmem:[#allocation5 + $0xa4] ss:$16 sps:$4 sm:$0xff]   ;;  %v8805_v10 = vld [vmem:[#allocation5 + $0xa0] ss:$16 sps:$4 sm:$0xff]   ;;  %1010 = vmatprep.mubr.bf16.mxu1 %v7751_v51  ;;  %v8894_v5 = vld [vmem:[#allocation5 + $0x2ec] ss:$16 sps:$4 sm:$0xff]  }
  0x67   :  { %v8803_v9 = vld [vmem:[#allocation5 + $0x2a4] ss:$16 sps:$4 sm:$0xff]   ;;  %v8806_v11 = vld [vmem:[#allocation5 + $0x2a0] ss:$16 sps:$4 sm:$0xff]   ;;  %s9337_s1 = scalar_lea.vmem %s7736_s7, 1024 }
  0x68   :  { %940 = vmatpush1.bf16.msra.mxu0 %v8799_v6  ;;  %v8807_v12 = vld [vmem:[#allocation5 + $0x84] ss:$16 sps:$4 sm:$0xff]   ;;  %v8811_v14 = vld [vmem:[#allocation5 + $0x80] ss:$16 sps:$4 sm:$0xff]   ;;  %p9338_p12 = scmp.ne.s32.totalorder %s7736_s7, %s9337_s1  ;;  %p9343_p0 = scmp.lt.s32.totalorder %s9337_s1, %s9337_s1 }
  0x69   :  { %981 = vmatpush1.bf16.msra.mxu1 %v8800_v7  ;;  %941 = vmatprep.subr.bf16.mxu0 %v8801_v8  ;;  %v8809_v13 = vld [vmem:[#allocation5 + $0x284] ss:$16 sps:$4 sm:$0xff]   ;;  %v8812_v15 = vld [vmem:[#allocation5 + $0x280] ss:$16 sps:$4 sm:$0xff]   ;;  %v9462_v7 = vcombine.low %v132_v48, %v132_v48  ;;  %v8889_v8 = vld [vmem:[#allocation5 + $0xe8] ss:$16 sps:$4 sm:$0xff]  }
  0x6a   :  { %982 = vmatprep.subr.bf16.mxu1 %v8803_v9  ;;  %v8813_v16 = vld [vmem:[#allocation5 + $0x64] ss:$16 sps:$4 sm:$0xff]   ;;  %v8817_v18 = vld [vmem:[#allocation5 + $0x60] ss:$16 sps:$4 sm:$0xff]   ;;  %v8892_v9 = vld [vmem:[#allocation5 + $0x2e8] ss:$16 sps:$4 sm:$0xff]   ;;  %p9344_p1 = por %p9343_p0, %p9342_p13 }
  0x6b   :  { %v8815_v17 = vld [vmem:[#allocation5 + $0x264] ss:$16 sps:$4 sm:$0xff]   ;;  %v8818_v19 = vld [vmem:[#allocation5 + $0x260] ss:$16 sps:$4 sm:$0xff]   ;;  %v8949_v48 = vld [vmem:[#allocation5 + $0x1a8] ss:$16 sps:$4 sm:$0xff]  }
  0x6c   :  { %942 = vmatpush1.bf16.msra.mxu0 %v8805_v10  ;;  %v8819_v20 = vld [vmem:[#allocation5 + $0x44] ss:$16 sps:$4 sm:$0xff]   ;;  %v8823_v22 = vld [vmem:[#allocation5 + $0x40] ss:$16 sps:$4 sm:$0xff]   ;;  %v8897_v10 = vld [vmem:[#allocation5 + $0xcc] ss:$16 sps:$4 sm:$0xff]   ;;  %p9345_p2 = pnand %p9344_p1, %p9338_p12 }
  0x6d   :  { %983 = vmatpush1.bf16.msra.mxu1 %v8806_v11  ;;  %943 = vmatprep.subr.bf16.mxu0 %v8807_v12  ;;  %v8821_v21 = vld [vmem:[#allocation5 + $0x244] ss:$16 sps:$4 sm:$0xff]   ;;  %v8824_v23 = vld [vmem:[#allocation5 + $0x240] ss:$16 sps:$4 sm:$0xff]   ;;  %v8900_v11 = vld [vmem:[#allocation5 + $0x2cc] ss:$16 sps:$4 sm:$0xff]  }
  0x6e   :  { %984 = vmatprep.subr.bf16.mxu1 %v8809_v13  ;;  %v8825_v24 = vld [vmem:[#allocation5 + $0x24] ss:$16 sps:$4 sm:$0xff]   ;;  %v8829_v26 = vld [vmem:[#allocation5 + $0x20] ss:$16 sps:$4 sm:$0xff]   ;;  %v8895_v12 = vld [vmem:[#allocation5 + $0xc8] ss:$16 sps:$4 sm:$0xff]  }
  0x6f   :  { %v8827_v25 = vld [vmem:[#allocation5 + $0x224] ss:$16 sps:$4 sm:$0xff]   ;;  %v8830_v27 = vld [vmem:[#allocation5 + $0x220] ss:$16 sps:$4 sm:$0xff]   ;;  %v8898_v13 = vld [vmem:[#allocation5 + $0x2c8] ss:$16 sps:$4 sm:$0xff]  }
  0x70   :  { %944 = vmatpush1.bf16.msra.mxu0 %v8811_v14  ;;  %v8831_v28 = vld [vmem:[#allocation5 + $0x4] ss:$16 sps:$4 sm:$0xff]   ;;  %v8835_v30 = vld [vmem:[#allocation5] ss:$16 sps:$4 sm:$0xff]   ;;  %v8903_v14 = vld [vmem:[#allocation5 + $0xac] ss:$16 sps:$4 sm:$0xff]  }
  0x71   :  { %985 = vmatpush1.bf16.msra.mxu1 %v8812_v15  ;;  %945 = vmatprep.subr.bf16.mxu0 %v8813_v16  ;;  %v8833_v29 = vld [vmem:[#allocation5 + $0x204] ss:$16 sps:$4 sm:$0xff]   ;;  %v8836_v31 = vld [vmem:[#allocation5 + $0x200] ss:$16 sps:$4 sm:$0xff]   ;;  %v8906_v15 = vld [vmem:[#allocation5 + $0x2ac] ss:$16 sps:$4 sm:$0xff]  }
  0x72   :  { %986 = vmatprep.subr.bf16.mxu1 %v8815_v17  ;;  %v8837_v32 = vld [vmem:[#allocation5 + $0x1e4] ss:$16 sps:$4 sm:$0xff]   ;;  %v8841_v34 = vld [vmem:[#allocation5 + $0x1e0] ss:$16 sps:$4 sm:$0xff]   ;;  %v8901_v16 = vld [vmem:[#allocation5 + $0xa8] ss:$16 sps:$4 sm:$0xff]  }
  0x73   :  { %v8839_v33 = vld [vmem:[#allocation5 + $0x3e4] ss:$16 sps:$4 sm:$0xff]   ;;  %v8842_v35 = vld [vmem:[#allocation5 + $0x3e0] ss:$16 sps:$4 sm:$0xff]   ;;  %v8904_v17 = vld [vmem:[#allocation5 + $0x2a8] ss:$16 sps:$4 sm:$0xff]  }
  0x74   :  { %946 = vmatpush1.bf16.msra.mxu0 %v8817_v18  ;;  %v8843_v36 = vld [vmem:[#allocation5 + $0x1c4] ss:$16 sps:$4 sm:$0xff]   ;;  %v8847_v38 = vld [vmem:[#allocation5 + $0x1c0] ss:$16 sps:$4 sm:$0xff]   ;;  %v8909_v18 = vld [vmem:[#allocation5 + $0x8c] ss:$16 sps:$4 sm:$0xff]  }
  0x75   :  { %987 = vmatpush1.bf16.msra.mxu1 %v8818_v19  ;;  %947 = vmatprep.subr.bf16.mxu0 %v8819_v20  ;;  %v8845_v37 = vld [vmem:[#allocation5 + $0x3c4] ss:$16 sps:$4 sm:$0xff]   ;;  %v8848_v39 = vld [vmem:[#allocation5 + $0x3c0] ss:$16 sps:$4 sm:$0xff]   ;;  %v8912_v19 = vld [vmem:[#allocation5 + $0x28c] ss:$16 sps:$4 sm:$0xff]  }
  0x76   :  { %988 = vmatprep.subr.bf16.mxu1 %v8821_v21  ;;  %v8849_v40 = vld [vmem:[#allocation5 + $0x1a4] ss:$16 sps:$4 sm:$0xff]   ;;  %v8853_v42 = vld [vmem:[#allocation5 + $0x1a0] ss:$16 sps:$4 sm:$0xff]   ;;  %v8907_v20 = vld [vmem:[#allocation5 + $0x88] ss:$16 sps:$4 sm:$0xff]  }
  0x77   :  { %v8851_v41 = vld [vmem:[#allocation5 + $0x3a4] ss:$16 sps:$4 sm:$0xff]   ;;  %v8854_v43 = vld [vmem:[#allocation5 + $0x3a0] ss:$16 sps:$4 sm:$0xff]   ;;  %v8910_v21 = vld [vmem:[#allocation5 + $0x288] ss:$16 sps:$4 sm:$0xff]  }
  0x78   :  { %948 = vmatpush1.bf16.msra.mxu0 %v8823_v22  ;;  %v8855_v44 = vld [vmem:[#allocation5 + $0x184] ss:$16 sps:$4 sm:$0xff]   ;;  %v8859_v49 = vld [vmem:[#allocation5 + $0x180] ss:$16 sps:$4 sm:$0xff]   ;;  %v8915_v22 = vld [vmem:[#allocation5 + $0x6c] ss:$16 sps:$4 sm:$0xff]  }
  0x79   :  { %989 = vmatpush1.bf16.msra.mxu1 %v8824_v23  ;;  %949 = vmatprep.subr.bf16.mxu0 %v8825_v24  ;;  %v8857_v45 = vld [vmem:[#allocation5 + $0x384] ss:$16 sps:$4 sm:$0xff]   ;;  %v8860_v50 = vld [vmem:[#allocation5 + $0x380] ss:$16 sps:$4 sm:$0xff]   ;;  %v8918_v23 = vld [vmem:[#allocation5 + $0x26c] ss:$16 sps:$4 sm:$0xff]  }
  0x7a   :  { %990 = vmatprep.subr.bf16.mxu1 %v8827_v25  ;;  %v131_v46 = vld [vmem:[#allocation2] sm:$0xff]  ;;  %v8913_v24 = vld [vmem:[#allocation5 + $0x68] ss:$16 sps:$4 sm:$0xff]  }
  0x7b   :  { %v9457_v47 = vcombine.high %v131_v46, %v131_v46  ;;  %v8861_v52 = vld [vmem:[#allocation5 + $0x164] ss:$16 sps:$4 sm:$0xff]   ;;  %v8865_v54 = vld [vmem:[#allocation5 + $0x160] ss:$16 sps:$4 sm:$0xff]   ;;  %v9460_v6 = vcombine.low %v131_v46, %v131_v46  ;;  %v8916_v25 = vld [vmem:[#allocation5 + $0x268] ss:$16 sps:$4 sm:$0xff]  }
  0x7c   :  { %950 = vmatpush1.bf16.msra.mxu0 %v8829_v26  ;;  %v8863_v53 = vld [vmem:[#allocation5 + $0x364] ss:$16 sps:$4 sm:$0xff]   ;;  %v8866_v55 = vld [vmem:[#allocation5 + $0x360] ss:$16 sps:$4 sm:$0xff]   ;;  %v8921_v26 = vld [vmem:[#allocation5 + $0x4c] ss:$16 sps:$4 sm:$0xff]  }
  0x7d   :  { %991 = vmatpush1.bf16.msra.mxu1 %v8830_v27  ;;  %951 = vmatprep.subr.bf16.mxu0 %v8831_v28  ;;  %v8867_v56 = vld [vmem:[#allocation5 + $0x144] ss:$16 sps:$4 sm:$0xff]   ;;  %v8871_v58 = vld [vmem:[#allocation5 + $0x140] ss:$16 sps:$4 sm:$0xff]   ;;  %v8924_v27 = vld [vmem:[#allocation5 + $0x24c] ss:$16 sps:$4 sm:$0xff]  }
  0x7e   :  { %992 = vmatprep.subr.bf16.mxu1 %v8833_v29  ;;  %969 = vmatprep.mubr.bf16.mxu0 %v9457_v47  ;;  %v8869_v57 = vld [vmem:[#allocation5 + $0x344] ss:$16 sps:$4 sm:$0xff]   ;;  %v8872_v59 = vld [vmem:[#allocation5 + $0x340] ss:$16 sps:$4 sm:$0xff]   ;;  %v8919_v28 = vld [vmem:[#allocation5 + $0x48] ss:$16 sps:$4 sm:$0xff]  }
  0x7f   :  { %v8873_v60 = vld [vmem:[#allocation5 + $0x124] ss:$16 sps:$4 sm:$0xff]   ;;  %v8877_v62 = vld [vmem:[#allocation5 + $0x120] ss:$16 sps:$4 sm:$0xff]   ;;  %v8922_v29 = vld [vmem:[#allocation5 + $0x248] ss:$16 sps:$4 sm:$0xff]  }
  0x80   :  { %952 = vmatpush1.bf16.msra.mxu0 %v8835_v30  ;;  %v8875_v61 = vld [vmem:[#allocation5 + $0x324] ss:$16 sps:$4 sm:$0xff]   ;;  %v8878_v63 = vld [vmem:[#allocation5 + $0x320] ss:$16 sps:$4 sm:$0xff]   ;;  %v8927_v30 = vld [vmem:[#allocation5 + $0x2c] ss:$16 sps:$4 sm:$0xff]  }
  0x81   :  { %993 = vmatpush1.bf16.msra.mxu1 %v8836_v31  ;;  %953 = vmatprep.subr.bf16.mxu0 %v8837_v32  ;;  %v8879_v0 = vld [vmem:[#allocation5 + $0x104] ss:$16 sps:$4 sm:$0xff]   ;;  %v8883_v2 = vld [vmem:[#allocation5 + $0x100] ss:$16 sps:$4 sm:$0xff]   ;;  %v8930_v31 = vld [vmem:[#allocation5 + $0x22c] ss:$16 sps:$4 sm:$0xff]  }
  0x82   :  { %994 = vmatprep.subr.bf16.mxu1 %v8839_v33  ;;  %v8881_v1 = vld [vmem:[#allocation5 + $0x304] ss:$16 sps:$4 sm:$0xff]   ;;  %v8884_v3 = vld [vmem:[#allocation5 + $0x300] ss:$16 sps:$4 sm:$0xff]   ;;  %v8925_v32 = vld [vmem:[#allocation5 + $0x28] ss:$16 sps:$4 sm:$0xff]  }
  0x83   :  { %v8928_v33 = vld [vmem:[#allocation5 + $0x228] ss:$16 sps:$4 sm:$0xff]   ;;  %v8951_v46 = vld [vmem:[#allocation5 + $0x1ac] ss:$16 sps:$4 sm:$0xff]  }
  0x84   :  { %954 = vmatpush2.bf16.msra.mxu0 %v8841_v34  ;;  %v8933_v34 = vld [vmem:[#allocation5 + $0xc] ss:$16 sps:$4 sm:$0xff]  }
  0x85   :  { %995 = vmatpush2.bf16.msra.mxu1 %v8842_v35  ;;  %955 = vmatprep.subr.bf16.mxu0 %v8843_v36  ;;  %v8936_v35 = vld [vmem:[#allocation5 + $0x20c] ss:$16 sps:$4 sm:$0xff]   ;;  %v8931_v36 = vld [vmem:[#allocation5 + $0x8] ss:$16 sps:$4 sm:$0xff]  }
  0x86   :  { %996 = vmatprep.subr.bf16.mxu1 %v8845_v37  ;;  %v8934_v37 = vld [vmem:[#allocation5 + $0x208] ss:$16 sps:$4 sm:$0xff]  }
  0x88   :  { %956 = vmatpush2.bf16.msra.mxu0 %v8847_v38  ;;  %v8939_v38 = vld [vmem:[#allocation5 + $0x1ec] ss:$16 sps:$4 sm:$0xff]  }
  0x89   :  { %997 = vmatpush2.bf16.msra.mxu1 %v8848_v39  ;;  %957 = vmatprep.subr.bf16.mxu0 %v8849_v40  ;;  %v8942_v39 = vld [vmem:[#allocation5 + $0x3ec] ss:$16 sps:$4 sm:$0xff]   ;;  %v8937_v40 = vld [vmem:[#allocation5 + $0x1e8] ss:$16 sps:$4 sm:$0xff]  }
  0x8a   :  { %998 = vmatprep.subr.bf16.mxu1 %v8851_v41  ;;  %v8940_v41 = vld [vmem:[#allocation5 + $0x3e8] ss:$16 sps:$4 sm:$0xff]  }
  0x8c   :  { %958 = vmatpush2.bf16.msra.mxu0 %v8853_v42  ;;  %v8945_v42 = vld [vmem:[#allocation5 + $0x1cc] ss:$16 sps:$4 sm:$0xff]  }
  0x8d   :  { %999 = vmatpush2.bf16.msra.mxu1 %v8854_v43  ;;  %959 = vmatprep.subr.bf16.mxu0 %v8855_v44  ;;  %v8948_v43 = vld [vmem:[#allocation5 + $0x3cc] ss:$16 sps:$4 sm:$0xff]   ;;  %v8943_v44 = vld [vmem:[#allocation5 + $0x1c8] ss:$16 sps:$4 sm:$0xff]  }
  0x8e   :  { %1000 = vmatprep.subr.bf16.mxu1 %v8857_v45  ;;  %v8946_v45 = vld [vmem:[#allocation5 + $0x3c8] ss:$16 sps:$4 sm:$0xff]  }
  0x90   :  { %960 = vmatpush2.bf16.msra.mxu0 %v8859_v49  ;;  %v8952_v49 = vld [vmem:[#allocation5 + $0x3a8] ss:$16 sps:$4 sm:$0xff]  }
  0x91   :  { %1001 = vmatpush2.bf16.msra.mxu1 %v8860_v50  ;;  %961 = vmatprep.subr.bf16.mxu0 %v8861_v52  ;;  %v8957_v50 = vld [vmem:[#allocation5 + $0x18c] ss:$16 sps:$4 sm:$0xff]   ;;  %v8955_v52 = vld [vmem:[#allocation5 + $0x188] ss:$16 sps:$4 sm:$0xff]  }
  0x92   :  { %1002 = vmatprep.subr.bf16.mxu1 %v8863_v53  ;;  %v8958_v53 = vld [vmem:[#allocation5 + $0x388] ss:$16 sps:$4 sm:$0xff]  }
  0x94   :  { %962 = vmatpush2.bf16.msra.mxu0 %v8865_v54  ;;  %v8963_v54 = vld [vmem:[#allocation5 + $0x16c] ss:$16 sps:$4 sm:$0xff]  }
  0x95   :  { %1003 = vmatpush2.bf16.msra.mxu1 %v8866_v55  ;;  %963 = vmatprep.subr.bf16.mxu0 %v8867_v56  ;;  %v8966_v55 = vld [vmem:[#allocation5 + $0x36c] ss:$16 sps:$4 sm:$0xff]   ;;  %v8961_v56 = vld [vmem:[#allocation5 + $0x168] ss:$16 sps:$4 sm:$0xff]  }
  0x96   :  { %1004 = vmatprep.subr.bf16.mxu1 %v8869_v57  ;;  %v8964_v57 = vld [vmem:[#allocation5 + $0x368] ss:$16 sps:$4 sm:$0xff]  }
  0x98   :  { %964 = vmatpush2.bf16.msra.mxu0 %v8871_v58  ;;  %v8969_v58 = vld [vmem:[#allocation5 + $0x14c] ss:$16 sps:$4 sm:$0xff]  }
  0x99   :  { %1005 = vmatpush2.bf16.msra.mxu1 %v8872_v59  ;;  %965 = vmatprep.subr.bf16.mxu0 %v8873_v60  ;;  %v8972_v59 = vld [vmem:[#allocation5 + $0x34c] ss:$16 sps:$4 sm:$0xff]   ;;  %v8967_v60 = vld [vmem:[#allocation5 + $0x148] ss:$16 sps:$4 sm:$0xff]  }
  0x9a   :  { %1006 = vmatprep.subr.bf16.mxu1 %v8875_v61  ;;  %v8970_v61 = vld [vmem:[#allocation5 + $0x348] ss:$16 sps:$4 sm:$0xff]  }
  0x9c   :  { %966 = vmatpush2.bf16.msra.mxu0 %v8877_v62  ;;  %v8975_v62 = vld [vmem:[#allocation5 + $0x12c] ss:$16 sps:$4 sm:$0xff]  }
  0x9d   :  { %1007 = vmatpush2.bf16.msra.mxu1 %v8878_v63  ;;  %967 = vmatprep.subr.bf16.mxu0 %v8879_v0  ;;  %v8978_v63 = vld [vmem:[#allocation5 + $0x32c] ss:$16 sps:$4 sm:$0xff]   ;;  %v8973_v0 = vld [vmem:[#allocation5 + $0x128] ss:$16 sps:$4 sm:$0xff]  }
  0x9e   :  { %1008 = vmatprep.subr.bf16.mxu1 %v8881_v1  ;;  %v8976_v1 = vld [vmem:[#allocation5 + $0x328] ss:$16 sps:$4 sm:$0xff]  }
  0xa0   :  { %968 = vmatpush2.bf16.msra.mxu0 %v8883_v2  ;;  %v8981_v2 = vld [vmem:[#allocation5 + $0x10c] ss:$16 sps:$4 sm:$0xff]  }
  0xa1   :  { %1009 = vmatpush2.bf16.msra.mxu1 %v8884_v3  ;;  %1019 = vmatprep.subr.bf16.mxu0 %v8891_v4  ;;  %v8984_v3 = vld [vmem:[#allocation5 + $0x30c] ss:$16 sps:$4 sm:$0xff]   ;;  %v8979_v4 = vld [vmem:[#allocation5 + $0x108] ss:$16 sps:$4 sm:$0xff]  }
  0xa2   :  { %1060 = vmatprep.subr.bf16.mxu1 %v8894_v5  ;;  %v8982_v5 = vld [vmem:[#allocation5 + $0x308] ss:$16 sps:$4 sm:$0xff]  }
  0xa3   :  { %970 = vmatmul.mubr.bf16.vlgmr.msra.gmra.mxu0 %v9460_v6 }
  0xa4   :  { %1011 = vmatmul.mubr.bf16.vlgmr.msra.gmra.mxu1 %v9462_v7  ;;  %1020 = vmatpush1.bf16.msra.mxu0 %v8889_v8  ;;  %v8987_v8 = vld [vmem:[#allocation8 + $0xe4] ss:$16 sps:$4 sm:$0xff]  }
  0xa5   :  { %1061 = vmatpush1.bf16.msra.mxu1 %v8892_v9  ;;  %1021 = vmatprep.subr.bf16.mxu0 %v8897_v10  ;;  %v8985_v9 = vld [vmem:[#allocation8 + $0xe0] ss:$16 sps:$4 sm:$0xff]   ;;  %v8990_v10 = vld [vmem:[#allocation8 + $0xc4] ss:$16 sps:$4 sm:$0xff]  }
  0xa6   :  { %1062 = vmatprep.subr.bf16.mxu1 %v8900_v11  ;;  %1051 = vmatprep.mubr.bf16.mxu0 %v9457_v47  ;;  %v8954_v47 = vld [vmem:[#allocation5 + $0x3ac] ss:$16 sps:$4 sm:$0xff]   ;;  %v8988_v11 = vld [vmem:[#allocation8 + $0xc0] ss:$16 sps:$4 sm:$0xff]  }
  0xa7   :  { %1092 = vmatprep.mubr.bf16.mxu1 %v7751_v51  ;;  %v8960_v51 = vld [vmem:[#allocation5 + $0x38c] ss:$16 sps:$4 sm:$0xff]  }
  0xa8   :  { %1022 = vmatpush1.bf16.msra.mxu0 %v8895_v12  ;;  %v8993_v12 = vld [vmem:[#allocation8 + $0xa4] ss:$16 sps:$4 sm:$0xff]  }
  0xa9   :  { %1063 = vmatpush1.bf16.msra.mxu1 %v8898_v13  ;;  %1023 = vmatprep.subr.bf16.mxu0 %v8903_v14  ;;  %v8991_v13 = vld [vmem:[#allocation8 + $0xa0] ss:$16 sps:$4 sm:$0xff]   ;;  %v8996_v14 = vld [vmem:[#allocation8 + $0x84] ss:$16 sps:$4 sm:$0xff]  }
  0xaa   :  { %1064 = vmatprep.subr.bf16.mxu1 %v8906_v15  ;;  %v8994_v15 = vld [vmem:[#allocation8 + $0x80] ss:$16 sps:$4 sm:$0xff]  }
  0xac   :  { %1024 = vmatpush1.bf16.msra.mxu0 %v8901_v16  ;;  %v9035_v16 = vld [vmem:[#allocation8 + $0x2e4] ss:$16 sps:$4 sm:$0xff]  }
  0xad   :  { %1065 = vmatpush1.bf16.msra.mxu1 %v8904_v17  ;;  %1025 = vmatprep.subr.bf16.mxu0 %v8909_v18  ;;  %v8999_v17 = vld [vmem:[#allocation8 + $0x64] ss:$16 sps:$4 sm:$0xff]   ;;  %v9033_v18 = vld [vmem:[#allocation8 + $0x2e0] ss:$16 sps:$4 sm:$0xff]  }
  0xae   :  { %1066 = vmatprep.subr.bf16.mxu1 %v8912_v19  ;;  %v9039_v19 = vld [vmem:[#allocation8 + $0x2c0] ss:$16 sps:$4 sm:$0xff]  }
  0xb0   :  { %1026 = vmatpush1.bf16.msra.mxu0 %v8907_v20  ;;  %v9002_v20 = vld [vmem:[#allocation8 + $0x44] ss:$16 sps:$4 sm:$0xff]  }
  0xb1   :  { %1067 = vmatpush1.bf16.msra.mxu1 %v8910_v21  ;;  %1027 = vmatprep.subr.bf16.mxu0 %v8915_v22  ;;  %v9000_v21 = vld [vmem:[#allocation8 + $0x40] ss:$16 sps:$4 sm:$0xff]  }
  0xb2   :  { %1068 = vmatprep.subr.bf16.mxu1 %v8918_v23  ;;  %v9045_v22 = vld [vmem:[#allocation8 + $0x2a0] ss:$16 sps:$4 sm:$0xff]   ;;  %v9047_v23 = vld [vmem:[#allocation8 + $0x2a4] ss:$16 sps:$4 sm:$0xff]  }
  0xb4   :  { %1028 = vmatpush1.bf16.msra.mxu0 %v8913_v24  ;;  %v9005_v24 = vld [vmem:[#allocation8 + $0x24] ss:$16 sps:$4 sm:$0xff]  }
  0xb5   :  { %1069 = vmatpush1.bf16.msra.mxu1 %v8916_v25  ;;  %1029 = vmatprep.subr.bf16.mxu0 %v8921_v26  ;;  %v9003_v25 = vld [vmem:[#allocation8 + $0x20] ss:$16 sps:$4 sm:$0xff]  }
  0xb6   :  { %1070 = vmatprep.subr.bf16.mxu1 %v8924_v27  ;;  %v9051_v26 = vld [vmem:[#allocation8 + $0x280] ss:$16 sps:$4 sm:$0xff]   ;;  %v9053_v27 = vld [vmem:[#allocation8 + $0x284] ss:$16 sps:$4 sm:$0xff]  }
  0xb8   :  { %1030 = vmatpush1.bf16.msra.mxu0 %v8919_v28  ;;  %v9008_v28 = vld [vmem:[#allocation8 + $0x4] ss:$16 sps:$4 sm:$0xff]  }
  0xb9   :  { %1071 = vmatpush1.bf16.msra.mxu1 %v8922_v29  ;;  %1031 = vmatprep.subr.bf16.mxu0 %v8927_v30  ;;  %v9006_v29 = vld [vmem:[#allocation8] ss:$16 sps:$4 sm:$0xff]  }
  0xba   :  { %1072 = vmatprep.subr.bf16.mxu1 %v8930_v31  ;;  %v9057_v30 = vld [vmem:[#allocation8 + $0x260] ss:$16 sps:$4 sm:$0xff]   ;;  %v9059_v31 = vld [vmem:[#allocation8 + $0x264] ss:$16 sps:$4 sm:$0xff]  }
  0xbc   :  { %1032 = vmatpush1.bf16.msra.mxu0 %v8925_v32  ;;  %v9011_v32 = vld [vmem:[#allocation8 + $0x1e4] ss:$16 sps:$4 sm:$0xff]  }
  0xbd   :  { %1073 = vmatpush1.bf16.msra.mxu1 %v8928_v33  ;;  %1033 = vmatprep.subr.bf16.mxu0 %v8933_v34  ;;  %v9009_v33 = vld [vmem:[#allocation8 + $0x1e0] ss:$16 sps:$4 sm:$0xff]  }
  0xbe   :  { %1074 = vmatprep.subr.bf16.mxu1 %v8936_v35  ;;  %v9063_v34 = vld [vmem:[#allocation8 + $0x240] ss:$16 sps:$4 sm:$0xff]   ;;  %v9065_v35 = vld [vmem:[#allocation8 + $0x244] ss:$16 sps:$4 sm:$0xff]  }
  0xc0   :  { %1034 = vmatpush1.bf16.msra.mxu0 %v8931_v36  ;;  %v9014_v36 = vld [vmem:[#allocation8 + $0x1c4] ss:$16 sps:$4 sm:$0xff]  }
  0xc1   :  { %1075 = vmatpush1.bf16.msra.mxu1 %v8934_v37  ;;  %1035 = vmatprep.subr.bf16.mxu0 %v8939_v38  ;;  %v9012_v37 = vld [vmem:[#allocation8 + $0x1c0] ss:$16 sps:$4 sm:$0xff]  }
  0xc2   :  { %1076 = vmatprep.subr.bf16.mxu1 %v8942_v39  ;;  %v9069_v38 = vld [vmem:[#allocation8 + $0x220] ss:$16 sps:$4 sm:$0xff]   ;;  %v9071_v39 = vld [vmem:[#allocation8 + $0x224] ss:$16 sps:$4 sm:$0xff]  }
  0xc4   :  { %1036 = vmatpush2.bf16.msra.mxu0 %v8937_v40  ;;  %v9017_v40 = vld [vmem:[#allocation8 + $0x1a4] ss:$16 sps:$4 sm:$0xff]  }
  0xc5   :  { %1077 = vmatpush2.bf16.msra.mxu1 %v8940_v41  ;;  %1037 = vmatprep.subr.bf16.mxu0 %v8945_v42  ;;  %v9015_v41 = vld [vmem:[#allocation8 + $0x1a0] ss:$16 sps:$4 sm:$0xff]  }
  0xc6   :  { %1078 = vmatprep.subr.bf16.mxu1 %v8948_v43  ;;  %v9075_v42 = vld [vmem:[#allocation8 + $0x200] ss:$16 sps:$4 sm:$0xff]   ;;  %v9077_v43 = vld [vmem:[#allocation8 + $0x204] ss:$16 sps:$4 sm:$0xff]  }
  0xc8   :  { %1038 = vmatpush2.bf16.msra.mxu0 %v8943_v44  ;;  %v9020_v44 = vld [vmem:[#allocation8 + $0x184] ss:$16 sps:$4 sm:$0xff]  }
  0xc9   :  { %1079 = vmatpush2.bf16.msra.mxu1 %v8946_v45  ;;  %1039 = vmatprep.subr.bf16.mxu0 %v8951_v46  ;;  %v9018_v45 = vld [vmem:[#allocation8 + $0x180] ss:$16 sps:$4 sm:$0xff]  }
  0xca   :  { %1080 = vmatprep.subr.bf16.mxu1 %v8954_v47  ;;  %v9081_v46 = vld [vmem:[#allocation8 + $0x3e0] ss:$16 sps:$4 sm:$0xff]   ;;  %v9083_v47 = vld [vmem:[#allocation8 + $0x3e4] ss:$16 sps:$4 sm:$0xff]  }
  0xcc   :  { %1040 = vmatpush2.bf16.msra.mxu0 %v8949_v48  ;;  %v9023_v48 = vld [vmem:[#allocation8 + $0x164] ss:$16 sps:$4 sm:$0xff]  }
  0xcd   :  { %1081 = vmatpush2.bf16.msra.mxu1 %v8952_v49  ;;  %1041 = vmatprep.subr.bf16.mxu0 %v8957_v50  ;;  %v9021_v49 = vld [vmem:[#allocation8 + $0x160] ss:$16 sps:$4 sm:$0xff]  }
  0xce   :  { %1082 = vmatprep.subr.bf16.mxu1 %v8960_v51  ;;  %v9087_v50 = vld [vmem:[#allocation8 + $0x3c0] ss:$16 sps:$4 sm:$0xff]   ;;  %v9089_v51 = vld [vmem:[#allocation8 + $0x3c4] ss:$16 sps:$4 sm:$0xff]  }
  0xd0   :  { %1042 = vmatpush2.bf16.msra.mxu0 %v8955_v52  ;;  %v9026_v52 = vld [vmem:[#allocation8 + $0x144] ss:$16 sps:$4 sm:$0xff]  }
  0xd1   :  { %1083 = vmatpush2.bf16.msra.mxu1 %v8958_v53  ;;  %1043 = vmatprep.subr.bf16.mxu0 %v8963_v54  ;;  %v9024_v53 = vld [vmem:[#allocation8 + $0x140] ss:$16 sps:$4 sm:$0xff]  }
  0xd2   :  { %1084 = vmatprep.subr.bf16.mxu1 %v8966_v55  ;;  %v9093_v54 = vld [vmem:[#allocation8 + $0x3a0] ss:$16 sps:$4 sm:$0xff]   ;;  %v9095_v55 = vld [vmem:[#allocation8 + $0x3a4] ss:$16 sps:$4 sm:$0xff]  }
  0xd4   :  { %1044 = vmatpush2.bf16.msra.mxu0 %v8961_v56  ;;  %v9029_v56 = vld [vmem:[#allocation8 + $0x124] ss:$16 sps:$4 sm:$0xff]  }
  0xd5   :  { %1085 = vmatpush2.bf16.msra.mxu1 %v8964_v57  ;;  %1045 = vmatprep.subr.bf16.mxu0 %v8969_v58  ;;  %v9027_v57 = vld [vmem:[#allocation8 + $0x120] ss:$16 sps:$4 sm:$0xff]  }
  0xd6   :  { %1086 = vmatprep.subr.bf16.mxu1 %v8972_v59  ;;  %v9099_v58 = vld [vmem:[#allocation8 + $0x380] ss:$16 sps:$4 sm:$0xff]   ;;  %v9101_v59 = vld [vmem:[#allocation8 + $0x384] ss:$16 sps:$4 sm:$0xff]  }
  0xd8   :  { %1046 = vmatpush2.bf16.msra.mxu0 %v8967_v60  ;;  %v9032_v60 = vld [vmem:[#allocation8 + $0x104] ss:$16 sps:$4 sm:$0xff]  }
  0xd9   :  { %1087 = vmatpush2.bf16.msra.mxu1 %v8970_v61  ;;  %1047 = vmatprep.subr.bf16.mxu0 %v8975_v62  ;;  %v9030_v61 = vld [vmem:[#allocation8 + $0x100] ss:$16 sps:$4 sm:$0xff]  }
  0xda   :  { %1088 = vmatprep.subr.bf16.mxu1 %v8978_v63  ;;  %v9105_v62 = vld [vmem:[#allocation8 + $0x360] ss:$16 sps:$4 sm:$0xff]   ;;  %v9107_v63 = vld [vmem:[#allocation8 + $0x364] ss:$16 sps:$4 sm:$0xff]  }
  0xdc   :  { %1048 = vmatpush2.bf16.msra.mxu0 %v8973_v0  ;;  %v9038_v0 = vld [vmem:[#allocation8 + $0xec] ss:$16 sps:$4 sm:$0xff]  }
  0xdd   :  { %1089 = vmatpush2.bf16.msra.mxu1 %v8976_v1  ;;  %1049 = vmatprep.subr.bf16.mxu0 %v8981_v2  ;;  %v9111_v1 = vld [vmem:[#allocation8 + $0x340] ss:$16 sps:$4 sm:$0xff]   ;;  %v9113_v2 = vld [vmem:[#allocation8 + $0x344] ss:$16 sps:$4 sm:$0xff]  }
  0xde   :  { %1090 = vmatprep.subr.bf16.mxu1 %v8984_v3  ;;  %v9119_v3 = vld [vmem:[#allocation8 + $0x324] ss:$16 sps:$4 sm:$0xff]  }
  0xe0   :  { %1050 = vmatpush2.bf16.msra.mxu0 %v8979_v4  ;;  %v9117_v4 = vld [vmem:[#allocation8 + $0x320] ss:$16 sps:$4 sm:$0xff]  }
  0xe1   :  { %1091 = vmatpush2.bf16.msra.mxu1 %v8982_v5  ;;  %1899 = vmatprep.subr.bf16.mxu0 %v8987_v8  ;;  %v9125_v5 = vld [vmem:[#allocation8 + $0x304] ss:$16 sps:$4 sm:$0xff]   ;;  %v9123_v8 = vld [vmem:[#allocation8 + $0x300] ss:$16 sps:$4 sm:$0xff]  }
  0xe2   :  { %1940 = vmatprep.subr.bf16.mxu1 %v9035_v16 }
  0xe3   :  { %1052 = vmatmul.mubr.bf16.vlgmr.msra.gmra.mxu0 %v9460_v6  ;;  %v8997_v6 = vld [vmem:[#allocation8 + $0x60] ss:$16 sps:$4 sm:$0xff]  }
  0xe4   :  { %1093 = vmatmul.mubr.bf16.vlgmr.msra.gmra.mxu1 %v9462_v7  ;;  %1900 = vmatpush1.bf16.msra.mxu0 %v8985_v9  ;;  %v9041_v7 = vld [vmem:[#allocation8 + $0x2c4] ss:$16 sps:$4 sm:$0xff]   ;;  %v9131_v9 = vld [vmem:[#allocation8 + $0x2ec] ss:$16 sps:$4 sm:$0xff]  }
  0xe5   :  { %1901 = vmatprep.subr.bf16.mxu0 %v8990_v10  ;;  %1941 = vmatpush1.bf16.msra.mxu1 %v9033_v18  ;;  %v263_v10 = vlaneseq }
  0xe6   :  { %1942 = vmatprep.subr.bf16.mxu1 %v9041_v7 }
  0xe8   :  { %1902 = vmatpush1.bf16.msra.mxu0 %v8988_v11  ;;  %v9469_v11 = vshrl.u32 %v263_v10, 7 }
  0xe9   :  { %1903 = vmatprep.subr.bf16.mxu0 %v8993_v12  ;;  %1943 = vmatpush1.bf16.msra.mxu1 %v9039_v19 }
  0xea   :  { %1944 = vmatprep.subr.bf16.mxu1 %v9047_v23  ;;  %v9472_v12 = vsub.s32 0, %v9469_v11 }
  0xec   :  { %1904 = vmatpush1.bf16.msra.mxu0 %v8991_v13  ;;  %v9474_v13 = vld [vmem:[#allocation7] sm:$0xf] }
  0xed   :  { %1905 = vmatprep.subr.bf16.mxu0 %v8996_v14  ;;  %1945 = vmatpush1.bf16.msra.mxu1 %v9045_v22  ;;  %v9477_v14 = vsub.s32 1, %v9469_v11 }
  0xee   :  { %1946 = vmatprep.subr.bf16.mxu1 %v9053_v27 }
  0xef   :  { %v270_v16 = vrot.slane %v9474_v13, %v9477_v14 }
  0xf0   :  { %1906 = vmatpush1.bf16.msra.mxu0 %v8994_v15  ;;  %v266_v15 = vrot.slane %v9474_v13, %v9472_v12 }
  0xf1   :  { %1907 = vmatprep.subr.bf16.mxu0 %v8999_v17  ;;  %1947 = vmatpush1.bf16.msra.mxu1 %v9051_v26 }
  0xf2   :  { %1948 = vmatprep.subr.bf16.mxu1 %v9059_v31 }
  0xf4   :  { %1908 = vmatpush1.bf16.msra.mxu0 %v8997_v6 }
  0xf5   :  { %1909 = vmatprep.subr.bf16.mxu0 %v9002_v20  ;;  %1949 = vmatpush1.bf16.msra.mxu1 %v9057_v30  ;;  %v9036_v30 = vld [vmem:[#allocation8 + $0xe8] ss:$16 sps:$4 sm:$0xff]  }
  0xf6   :  { %1950 = vmatprep.subr.bf16.mxu1 %v9065_v35  ;;  %v9048_v35 = vld [vmem:[#allocation8 + $0xa8] ss:$16 sps:$4 sm:$0xff]  }
  0xf8   :  { %1910 = vmatpush1.bf16.msra.mxu0 %v9000_v21 }
  0xf9   :  { %1911 = vmatprep.subr.bf16.mxu0 %v9005_v24  ;;  %1951 = vmatpush1.bf16.msra.mxu1 %v9063_v34  ;;  %v9050_v34 = vld [vmem:[#allocation8 + $0xac] ss:$16 sps:$4 sm:$0xff]  }
  0xfa   :  { %1952 = vmatprep.subr.bf16.mxu1 %v9071_v39  ;;  %v9060_v39 = vld [vmem:[#allocation8 + $0x68] ss:$16 sps:$4 sm:$0xff]  }
  0xfc   :  { %1912 = vmatpush1.bf16.msra.mxu0 %v9003_v25 }
  0xfd   :  { %1913 = vmatprep.subr.bf16.mxu0 %v9008_v28  ;;  %1953 = vmatpush1.bf16.msra.mxu1 %v9069_v38  ;;  %v9062_v38 = vld [vmem:[#allocation8 + $0x6c] ss:$16 sps:$4 sm:$0xff]  }
  0xfe   :  { %1954 = vmatprep.subr.bf16.mxu1 %v9077_v43  ;;  %v9072_v43 = vld [vmem:[#allocation8 + $0x28] ss:$16 sps:$4 sm:$0xff]  }
 0x100   :  { %1914 = vmatpush1.bf16.msra.mxu0 %v9006_v29 }
 0x101   :  { %1915 = vmatprep.subr.bf16.mxu0 %v9011_v32  ;;  %1955 = vmatpush1.bf16.msra.mxu1 %v9075_v42  ;;  %v9044_v32 = vld [vmem:[#allocation8 + $0xcc] ss:$16 sps:$4 sm:$0xff]  }
 0x102   :  { %1956 = vmatprep.subr.bf16.mxu1 %v9083_v47  ;;  %v9074_v42 = vld [vmem:[#allocation8 + $0x2c] ss:$16 sps:$4 sm:$0xff]   ;;  %v9084_v47 = vld [vmem:[#allocation8 + $0x1e8] ss:$16 sps:$4 sm:$0xff]  }
 0x104   :  { %1916 = vmatpush2.bf16.msra.mxu0 %v9009_v33  ;;  %v9042_v33 = vld [vmem:[#allocation8 + $0xc8] ss:$16 sps:$4 sm:$0xff]  }
 0x105   :  { %1917 = vmatprep.subr.bf16.mxu0 %v9014_v36  ;;  %1957 = vmatpush2.bf16.msra.mxu1 %v9081_v46  ;;  %v9056_v36 = vld [vmem:[#allocation8 + $0x8c] ss:$16 sps:$4 sm:$0xff]  }
 0x106   :  { %1958 = vmatprep.subr.bf16.mxu1 %v9089_v51  ;;  %v9086_v46 = vld [vmem:[#allocation8 + $0x1ec] ss:$16 sps:$4 sm:$0xff]   ;;  %v9096_v51 = vld [vmem:[#allocation8 + $0x1a8] ss:$16 sps:$4 sm:$0xff]  }
 0x108   :  { %1918 = vmatpush2.bf16.msra.mxu0 %v9012_v37  ;;  %v9054_v37 = vld [vmem:[#allocation8 + $0x88] ss:$16 sps:$4 sm:$0xff]  }
 0x109   :  { %1919 = vmatprep.subr.bf16.mxu0 %v9017_v40  ;;  %1959 = vmatpush2.bf16.msra.mxu1 %v9087_v50  ;;  %v9068_v40 = vld [vmem:[#allocation8 + $0x4c] ss:$16 sps:$4 sm:$0xff]  }
 0x10a   :  { %1960 = vmatprep.subr.bf16.mxu1 %v9095_v55  ;;  %v9098_v50 = vld [vmem:[#allocation8 + $0x1ac] ss:$16 sps:$4 sm:$0xff]   ;;  %v9108_v55 = vld [vmem:[#allocation8 + $0x168] ss:$16 sps:$4 sm:$0xff]  }
 0x10c   :  { %1920 = vmatpush2.bf16.msra.mxu0 %v9015_v41  ;;  %v9066_v41 = vld [vmem:[#allocation8 + $0x48] ss:$16 sps:$4 sm:$0xff]  }
 0x10d   :  { %1921 = vmatprep.subr.bf16.mxu0 %v9020_v44  ;;  %1961 = vmatpush2.bf16.msra.mxu1 %v9093_v54  ;;  %v9080_v44 = vld [vmem:[#allocation8 + $0xc] ss:$16 sps:$4 sm:$0xff]  }
 0x10e   :  { %1962 = vmatprep.subr.bf16.mxu1 %v9101_v59  ;;  %v9110_v54 = vld [vmem:[#allocation8 + $0x16c] ss:$16 sps:$4 sm:$0xff]   ;;  %v9114_v59 = vld [vmem:[#allocation8 + $0x148] ss:$16 sps:$4 sm:$0xff]  }
 0x110   :  { %1922 = vmatpush2.bf16.msra.mxu0 %v9018_v45  ;;  %v9078_v45 = vld [vmem:[#allocation8 + $0x8] ss:$16 sps:$4 sm:$0xff]  }
 0x111   :  { %1923 = vmatprep.subr.bf16.mxu0 %v9023_v48  ;;  %1963 = vmatpush2.bf16.msra.mxu1 %v9099_v58  ;;  %v9092_v48 = vld [vmem:[#allocation8 + $0x1cc] ss:$16 sps:$4 sm:$0xff]   ;;  %v9490_v58 = vsub.s32 3, %v9469_v11 }
 0x112   :  { %1964 = vmatprep.subr.bf16.mxu1 %v9107_v63 }
 0x114   :  { %1924 = vmatpush2.bf16.msra.mxu0 %v9021_v49  ;;  %v9090_v49 = vld [vmem:[#allocation8 + $0x1c8] ss:$16 sps:$4 sm:$0xff]  }
 0x115   :  { %1925 = vmatprep.subr.bf16.mxu0 %v9026_v52  ;;  %1965 = vmatpush2.bf16.msra.mxu1 %v9105_v62  ;;  %v9104_v52 = vld [vmem:[#allocation8 + $0x18c] ss:$16 sps:$4 sm:$0xff]   ;;  %v278_v62 = vrot.slane %v9474_v13, %v9490_v58 }
 0x116   :  { %1966 = vmatprep.subr.bf16.mxu1 %v9113_v2  ;;  %v9120_v2 = vld [vmem:[#allocation8 + $0x128] ss:$16 sps:$4 sm:$0xff]  }
 0x118   :  { %1926 = vmatpush2.bf16.msra.mxu0 %v9024_v53  ;;  %v9102_v53 = vld [vmem:[#allocation8 + $0x188] ss:$16 sps:$4 sm:$0xff]  }
 0x119   :  { %1927 = vmatprep.subr.bf16.mxu0 %v9029_v56  ;;  %1967 = vmatpush2.bf16.msra.mxu1 %v9111_v1  ;;  %v9487_v56 = vsub.s32 2, %v9469_v11 }
 0x11a   :  { %1968 = vmatprep.subr.bf16.mxu1 %v9119_v3 }
 0x11c   :  { %1928 = vmatpush2.bf16.msra.mxu0 %v9027_v57  ;;  %v9116_v57 = vld [vmem:[#allocation8 + $0x14c] ss:$16 sps:$4 sm:$0xff]  }
 0x11d   :  { %1929 = vmatprep.subr.bf16.mxu0 %v9032_v60  ;;  %1969 = vmatpush2.bf16.msra.mxu1 %v9117_v4  ;;  %v274_v60 = vrot.slane %v9474_v13, %v9487_v56 }
 0x11e   :  { %1970 = vmatprep.subr.bf16.mxu1 %v9125_v5  ;;  %v9128_v5 = vld [vmem:[#allocation8 + $0x10c] ss:$16 sps:$4 sm:$0xff]  }
 0x120   :  { %1930 = vmatpush2.bf16.msra.mxu0 %v9030_v61  ;;  %v9122_v61 = vld [vmem:[#allocation8 + $0x12c] ss:$16 sps:$4 sm:$0xff]  }
 0x121   :  { %1981 = vmatprep.subr.bf16.mxu0 %v9038_v0  ;;  %1971 = vmatpush2.bf16.msra.mxu1 %v9123_v8 }
 0x122   :  { %2022 = vmatprep.subr.bf16.mxu1 %v9131_v9 }
 0x163   :  { %v971_v17 = vpop.f32.mrf.mxu0 }
 0x164   :  { %v1012_v18 = vpop.f32.mrf.mxu1  ;;  %v972_v6 = vadd.f32 %v971_v17, %v266_v15  ;;  %v9126_v17 = vld [vmem:[#allocation8 + $0x108] ss:$16 sps:$4 sm:$0xff]  }
 0x165   :  { %v973_v19 = vpop.f32.mrf.mxu0 }
 0x166   :  { %v1014_v7 = vpop.f32.mrf.mxu1  ;;  %v1013_v20 = vadd.f32 %v1012_v18, %v972_v6  ;;  %v974_v21 = vadd.f32 %v973_v19, %v270_v16 }
 0x167   :  { %v975_v22 = vpop.f32.mrf.mxu0 }
 0x168   :  { %v1016_v23 = vpop.f32.mrf.mxu1  ;;  %v1015_v24 = vadd.f32 %v1014_v7, %v974_v21  ;;  %v1101_v25 = vmax.f32 %v1013_v20, 0.0  ;;  %v9129_v20 = vld [vmem:[#allocation8 + $0x2e8] ss:$16 sps:$4 sm:$0xff]   ;;  %v9134_v22 = vld [vmem:[#allocation8 + $0x2cc] ss:$16 sps:$4 sm:$0xff]  }
 0x169   :  { %v976_v26 = vpop.f32.mrf.mxu0  ;;  %v9132_v23 = vld [vmem:[#allocation8 + $0x2c8] ss:$16 sps:$4 sm:$0xff]  }
 0x16a   :  { %v1017_v27 = vpop.f32.mrf.mxu1  ;;  %v1102_v28 = vmax.f32 %v1015_v24, 0.0  ;;  %v9483_v31 = vpack.c.bf16 %v1101_v25, %v1101_v25  ;;  %v9137_v24 = vld [vmem:[#allocation8 + $0x2ac] ss:$16 sps:$4 sm:$0xff]   ;;  %v9135_v25 = vld [vmem:[#allocation8 + $0x2a8] ss:$16 sps:$4 sm:$0xff]  }
 0x16b   :  { %v9140_v26 = vld [vmem:[#allocation8 + $0x28c] ss:$16 sps:$4 sm:$0xff]   ;;  %v2127_v27 = vld [vmem:[#allocation11 + $0x1c0] sm:$0xff] }
 0x16c   :  { %v1106_v29 = vpack.c.bf16 %v1102_v28, %v1102_v28  ;;  %v2131_v28 = vld [vmem:[#allocation11 + $0x1e0] sm:$0xff] }
 0x16e   :  { %1931 = vmatprep.mubr.bf16.mxu0 %v1106_v29 }
 0x16f   :  { %1932 = vmatmul.mubr.bf16.vlgmr.msra.gmra.mxu0 %v9483_v31 }
 0x170   :  { %1982 = vmatpush1.bf16.msra.mxu0 %v9036_v30  ;;  %2013 = vmatprep.mubr.bf16.mxu0 %v1106_v29  ;;  %v2119_v29 = vld [vmem:[#allocation11 + $0x180] sm:$0xff]  ;;  %v8064_v30 = vcombine.low %v2127_v27, %v2131_v28 }
 0x171   :  { %1983 = vmatprep.subr.bf16.mxu0 %v9044_v32  ;;  %v8065_v32 = vcombine.high %v2127_v27, %v2131_v28  ;;  %v9167_v27 = vld [vmem:[#allocation8 + $0x36c] ss:$16 sps:$4 sm:$0xff]  }
 0x174   :  { %1984 = vmatpush1.bf16.msra.mxu0 %v9042_v33  ;;  %v2123_v33 = vld [vmem:[#allocation11 + $0x1a0] sm:$0xff] }
 0x175   :  { %1985 = vmatprep.subr.bf16.mxu0 %v9050_v34  ;;  %v8057_v34 = vcombine.high %v2119_v29, %v2123_v33 }
 0x178   :  { %1986 = vmatpush1.bf16.msra.mxu0 %v9048_v35  ;;  %v2111_v35 = vld [vmem:[#allocation11 + $0x140] sm:$0xff] }
 0x179   :  { %1987 = vmatprep.subr.bf16.mxu0 %v9056_v36  ;;  %v9138_v36 = vld [vmem:[#allocation8 + $0x288] ss:$16 sps:$4 sm:$0xff]  }
 0x17c   :  { %1988 = vmatpush1.bf16.msra.mxu0 %v9054_v37  ;;  %v9143_v37 = vld [vmem:[#allocation8 + $0x26c] ss:$16 sps:$4 sm:$0xff]  }
 0x17d   :  { %1989 = vmatprep.subr.bf16.mxu0 %v9062_v38  ;;  %v8056_v38 = vcombine.low %v2119_v29, %v2123_v33  ;;  %v9165_v33 = vld [vmem:[#allocation8 + $0x368] ss:$16 sps:$4 sm:$0xff]  }
 0x180   :  { %1990 = vmatpush1.bf16.msra.mxu0 %v9060_v39 }
 0x181   :  { %1991 = vmatprep.subr.bf16.mxu0 %v9068_v40  ;;  %v2103_v40 = vld [vmem:[#allocation11 + $0x100] sm:$0xff] }
 0x184   :  { %1992 = vmatpush1.bf16.msra.mxu0 %v9066_v41  ;;  %v2107_v41 = vld [vmem:[#allocation11 + $0x120] sm:$0xff] }
 0x185   :  { %1993 = vmatprep.subr.bf16.mxu0 %v9074_v42  ;;  %v9141_v42 = vld [vmem:[#allocation8 + $0x268] ss:$16 sps:$4 sm:$0xff]  }
 0x188   :  { %1994 = vmatpush1.bf16.msra.mxu0 %v9072_v43  ;;  %v9146_v43 = vld [vmem:[#allocation8 + $0x24c] ss:$16 sps:$4 sm:$0xff]  }
 0x189   :  { %1995 = vmatprep.subr.bf16.mxu0 %v9080_v44 }
 0x18c   :  { %1996 = vmatpush1.bf16.msra.mxu0 %v9078_v45  ;;  %v8041_v45 = vcombine.high %v2103_v40, %v2107_v41 }
 0x18d   :  { %1997 = vmatprep.subr.bf16.mxu0 %v9086_v46  ;;  %v2095_v46 = vld [vmem:[#allocation11 + $0xc0] sm:$0xff] }
 0x190   :  { %1998 = vmatpush2.bf16.msra.mxu0 %v9084_v47  ;;  %v2099_v47 = vld [vmem:[#allocation11 + $0xe0] sm:$0xff] }
 0x191   :  { %1999 = vmatprep.subr.bf16.mxu0 %v9092_v48  ;;  %v9144_v48 = vld [vmem:[#allocation8 + $0x248] ss:$16 sps:$4 sm:$0xff]  }
 0x194   :  { %2000 = vmatpush2.bf16.msra.mxu0 %v9090_v49  ;;  %v9149_v49 = vld [vmem:[#allocation8 + $0x22c] ss:$16 sps:$4 sm:$0xff]  }
 0x195   :  { %2001 = vmatprep.subr.bf16.mxu0 %v9098_v50  ;;  %v8040_v50 = vcombine.low %v2103_v40, %v2107_v41 }
 0x198   :  { %2002 = vmatpush2.bf16.msra.mxu0 %v9096_v51  ;;  %v8033_v51 = vcombine.high %v2095_v46, %v2099_v47 }
 0x199   :  { %2003 = vmatprep.subr.bf16.mxu0 %v9104_v52  ;;  %v2087_v52 = vld [vmem:[#allocation11 + $0x80] sm:$0xff] }
 0x19c   :  { %2004 = vmatpush2.bf16.msra.mxu0 %v9102_v53  ;;  %v2091_v53 = vld [vmem:[#allocation11 + $0xa0] sm:$0xff] }
 0x19d   :  { %2005 = vmatprep.subr.bf16.mxu0 %v9110_v54  ;;  %v9147_v54 = vld [vmem:[#allocation8 + $0x228] ss:$16 sps:$4 sm:$0xff]  }
 0x1a0   :  { %2006 = vmatpush2.bf16.msra.mxu0 %v9108_v55  ;;  %v9152_v55 = vld [vmem:[#allocation8 + $0x20c] ss:$16 sps:$4 sm:$0xff]  }
 0x1a1   :  { %2007 = vmatprep.subr.bf16.mxu0 %v9116_v57  ;;  %v8032_v57 = vcombine.low %v2095_v46, %v2099_v47 }
 0x1a3   :  { %v1053_v63 = vpop.f32.mrf.mxu0 }
 0x1a4   :  { %v1094_v0 = vpop.f32.mrf.mxu1  ;;  %v1054_v1 = vadd.f32 %v1053_v63, %v274_v60  ;;  %2008 = vmatpush2.bf16.msra.mxu0 %v9114_v59  ;;  %v8025_v59 = vcombine.high %v2087_v52, %v2091_v53  ;;  %v2079_v60 = vld [vmem:[#allocation11 + $0x40] sm:$0xff]  ;;  %v9155_v63 = vld [vmem:[#allocation8 + $0x3ec] ss:$16 sps:$4 sm:$0xff]  }
 0x1a5   :  { %v1055_v3 = vpop.f32.mrf.mxu0  ;;  %2009 = vmatprep.subr.bf16.mxu0 %v9122_v61  ;;  %v2083_v61 = vld [vmem:[#allocation11 + $0x60] sm:$0xff] }
 0x1a6   :  { %v1096_v4 = vpop.f32.mrf.mxu1  ;;  %v1095_v8 = vadd.f32 %v1094_v0, %v1054_v1  ;;  %v1056_v9 = vadd.f32 %v1055_v3, %v278_v62  ;;  %v9150_v62 = vld [vmem:[#allocation8 + $0x208] ss:$16 sps:$4 sm:$0xff]   ;;  %v8024_v0 = vcombine.low %v2087_v52, %v2091_v53  ;;  %v8017_v1 = vcombine.high %v2079_v60, %v2083_v61 }
 0x1a7   :  { %v1057_v10 = vpop.f32.mrf.mxu0  ;;  %v2075_v3 = vld [vmem:[#allocation11 + $0x20] sm:$0xff] }
 0x1a8   :  { %v1098_v15 = vpop.f32.mrf.mxu1  ;;  %v1097_v16 = vadd.f32 %v1096_v4, %v1056_v9  ;;  %2010 = vmatpush2.bf16.msra.mxu0 %v9120_v2  ;;  %v1103_v18 = vmax.f32 %v1095_v8, 0.0  ;;  %v2071_v2 = vld [vmem:[#allocation11] sm:$0xff]  ;;  %v8016_v8 = vcombine.low %v2079_v60, %v2083_v61 }
 0x1a9   :  { %v1058_v6 = vpop.f32.mrf.mxu0  ;;  %2011 = vmatprep.subr.bf16.mxu0 %v9128_v5  ;;  %v9153_v4 = vld [vmem:[#allocation8 + $0x3e8] ss:$16 sps:$4 sm:$0xff]   ;;  %v9158_v5 = vld [vmem:[#allocation8 + $0x3cc] ss:$16 sps:$4 sm:$0xff]   ;;  %v8009_v9 = vcombine.high %v2071_v2, %v2075_v3 }
 0x1aa   :  { %v1099_v19 = vpop.f32.mrf.mxu1  ;;  %v1104_v13 = vmax.f32 %v1097_v16, 0.0  ;;  %v9496_v21 = vpack.c.bf16 %v1103_v18, %v1103_v18  ;;  %v2191_v10 = vld [vmem:[#allocation11 + $0x3c0] sm:$0xff]  ;;  %v8008_v18 = vcombine.low %v2071_v2, %v2075_v3 }
 0x1ab   :  { %v2195_v15 = vld [vmem:[#allocation11 + $0x3e0] sm:$0xff] }
 0x1ac   :  { %v1108_v7 = vpack.c.bf16 %v1104_v13, %v1104_v13  ;;  %2012 = vmatpush2.bf16.msra.mxu0 %v9126_v17  ;;  %v9156_v16 = vld [vmem:[#allocation8 + $0x3c8] ss:$16 sps:$4 sm:$0xff]   ;;  %v9161_v17 = vld [vmem:[#allocation8 + $0x3ac] ss:$16 sps:$4 sm:$0xff]   ;;  %v8129_v6 = vcombine.high %v2191_v10, %v2195_v15 }
 0x1ad   :  { %3649 = vmatprep.subr.bf16.mxu0 %v8065_v32  ;;  %v2183_v19 = vld [vmem:[#allocation11 + $0x380] sm:$0xff] }
 0x1ae   :  { %1972 = vmatprep.mubr.bf16.mxu1 %v1108_v7  ;;  %v2187_v13 = vld [vmem:[#allocation11 + $0x3a0] sm:$0xff] }
 0x1af   :  { %2014 = vmatmul.mubr.bf16.vlgmr.msra.gmra.mxu0 %v9483_v31  ;;  %1973 = vmatmul.mubr.bf16.vlgmr.msra.gmra.mxu1 %v9496_v21  ;;  %v2115_v31 = vld [vmem:[#allocation11 + $0x160] sm:$0xff]  ;;  %v8120_v28 = vcombine.low %v2183_v19, %v2187_v13 }
 0x1b0   :  { %2023 = vmatpush1.bf16.msra.mxu1 %v9129_v20  ;;  %2054 = vmatprep.mubr.bf16.mxu1 %v1108_v7  ;;  %v8049_v39 = vcombine.high %v2111_v35, %v2115_v31  ;;  %v8048_v44 = vcombine.low %v2111_v35, %v2115_v31  ;;  %v9159_v7 = vld [vmem:[#allocation8 + $0x3a8] ss:$16 sps:$4 sm:$0xff]   ;;  %v9164_v20 = vld [vmem:[#allocation8 + $0x38c] ss:$16 sps:$4 sm:$0xff]  }
 0x1b1   :  { %2024 = vmatprep.subr.bf16.mxu1 %v9134_v22  ;;  %3650 = vmatpush1.bf16.msra.mxu0 %v8064_v30  ;;  %v8128_v22 = vcombine.low %v2191_v10, %v2195_v15  ;;  %v2167_v30 = vld [vmem:[#allocation11 + $0x300] sm:$0xff] }
 0x1b2   :  { %3651 = vmatprep.subr.bf16.mxu0 %v8057_v34  ;;  %v2171_v32 = vld [vmem:[#allocation11 + $0x320] sm:$0xff]  ;;  %v9170_v34 = vld [vmem:[#allocation8 + $0x34c] ss:$16 sps:$4 sm:$0xff]  }
 0x1b3   :  { %v8105_v31 = vcombine.high %v2167_v30, %v2171_v32  ;;  %v8104_v40 = vcombine.low %v2167_v30, %v2171_v32  ;;  %v2255_v60 = vld [vmem:[#allocation11 + $0x5c0] sm:$0xff] }
 0x1b4   :  { %2025 = vmatpush1.bf16.msra.mxu1 %v9132_v23  ;;  %v8121_v23 = vcombine.high %v2183_v19, %v2187_v13  ;;  %v2259_v61 = vld [vmem:[#allocation11 + $0x5e0] sm:$0xff] }
 0x1b5   :  { %2026 = vmatprep.subr.bf16.mxu1 %v9137_v24  ;;  %3652 = vmatpush1.bf16.msra.mxu0 %v8056_v38  ;;  %v2175_v24 = vld [vmem:[#allocation11 + $0x340] sm:$0xff] }
 0x1b6   :  { %3653 = vmatprep.subr.bf16.mxu0 %v8049_v39  ;;  %v9168_v38 = vld [vmem:[#allocation8 + $0x348] ss:$16 sps:$4 sm:$0xff]   ;;  %v9173_v39 = vld [vmem:[#allocation8 + $0x32c] ss:$16 sps:$4 sm:$0xff]  }
 0x1b7   :  { %v2247_v3 = vld [vmem:[#allocation11 + $0x580] sm:$0xff] }
 0x1b8   :  { %2027 = vmatpush1.bf16.msra.mxu1 %v9135_v25  ;;  %v2179_v25 = vld [vmem:[#allocation11 + $0x360] sm:$0xff] }
 0x1b9   :  { %2028 = vmatprep.subr.bf16.mxu1 %v9140_v26  ;;  %3654 = vmatpush1.bf16.msra.mxu0 %v8048_v44  ;;  %v9162_v26 = vld [vmem:[#allocation8 + $0x388] ss:$16 sps:$4 sm:$0xff]   ;;  %v8113_v29 = vcombine.high %v2175_v24, %v2179_v25  ;;  %v8112_v35 = vcombine.low %v2175_v24, %v2179_v25 }
 0x1ba   :  { %3655 = vmatprep.subr.bf16.mxu0 %v8041_v45  ;;  %v9171_v44 = vld [vmem:[#allocation8 + $0x328] ss:$16 sps:$4 sm:$0xff]   ;;  %v9176_v45 = vld [vmem:[#allocation8 + $0x30c] ss:$16 sps:$4 sm:$0xff]  }
 0x1bb   :  { %v2243_v10 = vld [vmem:[#allocation11 + $0x560] sm:$0xff] }
 0x1bc   :  { %2029 = vmatpush1.bf16.msra.mxu1 %v9138_v36  ;;  %v2159_v36 = vld [vmem:[#allocation11 + $0x2c0] sm:$0xff] }
 0x1bd   :  { %2030 = vmatprep.subr.bf16.mxu1 %v9143_v37  ;;  %3656 = vmatpush1.bf16.msra.mxu0 %v8040_v50  ;;  %v2163_v37 = vld [vmem:[#allocation11 + $0x2e0] sm:$0xff] }
 0x1be   :  { %3657 = vmatprep.subr.bf16.mxu0 %v8033_v51  ;;  %v8097_v41 = vcombine.high %v2159_v36, %v2163_v37  ;;  %v8096_v46 = vcombine.low %v2159_v36, %v2163_v37  ;;  %v2143_v50 = vld [vmem:[#allocation11 + $0x240] sm:$0xff] }
 0x1bf   :  { %v2147_v51 = vld [vmem:[#allocation11 + $0x260] sm:$0xff] }
 0x1c0   :  { %2031 = vmatpush1.bf16.msra.mxu1 %v9141_v42  ;;  %v2151_v42 = vld [vmem:[#allocation11 + $0x280] sm:$0xff]  ;;  %v8081_v52 = vcombine.high %v2143_v50, %v2147_v51  ;;  %v8080_v53 = vcombine.low %v2143_v50, %v2147_v51 }
 0x1c1   :  { %2032 = vmatprep.subr.bf16.mxu1 %v9146_v43  ;;  %3658 = vmatpush1.bf16.msra.mxu0 %v8032_v57  ;;  %v2155_v43 = vld [vmem:[#allocation11 + $0x2a0] sm:$0xff] }
 0x1c2   :  { %3659 = vmatprep.subr.bf16.mxu0 %v8025_v59  ;;  %v8089_v47 = vcombine.high %v2151_v42, %v2155_v43  ;;  %v2223_v13 = vld [vmem:[#allocation11 + $0x4c0] sm:$0xff] }
 0x1c3   :  { %v2219_v24 = vld [vmem:[#allocation11 + $0x4a0] sm:$0xff] }
 0x1c4   :  { %2033 = vmatpush1.bf16.msra.mxu1 %v9144_v48  ;;  %v9174_v48 = vld [vmem:[#allocation8 + $0x308] ss:$16 sps:$4 sm:$0xff]  }
 0x1c5   :  { %2034 = vmatprep.subr.bf16.mxu1 %v9149_v49  ;;  %3660 = vmatpush1.bf16.msra.mxu0 %v8024_v0  ;;  %v8088_v49 = vcombine.low %v2151_v42, %v2155_v43  ;;  %v9501_v0 = vld [vmem:[#allocation11 + $0x1c8] sm:$0xff]  ;;  %v2199_v32 = vld [vmem:[#allocation11 + $0x400] sm:$0xff] }
 0x1c6   :  { %3661 = vmatprep.subr.bf16.mxu0 %v8017_v1  ;;  %v9503_v1 = vld [vmem:[#allocation11 + $0x1e8] sm:$0xff]  ;;  %v2323_v36 = vld [vmem:[#allocation11 + $0x7e0] sm:$0xff] }
 0x1c7   :  { %v8066_v2 = vcombine.low %v9501_v0, %v9503_v1  ;;  %v2303_v43 = vld [vmem:[#allocation11 + $0x740] sm:$0xff] }
 0x1c8   :  { %2035 = vmatpush1.bf16.msra.mxu1 %v9147_v54  ;;  %v2135_v54 = vld [vmem:[#allocation11 + $0x200] sm:$0xff] }
 0x1c9   :  { %2036 = vmatprep.subr.bf16.mxu1 %v9152_v55  ;;  %3662 = vmatpush1.bf16.msra.mxu0 %v8016_v8  ;;  %v2139_v55 = vld [vmem:[#allocation11 + $0x220] sm:$0xff] }
 0x1ca   :  { %3663 = vmatprep.subr.bf16.mxu0 %v8009_v9  ;;  %v8073_v57 = vcombine.high %v2135_v54, %v2139_v55  ;;  %v8072_v59 = vcombine.low %v2135_v54, %v2139_v55  ;;  %v2239_v9 = vld [vmem:[#allocation11 + $0x540] sm:$0xff] }
 0x1cb   :  { %v8176_v15 = vcombine.low %v2239_v9, %v2243_v10  ;;  %v2287_v51 = vld [vmem:[#allocation11 + $0x6c0] sm:$0xff] }
 0x1cc   :  { %2037 = vmatpush1.bf16.msra.mxu1 %v9150_v62  ;;  %v8192_v62 = vcombine.low %v2255_v60, %v2259_v61  ;;  %v2279_v55 = vld [vmem:[#allocation11 + $0x680] sm:$0xff] }
 0x1cd   :  { %2038 = vmatprep.subr.bf16.mxu1 %v9155_v63  ;;  %3664 = vmatpush1.bf16.msra.mxu0 %v8008_v18  ;;  %v8193_v63 = vcombine.high %v2255_v60, %v2259_v61  ;;  %v2235_v18 = vld [vmem:[#allocation11 + $0x520] sm:$0xff] }
 0x1ce   :  { %3665 = vmatprep.subr.bf16.mxu0 %v8129_v6  ;;  %v2271_v61 = vld [vmem:[#allocation11 + $0x640] sm:$0xff] }
 0x1d0   :  { %2039 = vmatpush2.bf16.msra.mxu1 %v9153_v4  ;;  %v2251_v4 = vld [vmem:[#allocation11 + $0x5a0] sm:$0xff] }
 0x1d1   :  { %2040 = vmatprep.subr.bf16.mxu1 %v9158_v5  ;;  %3666 = vmatpush2.bf16.msra.mxu0 %v8128_v22  ;;  %v8184_v5 = vcombine.low %v2247_v3, %v2251_v4  ;;  %v8185_v8 = vcombine.high %v2247_v3, %v2251_v4 }
 0x1d2   :  { %3667 = vmatprep.subr.bf16.mxu0 %v8121_v23  ;;  %v2215_v23 = vld [vmem:[#allocation11 + $0x480] sm:$0xff] }
 0x1d3   :  { %v8152_v25 = vcombine.low %v2215_v23, %v2219_v24 }
 0x1d4   :  { %2041 = vmatpush2.bf16.msra.mxu1 %v9156_v16  ;;  %v8177_v16 = vcombine.high %v2239_v9, %v2243_v10 }
 0x1d5   :  { %2042 = vmatprep.subr.bf16.mxu1 %v9161_v17  ;;  %3668 = vmatpush2.bf16.msra.mxu0 %v8120_v28  ;;  %v2231_v17 = vld [vmem:[#allocation11 + $0x500] sm:$0xff] }
 0x1d6   :  { %3669 = vmatprep.subr.bf16.mxu0 %v8113_v29  ;;  %v8168_v6 = vcombine.low %v2231_v17, %v2235_v18  ;;  %v8169_v19 = vcombine.high %v2231_v17, %v2235_v18  ;;  %v2211_v28 = vld [vmem:[#allocation11 + $0x460] sm:$0xff]  ;;  %v9509_v17 = vld [vmem:[#allocation11 + $0x5c8] sm:$0xff] }
 0x1d7   :  { %v9511_v18 = vld [vmem:[#allocation11 + $0x5e8] sm:$0xff] }
 0x1d8   :  { %2043 = vmatpush2.bf16.msra.mxu1 %v9159_v7  ;;  %v2227_v7 = vld [vmem:[#allocation11 + $0x4e0] sm:$0xff] }
 0x1d9   :  { %2044 = vmatprep.subr.bf16.mxu1 %v9164_v20  ;;  %3670 = vmatpush2.bf16.msra.mxu0 %v8112_v35  ;;  %v8160_v20 = vcombine.low %v2223_v13, %v2227_v7  ;;  %v8161_v22 = vcombine.high %v2223_v13, %v2227_v7  ;;  %v9517_v13 = vld [vmem:[#allocation10] sm:$0xf] }
 0x1da   :  { %3671 = vmatprep.subr.bf16.mxu0 %v8105_v31  ;;  %v2319_v31 = vld [vmem:[#allocation11 + $0x7c0] sm:$0xff]  ;;  %v1242_v7 = vrot.slane %v9517_v13, %v9472_v12 }
 0x1db   :  { %v8256_v37 = vcombine.low %v2319_v31, %v2323_v36 }
 0x1dc   :  { %2045 = vmatpush2.bf16.msra.mxu1 %v9162_v26  ;;  %v8153_v26 = vcombine.high %v2215_v23, %v2219_v24 }
 0x1dd   :  { %2046 = vmatprep.subr.bf16.mxu1 %v9167_v27  ;;  %3672 = vmatpush2.bf16.msra.mxu0 %v8104_v40  ;;  %v2207_v27 = vld [vmem:[#allocation11 + $0x440] sm:$0xff] }
 0x1de   :  { %3673 = vmatprep.subr.bf16.mxu0 %v8097_v41  ;;  %v8144_v29 = vcombine.low %v2207_v27, %v2211_v28  ;;  %v8145_v30 = vcombine.high %v2207_v27, %v2211_v28  ;;  %v2315_v40 = vld [vmem:[#allocation11 + $0x7a0] sm:$0xff] }
 0x1e0   :  { %2047 = vmatpush2.bf16.msra.mxu1 %v9165_v33  ;;  %v2203_v33 = vld [vmem:[#allocation11 + $0x420] sm:$0xff] }
 0x1e1   :  { %2048 = vmatprep.subr.bf16.mxu1 %v9170_v34  ;;  %3674 = vmatpush2.bf16.msra.mxu0 %v8096_v46  ;;  %v8136_v34 = vcombine.low %v2199_v32, %v2203_v33  ;;  %v8137_v35 = vcombine.high %v2199_v32, %v2203_v33 }
 0x1e2   :  { %3675 = vmatprep.subr.bf16.mxu0 %v8089_v47  ;;  %v2295_v47 = vld [vmem:[#allocation11 + $0x700] sm:$0xff] }
 0x1e4   :  { %2049 = vmatpush2.bf16.msra.mxu1 %v9168_v38  ;;  %v8257_v38 = vcombine.high %v2319_v31, %v2323_v36  ;;  %v2124_v31 = vld [vmem:[#allocation11 + $0x1a8] sm:$0xff] }
 0x1e5   :  { %2050 = vmatprep.subr.bf16.mxu1 %v9173_v39  ;;  %3676 = vmatpush2.bf16.msra.mxu0 %v8088_v49  ;;  %v2311_v39 = vld [vmem:[#allocation11 + $0x780] sm:$0xff] }
 0x1e6   :  { %3677 = vmatprep.subr.bf16.mxu0 %v8081_v52  ;;  %v8248_v41 = vcombine.low %v2311_v39, %v2315_v40  ;;  %v8249_v42 = vcombine.high %v2311_v39, %v2315_v40  ;;  %v2291_v52 = vld [vmem:[#allocation11 + $0x6e0] sm:$0xff] }
 0x1e7   :  { %v8225_v54 = vcombine.high %v2287_v51, %v2291_v52 }
 0x1e8   :  { %2051 = vmatpush2.bf16.msra.mxu1 %v9171_v44  ;;  %v2307_v44 = vld [vmem:[#allocation11 + $0x760] sm:$0xff] }
 0x1e9   :  { %2052 = vmatprep.subr.bf16.mxu1 %v9176_v45  ;;  %3678 = vmatpush2.bf16.msra.mxu0 %v8080_v53  ;;  %v8240_v45 = vcombine.low %v2303_v43, %v2307_v44  ;;  %v8241_v46 = vcombine.high %v2303_v43, %v2307_v44  ;;  %v8224_v53 = vcombine.low %v2287_v51, %v2291_v52 }
 0x1ea   :  { %3679 = vmatprep.subr.bf16.mxu0 %v8073_v57  ;;  %v2283_v57 = vld [vmem:[#allocation11 + $0x6a0] sm:$0xff] }
 0x1eb   :  { %v8217_v60 = vcombine.high %v2279_v55, %v2283_v57 }
 0x1ec   :  { %2053 = vmatpush2.bf16.msra.mxu1 %v9174_v48  ;;  %v2299_v48 = vld [vmem:[#allocation11 + $0x720] sm:$0xff] }
 0x1ed   :  { %3680 = vmatpush2.bf16.msra.mxu0 %v8072_v59  ;;  %3690 = vmatprep.subr.bf16.mxu1 %v8193_v63  ;;  %v8232_v49 = vcombine.low %v2295_v47, %v2299_v48  ;;  %v8233_v50 = vcombine.high %v2295_v47, %v2299_v48  ;;  %v8216_v59 = vcombine.low %v2279_v55, %v2283_v57  ;;  %v2084_v55 = vld [vmem:[#allocation11 + $0x68] sm:$0xff] }
 0x1ef   :  { %2055 = vmatmul.mubr.bf16.vlgmr.msra.gmra.mxu1 %v9496_v21  ;;  %v8067_v21 = vcombine.high %v9501_v0, %v9503_v1  ;;  %v2092_v0 = vld [vmem:[#allocation11 + $0xa8] sm:$0xff] }
 0x1f0   :  { %3691 = vmatpush1.bf16.msra.mxu1 %v8192_v62  ;;  %v2275_v62 = vld [vmem:[#allocation11 + $0x660] sm:$0xff] }
 0x1f1   :  { %3731 = vmatprep.subr.bf16.mxu0 %v8067_v21  ;;  %3692 = vmatprep.subr.bf16.mxu1 %v8185_v8  ;;  %v8209_v63 = vcombine.high %v2271_v61, %v2275_v62  ;;  %v8208_v3 = vcombine.low %v2271_v61, %v2275_v62  ;;  %v2267_v8 = vld [vmem:[#allocation11 + $0x620] sm:$0xff]  ;;  %v2076_v61 = vld [vmem:[#allocation11 + $0x28] sm:$0xff] }
 0x1f4   :  { %3693 = vmatpush1.bf16.msra.mxu1 %v8184_v5  ;;  %v2263_v5 = vld [vmem:[#allocation11 + $0x600] sm:$0xff] }
 0x1f5   :  { %3694 = vmatprep.subr.bf16.mxu1 %v8177_v16  ;;  %v8201_v9 = vcombine.high %v2263_v5, %v2267_v8 }
 0x1f8   :  { %3695 = vmatpush1.bf16.msra.mxu1 %v8176_v15  ;;  %v8200_v15 = vcombine.low %v2263_v5, %v2267_v8  ;;  %v2184_v8 = vld [vmem:[#allocation11 + $0x388] sm:$0xff] }
 0x1f9   :  { %3696 = vmatprep.subr.bf16.mxu1 %v8169_v19  ;;  %v8194_v19 = vcombine.low %v9509_v17, %v9511_v18 }
 0x1fc   :  { %3697 = vmatpush1.bf16.msra.mxu1 %v8168_v6  ;;  %v8195_v6 = vcombine.high %v9509_v17, %v9511_v18 }
 0x1fd   :  { %3698 = vmatprep.subr.bf16.mxu1 %v8161_v22 }
 0x200   :  { %3699 = vmatpush1.bf16.msra.mxu1 %v8160_v20  ;;  %v1246_v20 = vrot.slane %v9517_v13, %v9477_v14 }
 0x201   :  { %3700 = vmatprep.subr.bf16.mxu1 %v8153_v26 }
 0x204   :  { %3701 = vmatpush1.bf16.msra.mxu1 %v8152_v25 }
 0x205   :  { %3702 = vmatprep.subr.bf16.mxu1 %v8145_v30 }
 0x208   :  { %3703 = vmatpush1.bf16.msra.mxu1 %v8144_v29 }
 0x209   :  { %3704 = vmatprep.subr.bf16.mxu1 %v8137_v35  ;;  %v2120_v35 = vld [vmem:[#allocation11 + $0x188] sm:$0xff] }
 0x20a   :  { %v8059_v40 = vcombine.high %v2120_v35, %v2124_v31  ;;  %v8058_v43 = vcombine.low %v2120_v35, %v2124_v31 }
 0x20c   :  { %3705 = vmatpush1.bf16.msra.mxu1 %v8136_v34 }
 0x20d   :  { %3706 = vmatprep.subr.bf16.mxu1 %v8257_v38 }
 0x210   :  { %3707 = vmatpush2.bf16.msra.mxu1 %v8256_v37 }
 0x211   :  { %3708 = vmatprep.subr.bf16.mxu1 %v8249_v42  ;;  %v2116_v42 = vld [vmem:[#allocation11 + $0x168] sm:$0xff] }
 0x214   :  { %3709 = vmatpush2.bf16.msra.mxu1 %v8248_v41  ;;  %v2112_v41 = vld [vmem:[#allocation11 + $0x148] sm:$0xff] }
 0x215   :  { %3710 = vmatprep.subr.bf16.mxu1 %v8241_v46  ;;  %v8051_v44 = vcombine.high %v2112_v41, %v2116_v42  ;;  %v2108_v46 = vld [vmem:[#allocation11 + $0x128] sm:$0xff]  ;;  %v8050_v47 = vcombine.low %v2112_v41, %v2116_v42 }
 0x218   :  { %3711 = vmatpush2.bf16.msra.mxu1 %v8240_v45  ;;  %v2104_v45 = vld [vmem:[#allocation11 + $0x108] sm:$0xff] }
 0x219   :  { %3712 = vmatprep.subr.bf16.mxu1 %v8233_v50  ;;  %v8043_v48 = vcombine.high %v2104_v45, %v2108_v46  ;;  %v2100_v50 = vld [vmem:[#allocation11 + $0xe8] sm:$0xff]  ;;  %v8042_v51 = vcombine.low %v2104_v45, %v2108_v46 }
 0x21a   :  { %v2140_v45 = vld [vmem:[#allocation11 + $0x228] sm:$0xff] }
 0x21c   :  { %3713 = vmatpush2.bf16.msra.mxu1 %v8232_v49  ;;  %v2096_v49 = vld [vmem:[#allocation11 + $0xc8] sm:$0xff] }
 0x21d   :  { %3714 = vmatprep.subr.bf16.mxu1 %v8225_v54  ;;  %v8035_v52 = vcombine.high %v2096_v49, %v2100_v50  ;;  %v8034_v1 = vcombine.low %v2096_v49, %v2100_v50  ;;  %v2080_v54 = vld [vmem:[#allocation11 + $0x48] sm:$0xff] }
 0x21e   :  { %v8018_v62 = vcombine.low %v2080_v54, %v2084_v55 }
 0x220   :  { %3715 = vmatpush2.bf16.msra.mxu1 %v8224_v53  ;;  %v2088_v53 = vld [vmem:[#allocation11 + $0x88] sm:$0xff] }
 0x221   :  { %3716 = vmatprep.subr.bf16.mxu1 %v8217_v60  ;;  %v8026_v57 = vcombine.low %v2088_v53, %v2092_v0  ;;  %v2072_v60 = vld [vmem:[#allocation11 + $0x8] sm:$0xff] }
 0x224   :  { %3717 = vmatpush2.bf16.msra.mxu1 %v8216_v59  ;;  %v8019_v59 = vcombine.high %v2080_v54, %v2084_v55 }
 0x225   :  { %3718 = vmatprep.subr.bf16.mxu1 %v8209_v63  ;;  %v8011_v63 = vcombine.high %v2072_v60, %v2076_v61 }
 0x228   :  { %3719 = vmatpush2.bf16.msra.mxu1 %v8208_v3  ;;  %v2196_v3 = vld [vmem:[#allocation11 + $0x3e8] sm:$0xff] }
 0x229   :  { %3720 = vmatprep.subr.bf16.mxu1 %v8201_v9  ;;  %v2188_v9 = vld [vmem:[#allocation11 + $0x3a8] sm:$0xff] }
 0x22c   :  { %3721 = vmatpush2.bf16.msra.mxu1 %v8200_v15  ;;  %v8123_v15 = vcombine.high %v2184_v8, %v2188_v9 }
 0x22d   :  { %3772 = vmatprep.subr.bf16.mxu1 %v8195_v6  ;;  %v2180_v6 = vld [vmem:[#allocation11 + $0x368] sm:$0xff] }
 0x22f   :  { %v1933_v21 = vpop.f32.mrf.mxu0 }
 0x230   :  { %v1934_v22 = vadd.f32 %v1933_v21, %v1242_v7  ;;  %v2192_v21 = vld [vmem:[#allocation11 + $0x3c8] sm:$0xff]  ;;  %v8122_v7 = vcombine.low %v2184_v8, %v2188_v9  ;;  %v2113_v9 = vld [vmem:[#allocation11 + $0x150] sm:$0xff] }
 0x231   :  { %v1935_v4 = vpop.f32.mrf.mxu0  ;;  %v8131_v5 = vcombine.high %v2192_v21, %v2196_v3  ;;  %v2244_v8 = vld [vmem:[#allocation11 + $0x568] sm:$0xff] }
 0x232   :  { %v1936_v25 = vadd.f32 %v1935_v4, %v1246_v20  ;;  %v8010_v4 = vcombine.low %v2072_v60, %v2076_v61  ;;  %v2252_v60 = vld [vmem:[#allocation11 + $0x5a8] sm:$0xff]  ;;  %v2121_v61 = vld [vmem:[#allocation11 + $0x190] sm:$0xff] }
 0x233   :  { %v1937_v10 = vpop.f32.mrf.mxu0 }
 0x234   :  { %v8130_v10 = vcombine.low %v2192_v21, %v2196_v3 }
 0x235   :  { %v1938_v16 = vpop.f32.mrf.mxu0 }
 0x236   :  { %v2176_v16 = vld [vmem:[#allocation11 + $0x348] sm:$0xff] }
 0x237   :  { %v8115_v20 = vcombine.high %v2176_v16, %v2180_v6 }
 0x26f   :  { %v9523_v23 = vpop.f32.mrf.mxu0  ;;  %v1974_v24 = vpop.f32.mrf.mxu1 }
 0x270   :  { %v1975_v26 = vadd.f32 %v1974_v24, %v1934_v22  ;;  %v2168_v22 = vld [vmem:[#allocation11 + $0x308] sm:$0xff] }
 0x271   :  { %v9525_v27 = vpop.f32.mrf.mxu0  ;;  %v1976_v28 = vpop.f32.mrf.mxu1  ;;  %v2172_v24 = vld [vmem:[#allocation11 + $0x328] sm:$0xff] }
 0x272   :  { %v1977_v29 = vadd.f32 %v1976_v28, %v1936_v25  ;;  %v2063_v30 = vmax.f32 %v1975_v26, 0.0  ;;  %v8114_v25 = vcombine.low %v2176_v16, %v2180_v6  ;;  %v8107_v26 = vcombine.high %v2168_v22, %v2172_v24  ;;  %v2160_v28 = vld [vmem:[#allocation11 + $0x2c8] sm:$0xff] }
 0x273   :  { %v2019_v32 = vpop.f32.mrf.mxu0  ;;  %v1978_v33 = vpop.f32.mrf.mxu1 }
 0x274   :  { %v2064_v34 = vmax.f32 %v1977_v29, 0.0  ;;  %v9529_v39 = vpack.c.bf16 %v2063_v30, %v2063_v30  ;;  %v2164_v29 = vld [vmem:[#allocation11 + $0x2e8] sm:$0xff]  ;;  %v8106_v30 = vcombine.low %v2168_v22, %v2172_v24  ;;  %v2105_v24 = vld [vmem:[#allocation11 + $0x110] sm:$0xff] }
 0x275   :  { %v2020_v36 = vpop.f32.mrf.mxu0  ;;  %v1979_v37 = vpop.f32.mrf.mxu1  ;;  %v8099_v32 = vcombine.high %v2160_v28, %v2164_v29  ;;  %v2152_v33 = vld [vmem:[#allocation11 + $0x288] sm:$0xff]  ;;  %v8098_v35 = vcombine.low %v2160_v28, %v2164_v29 }
 0x276   :  { %v9527_v38 = vpack.c.bf16 %v2064_v34, %v2064_v34  ;;  %v2156_v34 = vld [vmem:[#allocation11 + $0x2a8] sm:$0xff] }
 0x277   :  { %v8091_v31 = vcombine.high %v2152_v33, %v2156_v34  ;;  %v2144_v36 = vld [vmem:[#allocation11 + $0x248] sm:$0xff]  ;;  %v8090_v41 = vcombine.low %v2152_v33, %v2156_v34 }
 0x278   :  { %3681 = vmatprep.mubr.bf16.mxu0 %v9527_v38  ;;  %v2148_v37 = vld [vmem:[#allocation11 + $0x268] sm:$0xff] }
 0x279   :  { %3682 = vmatmul.mubr.bf16.vlgmr.msra.gmra.mxu0 %v9529_v39  ;;  %v8083_v42 = vcombine.high %v2144_v36, %v2148_v37  ;;  %v2236_v22 = vld [vmem:[#allocation11 + $0x528] sm:$0xff] }
 0x27a   :  { %3732 = vmatpush1.bf16.msra.mxu0 %v8066_v2  ;;  %3763 = vmatprep.mubr.bf16.mxu0 %v9527_v38  ;;  %v8027_v2 = vcombine.high %v2088_v53, %v2092_v0  ;;  %v2133_v53 = vld [vmem:[#allocation11 + $0x1f0] sm:$0xff]  ;;  %v2224_v28 = vld [vmem:[#allocation11 + $0x4c8] sm:$0xff] }
 0x27b   :  { %3733 = vmatprep.subr.bf16.mxu0 %v8059_v40  ;;  %v1250_v40 = vrot.slane %v9517_v13, %v9487_v56  ;;  %v2228_v29 = vld [vmem:[#allocation11 + $0x4e8] sm:$0xff] }
 0x27d   :  { %v2016_v46 = vadd.f32 %v9523_v23, %v1250_v40  ;;  %v2248_v23 = vld [vmem:[#allocation11 + $0x588] sm:$0xff]  ;;  %v2089_v40 = vld [vmem:[#allocation11 + $0x90] sm:$0xff] }
 0x27e   :  { %3734 = vmatpush1.bf16.msra.mxu0 %v8058_v43  ;;  %v1254_v43 = vrot.slane %v9517_v13, %v9490_v58  ;;  %v8187_v3 = vcombine.high %v2248_v23, %v2252_v60 }
 0x27f   :  { %3735 = vmatprep.subr.bf16.mxu0 %v8051_v44  ;;  %v2136_v44 = vld [vmem:[#allocation11 + $0x208] sm:$0xff] }
 0x280   :  { %v8075_v49 = vcombine.high %v2136_v44, %v2140_v45  ;;  %v2018_v50 = vadd.f32 %v9525_v27, %v1254_v43 }
 0x282   :  { %3736 = vmatpush1.bf16.msra.mxu0 %v8050_v47  ;;  %v8082_v47 = vcombine.low %v2144_v36, %v2148_v37  ;;  %v2216_v36 = vld [vmem:[#allocation11 + $0x488] sm:$0xff] }
 0x283   :  { %3737 = vmatprep.subr.bf16.mxu0 %v8043_v48  ;;  %v2220_v37 = vld [vmem:[#allocation11 + $0x4a8] sm:$0xff] }
 0x286   :  { %3738 = vmatpush1.bf16.msra.mxu0 %v8042_v51 }
 0x287   :  { %3739 = vmatprep.subr.bf16.mxu0 %v8035_v52  ;;  %v2129_v52 = vld [vmem:[#allocation11 + $0x1d0] sm:$0xff] }
 0x288   :  { %v8069_v55 = vcombine.high %v2129_v52, %v2133_v53  ;;  %v8068_v21 = vcombine.low %v2129_v52, %v2133_v53 }
 0x28a   :  { %3740 = vmatpush1.bf16.msra.mxu0 %v8034_v1 }
 0x28b   :  { %3741 = vmatprep.subr.bf16.mxu0 %v8027_v2  ;;  %v8074_v2 = vcombine.low %v2136_v44, %v2140_v45  ;;  %v8155_v44 = vcombine.high %v2216_v36, %v2220_v37 }
 0x28e   :  { %3742 = vmatpush1.bf16.msra.mxu0 %v8026_v57 }
 0x28f   :  { %3743 = vmatprep.subr.bf16.mxu0 %v8019_v59 }
 0x292   :  { %3744 = vmatpush1.bf16.msra.mxu0 %v8018_v62  ;;  %v2125_v62 = vld [vmem:[#allocation11 + $0x1b0] sm:$0xff] }
 0x293   :  { %3745 = vmatprep.subr.bf16.mxu0 %v8011_v63  ;;  %v8060_v16 = vcombine.low %v2121_v61, %v2125_v62 }
 0x296   :  { %3746 = vmatpush1.bf16.msra.mxu0 %v8010_v4  ;;  %v8061_v4 = vcombine.high %v2121_v61, %v2125_v62  ;;  %v2193_v61 = vld [vmem:[#allocation11 + $0x3d0] sm:$0xff] }
 0x297   :  { %3747 = vmatprep.subr.bf16.mxu0 %v8131_v5  ;;  %v2240_v5 = vld [vmem:[#allocation11 + $0x548] sm:$0xff]  ;;  %v2197_v62 = vld [vmem:[#allocation11 + $0x3f0] sm:$0xff] }
 0x298   :  { %v8179_v6 = vcombine.high %v2240_v5, %v2244_v8 }
 0x29a   :  { %3748 = vmatpush2.bf16.msra.mxu0 %v8130_v10  ;;  %v2117_v10 = vld [vmem:[#allocation11 + $0x170] sm:$0xff] }
 0x29b   :  { %3749 = vmatprep.subr.bf16.mxu0 %v8123_v15  ;;  %v8186_v15 = vcombine.low %v2248_v23, %v2252_v60  ;;  %v8052_v17 = vcombine.low %v2113_v9, %v2117_v10  ;;  %v2324_v60 = vld [vmem:[#allocation11 + $0x7e8] sm:$0xff] }
 0x29e   :  { %3750 = vmatpush2.bf16.msra.mxu0 %v8122_v7  ;;  %v8053_v7 = vcombine.high %v2113_v9, %v2117_v10  ;;  %v2316_v9 = vld [vmem:[#allocation11 + $0x7a8] sm:$0xff]  ;;  %v2185_v10 = vld [vmem:[#allocation11 + $0x390] sm:$0xff] }
 0x29f   :  { %3751 = vmatprep.subr.bf16.mxu0 %v8115_v20  ;;  %v2232_v20 = vld [vmem:[#allocation11 + $0x508] sm:$0xff] }
 0x2a0   :  { %v8171_v18 = vcombine.high %v2232_v20, %v2236_v22  ;;  %v8170_v33 = vcombine.low %v2232_v20, %v2236_v22  ;;  %v2304_v22 = vld [vmem:[#allocation11 + $0x748] sm:$0xff] }
 0x2a2   :  { %3752 = vmatpush2.bf16.msra.mxu0 %v8114_v25  ;;  %v2109_v25 = vld [vmem:[#allocation11 + $0x130] sm:$0xff] }
 0x2a3   :  { %3753 = vmatprep.subr.bf16.mxu0 %v8107_v26  ;;  %v8178_v26 = vcombine.low %v2240_v5, %v2244_v8  ;;  %v8044_v34 = vcombine.low %v2105_v24, %v2109_v25  ;;  %v8133_v5 = vcombine.high %v2193_v61, %v2197_v62  ;;  %v2312_v8 = vld [vmem:[#allocation11 + $0x788] sm:$0xff] }
 0x2a6   :  { %3754 = vmatpush2.bf16.msra.mxu0 %v8106_v30  ;;  %v2097_v30 = vld [vmem:[#allocation11 + $0xd0] sm:$0xff] }
 0x2a7   :  { %3755 = vmatprep.subr.bf16.mxu0 %v8099_v32  ;;  %v2101_v32 = vld [vmem:[#allocation11 + $0xf0] sm:$0xff] }
 0x2a8   :  { %v8036_v43 = vcombine.low %v2097_v30, %v2101_v32 }
 0x2aa   :  { %3756 = vmatpush2.bf16.msra.mxu0 %v8098_v35  ;;  %v8163_v35 = vcombine.high %v2224_v28, %v2228_v29 }
 0x2ab   :  { %3757 = vmatprep.subr.bf16.mxu0 %v8091_v31  ;;  %v8037_v31 = vcombine.high %v2097_v30, %v2101_v32  ;;  %v2300_v30 = vld [vmem:[#allocation11 + $0x728] sm:$0xff]  ;;  %v2169_v32 = vld [vmem:[#allocation11 + $0x310] sm:$0xff] }
 0x2ae   :  { %3758 = vmatpush2.bf16.msra.mxu0 %v8090_v41  ;;  %v2093_v41 = vld [vmem:[#allocation11 + $0xb0] sm:$0xff] }
 0x2af   :  { %v2056_v48 = vpop.f32.mrf.mxu1  ;;  %3759 = vmatprep.subr.bf16.mxu0 %v8083_v42  ;;  %v8162_v42 = vcombine.low %v2224_v28, %v2228_v29  ;;  %v8029_v45 = vcombine.high %v2089_v40, %v2093_v41  ;;  %v2296_v29 = vld [vmem:[#allocation11 + $0x708] sm:$0xff] }
 0x2b0   :  { %v2057_v51 = vadd.f32 %v2056_v48, %v2016_v46  ;;  %v2208_v46 = vld [vmem:[#allocation11 + $0x448] sm:$0xff]  ;;  %v2081_v48 = vld [vmem:[#allocation11 + $0x50] sm:$0xff] }
 0x2b1   :  { %v2058_v0 = vpop.f32.mrf.mxu1 }
 0x2b2   :  { %v2059_v1 = vadd.f32 %v2058_v0, %v2018_v50  ;;  %3760 = vmatpush2.bf16.msra.mxu0 %v8082_v47  ;;  %v2065_v54 = vmax.f32 %v2057_v51, 0.0  ;;  %v2212_v47 = vld [vmem:[#allocation11 + $0x468] sm:$0xff]  ;;  %v8154_v50 = vcombine.low %v2216_v36, %v2220_v37  ;;  %v8028_v51 = vcombine.low %v2089_v40, %v2093_v41  ;;  %v2161_v41 = vld [vmem:[#allocation11 + $0x2d0] sm:$0xff] }
 0x2b3   :  { %v2060_v13 = vpop.f32.mrf.mxu1  ;;  %3761 = vmatprep.subr.bf16.mxu0 %v8075_v49  ;;  %v2085_v49 = vld [vmem:[#allocation11 + $0x70] sm:$0xff]  ;;  %v8147_v52 = vcombine.high %v2208_v46, %v2212_v47  ;;  %v2200_v0 = vld [vmem:[#allocation11 + $0x408] sm:$0xff] }
 0x2b4   :  { %v2066_v57 = vmax.f32 %v2059_v1, 0.0  ;;  %v9545_v27 = vpack.c.bf16 %v2065_v54, %v2065_v54  ;;  %v8021_v53 = vcombine.high %v2081_v48, %v2085_v49  ;;  %v2204_v1 = vld [vmem:[#allocation11 + $0x428] sm:$0xff]  ;;  %v2077_v54 = vld [vmem:[#allocation11 + $0x30] sm:$0xff]  ;;  %v8146_v13 = vcombine.low %v2208_v46, %v2212_v47 }
 0x2b5   :  { %v2061_v59 = vpop.f32.mrf.mxu1  ;;  %v2288_v37 = vld [vmem:[#allocation11 + $0x6c8] sm:$0xff] }
 0x2b6   :  { %v9543_v63 = vpack.c.bf16 %v2066_v57, %v2066_v57  ;;  %3762 = vmatpush2.bf16.msra.mxu0 %v8074_v2  ;;  %v2073_v2 = vld [vmem:[#allocation11 + $0x10] sm:$0xff]  ;;  %v8139_v57 = vcombine.high %v2200_v0, %v2204_v1  ;;  %v2320_v59 = vld [vmem:[#allocation11 + $0x7c8] sm:$0xff] }
 0x2b7   :  { %3813 = vmatprep.subr.bf16.mxu0 %v8069_v55  ;;  %v8020_v55 = vcombine.low %v2081_v48, %v2085_v49  ;;  %v8013_v23 = vcombine.high %v2073_v2, %v2077_v54  ;;  %v2292_v40 = vld [vmem:[#allocation11 + $0x6e8] sm:$0xff]  ;;  %v2153_v49 = vld [vmem:[#allocation11 + $0x290] sm:$0xff] }
 0x2b8   :  { %3722 = vmatprep.mubr.bf16.mxu1 %v9543_v63  ;;  %v2280_v47 = vld [vmem:[#allocation11 + $0x688] sm:$0xff] }
 0x2b9   :  { %3723 = vmatmul.mubr.bf16.vlgmr.msra.gmra.mxu1 %v9545_v27  ;;  %3764 = vmatmul.mubr.bf16.vlgmr.msra.gmra.mxu0 %v9529_v39  ;;  %v2284_v48 = vld [vmem:[#allocation11 + $0x6a8] sm:$0xff] }
 0x2ba   :  { %3773 = vmatpush1.bf16.msra.mxu1 %v8194_v19  ;;  %3804 = vmatprep.mubr.bf16.mxu1 %v9543_v63  ;;  %v8045_v19 = vcombine.high %v2105_v24, %v2109_v25  ;;  %v2308_v24 = vld [vmem:[#allocation11 + $0x768] sm:$0xff]  ;;  %v2177_v25 = vld [vmem:[#allocation11 + $0x350] sm:$0xff] }
 0x2bb   :  { %3814 = vmatpush1.bf16.msra.mxu0 %v8068_v21  ;;  %3845 = vmatprep.mubr.bf16.mxu0 %v9527_v38  ;;  %v8138_v21 = vcombine.low %v2200_v0, %v2204_v1  ;;  %v2272_v1 = vld [vmem:[#allocation11 + $0x648] sm:$0xff] }
 0x2bc   :  { %3774 = vmatprep.subr.bf16.mxu1 %v8187_v3  ;;  %3815 = vmatprep.subr.bf16.mxu0 %v8061_v4  ;;  %v8012_v3 = vcombine.low %v2073_v2, %v2077_v54  ;;  %v8259_v4 = vcombine.high %v2320_v59, %v2324_v60  ;;  %v2276_v2 = vld [vmem:[#allocation11 + $0x668] sm:$0xff]  ;;  %v2145_v54 = vld [vmem:[#allocation11 + $0x250] sm:$0xff] }
 0x2be   :  { %3775 = vmatpush1.bf16.msra.mxu1 %v8186_v15  ;;  %v2189_v15 = vld [vmem:[#allocation11 + $0x3b0] sm:$0xff] }
 0x2bf   :  { %3816 = vmatpush1.bf16.msra.mxu0 %v8060_v16  ;;  %3776 = vmatprep.subr.bf16.mxu1 %v8179_v6  ;;  %v8258_v16 = vcombine.low %v2320_v59, %v2324_v60  ;;  %v8132_v6 = vcombine.low %v2193_v61, %v2197_v62  ;;  %v8125_v20 = vcombine.high %v2185_v10, %v2189_v15  ;;  %v2264_v60 = vld [vmem:[#allocation11 + $0x608] sm:$0xff]  ;;  %v2137_v62 = vld [vmem:[#allocation11 + $0x210] sm:$0xff] }
 0x2c0   :  { %3817 = vmatprep.subr.bf16.mxu0 %v8053_v7  ;;  %v8251_v7 = vcombine.high %v2312_v8, %v2316_v9  ;;  %v2268_v61 = vld [vmem:[#allocation11 + $0x628] sm:$0xff] }
 0x2c2   :  { %3777 = vmatpush1.bf16.msra.mxu1 %v8178_v26  ;;  %v2181_v26 = vld [vmem:[#allocation11 + $0x370] sm:$0xff] }
 0x2c3   :  { %3818 = vmatpush1.bf16.msra.mxu0 %v8052_v17  ;;  %3778 = vmatprep.subr.bf16.mxu1 %v8171_v18  ;;  %v8250_v17 = vcombine.low %v2312_v8, %v2316_v9  ;;  %v8124_v18 = vcombine.low %v2185_v10, %v2189_v15  ;;  %v8117_v28 = vcombine.high %v2177_v25, %v2181_v26  ;;  %v2257_v9 = vld [vmem:[#allocation11 + $0x5d0] sm:$0xff]  ;;  %v2130_v15 = vld [vmem:[#allocation11 + $0x1d8] sm:$0xff] }
 0x2c4   :  { %3819 = vmatprep.subr.bf16.mxu0 %v8045_v19  ;;  %v8243_v19 = vcombine.high %v2304_v22, %v2308_v24  ;;  %v2261_v10 = vld [vmem:[#allocation11 + $0x5f0] sm:$0xff] }
 0x2c6   :  { %3779 = vmatpush1.bf16.msra.mxu1 %v8170_v33  ;;  %v2173_v33 = vld [vmem:[#allocation11 + $0x330] sm:$0xff] }
 0x2c7   :  { %3820 = vmatpush1.bf16.msra.mxu0 %v8044_v34  ;;  %3780 = vmatprep.subr.bf16.mxu1 %v8163_v35  ;;  %v8242_v34 = vcombine.low %v2304_v22, %v2308_v24  ;;  %v8116_v35 = vcombine.low %v2177_v25, %v2181_v26  ;;  %v8109_v36 = vcombine.high %v2169_v32, %v2173_v33  ;;  %v2249_v24 = vld [vmem:[#allocation11 + $0x590] sm:$0xff] }
 0x2c8   :  { %3821 = vmatprep.subr.bf16.mxu0 %v8037_v31  ;;  %v8235_v31 = vcombine.high %v2296_v29, %v2300_v30  ;;  %v2253_v25 = vld [vmem:[#allocation11 + $0x5b0] sm:$0xff]  ;;  %v8196_v26 = vcombine.low %v2257_v9, %v2261_v10 }
 0x2ca   :  { %3781 = vmatpush1.bf16.msra.mxu1 %v8162_v42  ;;  %v2165_v42 = vld [vmem:[#allocation11 + $0x2f0] sm:$0xff] }
 0x2cb   :  { %3822 = vmatpush1.bf16.msra.mxu0 %v8036_v43  ;;  %3782 = vmatprep.subr.bf16.mxu1 %v8155_v44  ;;  %v8234_v43 = vcombine.low %v2296_v29, %v2300_v30  ;;  %v8108_v44 = vcombine.low %v2169_v32, %v2173_v33  ;;  %v8101_v46 = vcombine.high %v2161_v41, %v2165_v42  ;;  %v2241_v29 = vld [vmem:[#allocation11 + $0x550] sm:$0xff]  ;;  %v2114_v33 = vld [vmem:[#allocation11 + $0x158] sm:$0xff] }
 0x2cc   :  { %3823 = vmatprep.subr.bf16.mxu0 %v8029_v45  ;;  %v8227_v45 = vcombine.high %v2288_v37, %v2292_v40  ;;  %v2245_v30 = vld [vmem:[#allocation11 + $0x570] sm:$0xff] }
 0x2ce   :  { %3783 = vmatpush1.bf16.msra.mxu1 %v8154_v50  ;;  %v2157_v50 = vld [vmem:[#allocation11 + $0x2b0] sm:$0xff] }
 0x2cf   :  { %3824 = vmatpush1.bf16.msra.mxu0 %v8028_v51  ;;  %3784 = vmatprep.subr.bf16.mxu1 %v8147_v52  ;;  %v8226_v51 = vcombine.low %v2288_v37, %v2292_v40  ;;  %v8100_v52 = vcombine.low %v2161_v41, %v2165_v42  ;;  %v8093_v0 = vcombine.high %v2153_v49, %v2157_v50  ;;  %v2233_v40 = vld [vmem:[#allocation11 + $0x510] sm:$0xff]  ;;  %v2106_v42 = vld [vmem:[#allocation11 + $0x118] sm:$0xff] }
 0x2d0   :  { %3825 = vmatprep.subr.bf16.mxu0 %v8021_v53  ;;  %v8219_v53 = vcombine.high %v2280_v47, %v2284_v48  ;;  %v2237_v41 = vld [vmem:[#allocation11 + $0x530] sm:$0xff] }
 0x2d2   :  { %3785 = vmatpush1.bf16.msra.mxu1 %v8146_v13  ;;  %v2149_v13 = vld [vmem:[#allocation11 + $0x270] sm:$0xff] }
 0x2d3   :  { %3826 = vmatpush1.bf16.msra.mxu0 %v8020_v55  ;;  %3786 = vmatprep.subr.bf16.mxu1 %v8139_v57  ;;  %v8218_v55 = vcombine.low %v2280_v47, %v2284_v48  ;;  %v8092_v57 = vcombine.low %v2153_v49, %v2157_v50  ;;  %v8085_v59 = vcombine.high %v2145_v54, %v2149_v13  ;;  %v2225_v48 = vld [vmem:[#allocation11 + $0x4d0] sm:$0xff]  ;;  %v2098_v50 = vld [vmem:[#allocation11 + $0xd8] sm:$0xff] }
 0x2d4   :  { %3827 = vmatprep.subr.bf16.mxu0 %v8013_v23  ;;  %v8211_v23 = vcombine.high %v2272_v1, %v2276_v2  ;;  %v2229_v49 = vld [vmem:[#allocation11 + $0x4f0] sm:$0xff] }
 0x2d6   :  { %3787 = vmatpush1.bf16.msra.mxu1 %v8138_v21  ;;  %v2141_v21 = vld [vmem:[#allocation11 + $0x230] sm:$0xff] }
 0x2d7   :  { %3828 = vmatpush1.bf16.msra.mxu0 %v8012_v3  ;;  %3788 = vmatprep.subr.bf16.mxu1 %v8259_v4  ;;  %v8210_v3 = vcombine.low %v2272_v1, %v2276_v2  ;;  %v8084_v4 = vcombine.low %v2145_v54, %v2149_v13  ;;  %v8077_v8 = vcombine.high %v2137_v62, %v2141_v21  ;;  %v2217_v1 = vld [vmem:[#allocation11 + $0x490] sm:$0xff]  ;;  %v2090_v54 = vld [vmem:[#allocation11 + $0x98] sm:$0xff] }
 0x2d8   :  { %3829 = vmatprep.subr.bf16.mxu0 %v8133_v5  ;;  %v8203_v5 = vcombine.high %v2264_v60, %v2268_v61  ;;  %v2221_v2 = vld [vmem:[#allocation11 + $0x4b0] sm:$0xff]  ;;  %v2094_v13 = vld [vmem:[#allocation11 + $0xb8] sm:$0xff] }
 0x2da   :  { %3789 = vmatpush2.bf16.msra.mxu1 %v8258_v16  ;;  %v2134_v16 = vld [vmem:[#allocation11 + $0x1f8] sm:$0xff] }
 0x2db   :  { %3830 = vmatpush2.bf16.msra.mxu0 %v8132_v6  ;;  %3790 = vmatprep.subr.bf16.mxu1 %v8251_v7  ;;  %v8202_v6 = vcombine.low %v2264_v60, %v2268_v61  ;;  %v8076_v7 = vcombine.low %v2137_v62, %v2141_v21  ;;  %v8071_v22 = vcombine.high %v2130_v15, %v2134_v16  ;;  %v2209_v60 = vld [vmem:[#allocation11 + $0x450] sm:$0xff]  ;;  %v2082_v62 = vld [vmem:[#allocation11 + $0x58] sm:$0xff] }
 0x2dc   :  { %3831 = vmatprep.subr.bf16.mxu0 %v8125_v20  ;;  %v8197_v20 = vcombine.high %v2257_v9, %v2261_v10  ;;  %v2213_v61 = vld [vmem:[#allocation11 + $0x470] sm:$0xff]  ;;  %v2086_v21 = vld [vmem:[#allocation11 + $0x78] sm:$0xff] }
 0x2dd   :  { %v2201_v9 = vld [vmem:[#allocation11 + $0x410] sm:$0xff] }
 0x2de   :  { %3791 = vmatpush2.bf16.msra.mxu1 %v8250_v17  ;;  %v2122_v17 = vld [vmem:[#allocation11 + $0x198] sm:$0xff]  ;;  %v2205_v10 = vld [vmem:[#allocation11 + $0x430] sm:$0xff] }
 0x2df   :  { %3832 = vmatpush2.bf16.msra.mxu0 %v8124_v18  ;;  %3792 = vmatprep.subr.bf16.mxu1 %v8243_v19  ;;  %v2126_v18 = vld [vmem:[#allocation11 + $0x1b8] sm:$0xff]  ;;  %v8070_v19 = vcombine.low %v2130_v15, %v2134_v16 }
 0x2e0   :  { %3833 = vmatprep.subr.bf16.mxu0 %v8117_v28  ;;  %v8189_v28 = vcombine.high %v2249_v24, %v2253_v25  ;;  %v8063_v32 = vcombine.high %v2122_v17, %v2126_v18  ;;  %v2074_v15 = vld [vmem:[#allocation11 + $0x18] sm:$0xff] }
 0x2e1   :  { %v2078_v16 = vld [vmem:[#allocation11 + $0x38] sm:$0xff] }
 0x2e2   :  { %3793 = vmatpush2.bf16.msra.mxu1 %v8242_v34  ;;  %v2118_v34 = vld [vmem:[#allocation11 + $0x178] sm:$0xff] }
 0x2e3   :  { %3834 = vmatpush2.bf16.msra.mxu0 %v8116_v35  ;;  %3794 = vmatprep.subr.bf16.mxu1 %v8235_v31  ;;  %v8188_v35 = vcombine.low %v2249_v24, %v2253_v25  ;;  %v8062_v31 = vcombine.low %v2122_v17, %v2126_v18  ;;  %v8055_v37 = vcombine.high %v2114_v33, %v2118_v34  ;;  %v2321_v24 = vld [vmem:[#allocation11 + $0x7d0] sm:$0xff]  ;;  %v2198_v17 = vld [vmem:[#allocation11 + $0x3f8] sm:$0xff] }
 0x2e4   :  { %3835 = vmatprep.subr.bf16.mxu0 %v8109_v36  ;;  %v8181_v36 = vcombine.high %v2241_v29, %v2245_v30  ;;  %v2325_v25 = vld [vmem:[#allocation11 + $0x7f0] sm:$0xff]  ;;  %v8140_v18 = vcombine.low %v2201_v9, %v2205_v10 }
 0x2e6   :  { %3795 = vmatpush2.bf16.msra.mxu1 %v8234_v43  ;;  %v2110_v43 = vld [vmem:[#allocation11 + $0x138] sm:$0xff] }
 0x2e7   :  { %3836 = vmatpush2.bf16.msra.mxu0 %v8108_v44  ;;  %3796 = vmatprep.subr.bf16.mxu1 %v8227_v45  ;;  %v8180_v44 = vcombine.low %v2241_v29, %v2245_v30  ;;  %v8054_v45 = vcombine.low %v2114_v33, %v2118_v34  ;;  %v8047_v47 = vcombine.high %v2106_v42, %v2110_v43  ;;  %v2313_v30 = vld [vmem:[#allocation11 + $0x790] sm:$0xff]  ;;  %v2186_v33 = vld [vmem:[#allocation11 + $0x398] sm:$0xff] }
 0x2e8   :  { %3837 = vmatprep.subr.bf16.mxu0 %v8101_v46  ;;  %v8173_v46 = vcombine.high %v2233_v40, %v2237_v41  ;;  %v2190_v34 = vld [vmem:[#allocation11 + $0x3b8] sm:$0xff] }
 0x2ea   :  { %3797 = vmatpush2.bf16.msra.mxu1 %v8226_v51  ;;  %v2102_v51 = vld [vmem:[#allocation11 + $0xf8] sm:$0xff] }
 0x2eb   :  { %3838 = vmatpush2.bf16.msra.mxu0 %v8100_v52  ;;  %3798 = vmatprep.subr.bf16.mxu1 %v8219_v53  ;;  %v8046_v52 = vcombine.low %v2106_v42, %v2110_v43  ;;  %v8165_v53 = vcombine.high %v2225_v48, %v2229_v49  ;;  %v2178_v42 = vld [vmem:[#allocation11 + $0x358] sm:$0xff] }
 0x2ec   :  { %3839 = vmatprep.subr.bf16.mxu0 %v8093_v0  ;;  %v8039_v0 = vcombine.high %v2098_v50, %v2102_v51  ;;  %v2182_v43 = vld [vmem:[#allocation11 + $0x378] sm:$0xff] }
 0x2ee   :  { %3799 = vmatpush2.bf16.msra.mxu1 %v8218_v55  ;;  %v8164_v55 = vcombine.low %v2225_v48, %v2229_v49  ;;  %v2297_v48 = vld [vmem:[#allocation11 + $0x710] sm:$0xff] }
 0x2ef   :  { %3840 = vmatpush2.bf16.msra.mxu0 %v8092_v57  ;;  %3800 = vmatprep.subr.bf16.mxu1 %v8211_v23  ;;  %v8038_v57 = vcombine.low %v2098_v50, %v2102_v51  ;;  %v8157_v23 = vcombine.high %v2217_v1, %v2221_v2  ;;  %v2301_v49 = vld [vmem:[#allocation11 + $0x730] sm:$0xff]  ;;  %v2170_v50 = vld [vmem:[#allocation11 + $0x318] sm:$0xff] }
 0x2f0   :  { %3841 = vmatprep.subr.bf16.mxu0 %v8085_v59  ;;  %v8031_v59 = vcombine.high %v2090_v54, %v2094_v13  ;;  %v2174_v51 = vld [vmem:[#allocation11 + $0x338] sm:$0xff] }
 0x2f2   :  { %3801 = vmatpush2.bf16.msra.mxu1 %v8210_v3  ;;  %v8156_v3 = vcombine.low %v2217_v1, %v2221_v2  ;;  %v2289_v1 = vld [vmem:[#allocation11 + $0x6d0] sm:$0xff] }
 0x2f3   :  { %3842 = vmatpush2.bf16.msra.mxu0 %v8084_v4  ;;  %3802 = vmatprep.subr.bf16.mxu1 %v8203_v5  ;;  %v8030_v4 = vcombine.low %v2090_v54, %v2094_v13  ;;  %v8149_v5 = vcombine.high %v2209_v60, %v2213_v61  ;;  %v2293_v2 = vld [vmem:[#allocation11 + $0x6f0] sm:$0xff]  ;;  %v2162_v54 = vld [vmem:[#allocation11 + $0x2d8] sm:$0xff] }
 0x2f4   :  { %3843 = vmatprep.subr.bf16.mxu0 %v8077_v8  ;;  %v8023_v8 = vcombine.high %v2082_v62, %v2086_v21  ;;  %v2166_v13 = vld [vmem:[#allocation11 + $0x2f8] sm:$0xff] }
 0x2f6   :  { %3803 = vmatpush2.bf16.msra.mxu1 %v8202_v6  ;;  %v8148_v6 = vcombine.low %v2209_v60, %v2213_v61  ;;  %v2281_v60 = vld [vmem:[#allocation11 + $0x690] sm:$0xff] }
 0x2f7   :  { %3844 = vmatpush2.bf16.msra.mxu0 %v8076_v7  ;;  %3854 = vmatprep.subr.bf16.mxu1 %v8197_v20  ;;  %v8022_v7 = vcombine.low %v2082_v62, %v2086_v21  ;;  %v8141_v20 = vcombine.high %v2201_v9, %v2205_v10  ;;  %v2285_v61 = vld [vmem:[#allocation11 + $0x6b0] sm:$0xff]  ;;  %v2154_v62 = vld [vmem:[#allocation11 + $0x298] sm:$0xff] }
 0x2f8   :  { %3895 = vmatprep.subr.bf16.mxu0 %v8071_v22  ;;  %v8015_v22 = vcombine.high %v2074_v15, %v2078_v16  ;;  %v2158_v21 = vld [vmem:[#allocation11 + $0x2b8] sm:$0xff]  ;;  %v2273_v9 = vld [vmem:[#allocation11 + $0x650] sm:$0xff] }
 0x2f9   :  { %3805 = vmatmul.mubr.bf16.vlgmr.msra.gmra.mxu1 %v9545_v27  ;;  %v2277_v10 = vld [vmem:[#allocation11 + $0x670] sm:$0xff] }
 0x2fa   :  { %3846 = vmatmul.mubr.bf16.vlgmr.msra.gmra.mxu0 %v9529_v39  ;;  %3855 = vmatpush1.bf16.msra.mxu1 %v8196_v26  ;;  %v2194_v26 = vld [vmem:[#allocation11 + $0x3d8] sm:$0xff] }
 0x2fb   :  { %3886 = vmatprep.mubr.bf16.mxu1 %v9543_v63  ;;  %3896 = vmatpush1.bf16.msra.mxu0 %v8070_v19  ;;  %v8014_v19 = vcombine.low %v2074_v15, %v2078_v16  ;;  %v8135_v29 = vcombine.high %v2194_v26, %v2198_v17  ;;  %v2146_v15 = vld [vmem:[#allocation11 + $0x258] sm:$0xff] }
 0x2fc   :  { %3927 = vmatprep.mubr.bf16.mxu0 %v9527_v38  ;;  %3856 = vmatprep.subr.bf16.mxu1 %v8189_v28  ;;  %v8172_v38 = vcombine.low %v2233_v40, %v2237_v41  ;;  %v8261_v28 = vcombine.high %v2321_v24, %v2325_v25  ;;  %v2305_v40 = vld [vmem:[#allocation11 + $0x750] sm:$0xff]  ;;  %v2150_v16 = vld [vmem:[#allocation11 + $0x278] sm:$0xff] }
 0x2fd   :  { %3897 = vmatprep.subr.bf16.mxu0 %v8063_v32  ;;  %v2317_v32 = vld [vmem:[#allocation11 + $0x7b0] sm:$0xff] }
 0x2fe   :  { %3857 = vmatpush1.bf16.msra.mxu1 %v8188_v35  ;;  %v8260_v35 = vcombine.low %v2321_v24, %v2325_v25  ;;  %v2309_v41 = vld [vmem:[#allocation11 + $0x770] sm:$0xff] }
 0x2ff   :  { %3898 = vmatpush1.bf16.msra.mxu0 %v8062_v31  ;;  %3858 = vmatprep.subr.bf16.mxu1 %v8181_v36  ;;  %v8134_v31 = vcombine.low %v2194_v26, %v2198_v17  ;;  %v8253_v36 = vcombine.high %v2313_v30, %v2317_v32  ;;  %v2265_v24 = vld [vmem:[#allocation11 + $0x610] sm:$0xff]  ;;  %v2138_v26 = vld [vmem:[#allocation11 + $0x218] sm:$0xff] }
 0x300   :  { %3899 = vmatprep.subr.bf16.mxu0 %v8055_v37  ;;  %v8127_v37 = vcombine.high %v2186_v33, %v2190_v34  ;;  %v2269_v25 = vld [vmem:[#allocation11 + $0x630] sm:$0xff]  ;;  %v2142_v17 = vld [vmem:[#allocation11 + $0x238] sm:$0xff] }
 0x302   :  { %3859 = vmatpush1.bf16.msra.mxu1 %v8180_v44  ;;  %v8252_v44 = vcombine.low %v2313_v30, %v2317_v32  ;;  %v2258_v30 = vld [vmem:[#allocation11 + $0x5d8] sm:$0xff] }
 0x303   :  { %3900 = vmatpush1.bf16.msra.mxu0 %v8054_v45  ;;  %3860 = vmatprep.subr.bf16.mxu1 %v8173_v46  ;;  %v8126_v45 = vcombine.low %v2186_v33, %v2190_v34  ;;  %v8245_v46 = vcombine.high %v2305_v40, %v2309_v41  ;;  %v2262_v32 = vld [vmem:[#allocation11 + $0x5f8] sm:$0xff]  ;;  %v4049_v33 = vld [vmem:[#allocation14 + $0x1c0] sm:$0xff] }
 0x304   :  { %3901 = vmatprep.subr.bf16.mxu0 %v8047_v47  ;;  %v8119_v47 = vcombine.high %v2178_v42, %v2182_v43  ;;  %v4053_v34 = vld [vmem:[#allocation14 + $0x1e0] sm:$0xff] }
 0x306   :  { %3861 = vmatpush1.bf16.msra.mxu1 %v8172_v38  ;;  %v8244_v38 = vcombine.low %v2305_v40, %v2309_v41  ;;  %v2254_v40 = vld [vmem:[#allocation11 + $0x5b8] sm:$0xff]  ;;  %v8321_v41 = vcombine.high %v4049_v33, %v4053_v34 }
 0x307   :  { %3902 = vmatpush1.bf16.msra.mxu0 %v8046_v52  ;;  %3862 = vmatprep.subr.bf16.mxu1 %v8165_v53  ;;  %v8118_v52 = vcombine.low %v2178_v42, %v2182_v43  ;;  %v8237_v53 = vcombine.high %v2297_v48, %v2301_v49  ;;  %v8198_v42 = vcombine.low %v2258_v30, %v2262_v32  ;;  %v4041_v43 = vld [vmem:[#allocation14 + $0x180] sm:$0xff] }
 0x308   :  { %3903 = vmatprep.subr.bf16.mxu0 %v8039_v0  ;;  %v8111_v0 = vcombine.high %v2170_v50, %v2174_v51 }
 0x30a   :  { %3863 = vmatpush1.bf16.msra.mxu1 %v8164_v55  ;;  %v8236_v55 = vcombine.low %v2297_v48, %v2301_v49  ;;  %v8320_v48 = vcombine.low %v4049_v33, %v4053_v34 }
 0x30b   :  { %3904 = vmatpush1.bf16.msra.mxu0 %v8038_v57  ;;  %3864 = vmatprep.subr.bf16.mxu1 %v8157_v23  ;;  %v8110_v57 = vcombine.low %v2170_v50, %v2174_v51  ;;  %v8229_v23 = vcombine.high %v2289_v1, %v2293_v2 }
 0x30c   :  { %3905 = vmatprep.subr.bf16.mxu0 %v8031_v59  ;;  %v8103_v59 = vcombine.high %v2162_v54, %v2166_v13 }
 0x30e   :  { %3865 = vmatpush1.bf16.msra.mxu1 %v8156_v3  ;;  %v8228_v3 = vcombine.low %v2289_v1, %v2293_v2  ;;  %v2234_v1 = vld [vmem:[#allocation11 + $0x518] sm:$0xff] }
 0x30f   :  { %3906 = vmatpush1.bf16.msra.mxu0 %v8030_v4  ;;  %3866 = vmatprep.subr.bf16.mxu1 %v8149_v5  ;;  %v8102_v4 = vcombine.low %v2162_v54, %v2166_v13  ;;  %v8221_v5 = vcombine.high %v2281_v60, %v2285_v61  ;;  %v2238_v2 = vld [vmem:[#allocation11 + $0x538] sm:$0xff] }
 0x310   :  { %3907 = vmatprep.subr.bf16.mxu0 %v8023_v8  ;;  %v8095_v8 = vcombine.high %v2154_v62, %v2158_v21 }
 0x312   :  { %3867 = vmatpush1.bf16.msra.mxu1 %v8148_v6  ;;  %v8220_v6 = vcombine.low %v2281_v60, %v2285_v61  ;;  %v8175_v60 = vcombine.high %v2234_v1, %v2238_v2  ;;  %v2226_v61 = vld [vmem:[#allocation11 + $0x4d8] sm:$0xff] }
 0x313   :  { %3908 = vmatpush1.bf16.msra.mxu0 %v8022_v7  ;;  %3868 = vmatprep.subr.bf16.mxu1 %v8141_v20  ;;  %v8094_v7 = vcombine.low %v2154_v62, %v2158_v21  ;;  %v8213_v20 = vcombine.high %v2273_v9, %v2277_v10 }
 0x314   :  { %3909 = vmatprep.subr.bf16.mxu0 %v8015_v22  ;;  %v8087_v22 = vcombine.high %v2146_v15, %v2150_v16 }
 0x316   :  { %3869 = vmatpush1.bf16.msra.mxu1 %v8140_v18  ;;  %v8212_v18 = vcombine.low %v2273_v9, %v2277_v10  ;;  %v2218_v9 = vld [vmem:[#allocation11 + $0x498] sm:$0xff] }
 0x317   :  { %3910 = vmatpush1.bf16.msra.mxu0 %v8014_v19  ;;  %3870 = vmatprep.subr.bf16.mxu1 %v8261_v28  ;;  %v8086_v19 = vcombine.low %v2146_v15, %v2150_v16  ;;  %v8205_v28 = vcombine.high %v2265_v24, %v2269_v25  ;;  %v2222_v10 = vld [vmem:[#allocation11 + $0x4b8] sm:$0xff] }
 0x318   :  { %3911 = vmatprep.subr.bf16.mxu0 %v8135_v29  ;;  %v8079_v29 = vcombine.high %v2138_v26, %v2142_v17 }
 0x31a   :  { %3871 = vmatpush2.bf16.msra.mxu1 %v8260_v35  ;;  %v8204_v35 = vcombine.low %v2265_v24, %v2269_v25  ;;  %v2210_v24 = vld [vmem:[#allocation11 + $0x458] sm:$0xff] }
 0x31b   :  { %3912 = vmatpush2.bf16.msra.mxu0 %v8134_v31  ;;  %3872 = vmatprep.subr.bf16.mxu1 %v8253_v36  ;;  %v8078_v31 = vcombine.low %v2138_v26, %v2142_v17  ;;  %v8199_v36 = vcombine.high %v2258_v30, %v2262_v32  ;;  %v2214_v25 = vld [vmem:[#allocation11 + $0x478] sm:$0xff] }
 0x31c   :  { %3913 = vmatprep.subr.bf16.mxu0 %v8127_v37  ;;  %v2250_v37 = vld [vmem:[#allocation11 + $0x598] sm:$0xff] }
 0x31d   :  { %v8190_v51 = vcombine.low %v2250_v37, %v2254_v40  ;;  %v2202_v30 = vld [vmem:[#allocation11 + $0x418] sm:$0xff] }
 0x31e   :  { %3873 = vmatpush2.bf16.msra.mxu1 %v8252_v44  ;;  %v4045_v44 = vld [vmem:[#allocation14 + $0x1a0] sm:$0xff]  ;;  %v2206_v32 = vld [vmem:[#allocation11 + $0x438] sm:$0xff] }
 0x31f   :  { %3914 = vmatpush2.bf16.msra.mxu0 %v8126_v45  ;;  %3874 = vmatprep.subr.bf16.mxu1 %v8245_v46  ;;  %v8191_v45 = vcombine.high %v2250_v37, %v2254_v40  ;;  %v2242_v46 = vld [vmem:[#allocation11 + $0x558] sm:$0xff]  ;;  %v8313_v50 = vcombine.high %v4041_v43, %v4045_v44  ;;  %v8312_v54 = vcombine.low %v4041_v43, %v4045_v44 }
 0x320   :  { %3915 = vmatprep.subr.bf16.mxu0 %v8119_v47  ;;  %v2246_v47 = vld [vmem:[#allocation11 + $0x578] sm:$0xff]  ;;  %v8143_v37 = vcombine.high %v2202_v30, %v2206_v32  ;;  %v8142_v44 = vcombine.low %v2202_v30, %v2206_v32 }
 0x321   :  { %v2322_v40 = vld [vmem:[#allocation11 + $0x7d8] sm:$0xff] }
 0x322   :  { %3875 = vmatpush2.bf16.msra.mxu1 %v8244_v38  ;;  %v4033_v38 = vld [vmem:[#allocation14 + $0x140] sm:$0xff]  ;;  %v2274_v30 = vld [vmem:[#allocation11 + $0x658] sm:$0xff] }
 0x323   :  { %3916 = vmatpush2.bf16.msra.mxu0 %v8118_v52  ;;  %3876 = vmatprep.subr.bf16.mxu1 %v8237_v53  ;;  %v4037_v52 = vld [vmem:[#allocation14 + $0x160] sm:$0xff]  ;;  %v2278_v32 = vld [vmem:[#allocation11 + $0x678] sm:$0xff] }
 0x324   :  { %3917 = vmatprep.subr.bf16.mxu0 %v8111_v0  ;;  %v8183_v0 = vcombine.high %v2242_v46, %v2246_v47  ;;  %v8304_v62 = vcombine.low %v4033_v38, %v4037_v52 }
 0x326   :  { %3877 = vmatpush2.bf16.msra.mxu1 %v8236_v55  ;;  %v8305_v55 = vcombine.high %v4033_v38, %v4037_v52 }
 0x327   :  { %3918 = vmatpush2.bf16.msra.mxu0 %v8110_v57  ;;  %3878 = vmatprep.subr.bf16.mxu1 %v8229_v23  ;;  %v8182_v57 = vcombine.low %v2242_v46, %v2246_v47  ;;  %v4029_v23 = vld [vmem:[#allocation14 + $0x120] sm:$0xff] }
 0x328   :  { %3919 = vmatprep.subr.bf16.mxu0 %v8103_v59  ;;  %v4117_v46 = vld [vmem:[#allocation14 + $0x3e0] sm:$0xff] }
 0x32a   :  { %3879 = vmatpush2.bf16.msra.mxu1 %v8228_v3  ;;  %v8174_v3 = vcombine.low %v2234_v1, %v2238_v2  ;;  %v4109_v1 = vld [vmem:[#allocation14 + $0x3a0] sm:$0xff] }
 0x32b   :  { %3920 = vmatpush2.bf16.msra.mxu0 %v8102_v4  ;;  %3880 = vmatprep.subr.bf16.mxu1 %v8221_v5  ;;  %v4017_v4 = vld [vmem:[#allocation14 + $0xc0] sm:$0xff] }
 0x32c   :  { %3921 = vmatprep.subr.bf16.mxu0 %v8095_v8  ;;  %v4021_v5 = vld [vmem:[#allocation14 + $0xe0] sm:$0xff] }
 0x32d   :  { %v8289_v16 = vcombine.high %v4017_v4, %v4021_v5  ;;  %v8288_v26 = vcombine.low %v4017_v4, %v4021_v5  ;;  %v4089_v4 = vld [vmem:[#allocation14 + $0x300] sm:$0xff] }
 0x32e   :  { %3881 = vmatpush2.bf16.msra.mxu1 %v8220_v6  ;;  %v4093_v5 = vld [vmem:[#allocation14 + $0x320] sm:$0xff] }
 0x32f   :  { %3922 = vmatpush2.bf16.msra.mxu0 %v8094_v7  ;;  %3882 = vmatprep.subr.bf16.mxu1 %v8213_v20  ;;  %v4009_v7 = vld [vmem:[#allocation14 + $0x80] sm:$0xff] }
 0x330   :  { %3923 = vmatprep.subr.bf16.mxu0 %v8087_v22  ;;  %v4013_v20 = vld [vmem:[#allocation14 + $0xa0] sm:$0xff]  ;;  %v8159_v22 = vcombine.high %v2218_v9, %v2222_v10 }
 0x331   :  { %v8281_v17 = vcombine.high %v4009_v7, %v4013_v20  ;;  %v8280_v33 = vcombine.low %v4009_v7, %v4013_v20  ;;  %v4081_v7 = vld [vmem:[#allocation14 + $0x2c0] sm:$0xff] }
 0x332   :  { %3883 = vmatpush2.bf16.msra.mxu1 %v8212_v18  ;;  %v8158_v18 = vcombine.low %v2218_v9, %v2222_v10  ;;  %v2290_v9 = vld [vmem:[#allocation11 + $0x6d8] sm:$0xff]  ;;  %v4085_v20 = vld [vmem:[#allocation14 + $0x2e0] sm:$0xff] }
 0x333   :  { %3924 = vmatpush2.bf16.msra.mxu0 %v8086_v19  ;;  %3884 = vmatprep.subr.bf16.mxu1 %v8205_v28  ;;  %v4001_v19 = vld [vmem:[#allocation14 + $0x40] sm:$0xff]  ;;  %v2294_v10 = vld [vmem:[#allocation11 + $0x6f8] sm:$0xff] }
 0x334   :  { %3925 = vmatprep.subr.bf16.mxu0 %v8079_v29  ;;  %v4005_v28 = vld [vmem:[#allocation14 + $0x60] sm:$0xff]  ;;  %v8151_v29 = vcombine.high %v2210_v24, %v2214_v25 }
 0x335   :  { %v8273_v34 = vcombine.high %v4001_v19, %v4005_v28 }
 0x336   :  { %3885 = vmatpush2.bf16.msra.mxu1 %v8204_v35  ;;  %v8150_v35 = vcombine.low %v2210_v24, %v2214_v25  ;;  %v2282_v24 = vld [vmem:[#allocation11 + $0x698] sm:$0xff] }
 0x337   :  { %3926 = vmatpush2.bf16.msra.mxu0 %v8078_v31  ;;  %3936 = vmatprep.subr.bf16.mxu1 %v8199_v36  ;;  %v3993_v31 = vld [vmem:[#allocation14] sm:$0xff]  ;;  %v2286_v25 = vld [vmem:[#allocation11 + $0x6b8] sm:$0xff] }
 0x338   :  { %7065 = vmatprep.subr.bf16.mxu0 %v8321_v41  ;;  %v3997_v36 = vld [vmem:[#allocation14 + $0x20] sm:$0xff]  ;;  %v2326_v41 = vld [vmem:[#allocation11 + $0x7f8] sm:$0xff] }
 0x339   :  { %3887 = vmatmul.mubr.bf16.vlgmr.msra.gmra.mxu1 %v9545_v27  ;;  %v9560_v49 = vpop.f32.mrf.mxu0  ;;  %v8265_v43 = vcombine.high %v3993_v31, %v3997_v36  ;;  %v8263_v47 = vcombine.high %v2322_v40, %v2326_v41  ;;  %v8262_v52 = vcombine.low %v2322_v40, %v2326_v41  ;;  %v2266_v40 = vld [vmem:[#allocation11 + $0x618] sm:$0xff] }
 0x33a   :  { %3928 = vmatmul.mubr.bf16.vlgmr.msra.gmra.mxu0 %v9529_v39  ;;  %3937 = vmatpush1.bf16.msra.mxu1 %v8198_v42  ;;  %v4025_v39 = vld [vmem:[#allocation14 + $0x100] sm:$0xff]  ;;  %v8272_v42 = vcombine.low %v4001_v19, %v4005_v28  ;;  %v2270_v41 = vld [vmem:[#allocation11 + $0x638] sm:$0xff] }
 0x33b   :  { %3968 = vmatprep.mubr.bf16.mxu1 %v9543_v63  ;;  %v9564_v53 = vpop.f32.mrf.mxu0  ;;  %3938 = vmatprep.subr.bf16.mxu1 %v8191_v45  ;;  %v2230_v63 = vld [vmem:[#allocation11 + $0x4f8] sm:$0xff]  ;;  %v8297_v21 = vcombine.high %v4025_v39, %v4029_v23  ;;  %v8296_v15 = vcombine.low %v4025_v39, %v4029_v23  ;;  %v4113_v45 = vld [vmem:[#allocation14 + $0x3c0] sm:$0xff] }
 0x33c   :  { %7066 = vmatpush1.bf16.msra.mxu0 %v8320_v48  ;;  %v8167_v8 = vcombine.high %v2226_v61, %v2230_v63  ;;  %v8166_v6 = vcombine.low %v2226_v61, %v2230_v63  ;;  %v2314_v48 = vld [vmem:[#allocation11 + $0x798] sm:$0xff]  ;;  %v8385_v38 = vcombine.high %v4113_v45, %v4117_v46  ;;  %v4097_v23 = vld [vmem:[#allocation14 + $0x340] sm:$0xff] }
 0x33d   :  { %v3687_v13 = vpop.f32.mrf.mxu0  ;;  %7067 = vmatprep.subr.bf16.mxu0 %v8313_v50  ;;  %v2318_v50 = vld [vmem:[#allocation11 + $0x7b8] sm:$0xff]  ;;  %v4073_v19 = vld [vmem:[#allocation14 + $0x280] sm:$0xff] }
 0x33e   :  { %3939 = vmatpush1.bf16.msra.mxu1 %v8190_v51  ;;  %v8264_v51 = vcombine.low %v3993_v31, %v3997_v36  ;;  %v8255_v2 = vcombine.high %v2314_v48, %v2318_v50  ;;  %v2310_v13 = vld [vmem:[#allocation11 + $0x778] sm:$0xff]  ;;  %v8254_v39 = vcombine.low %v2314_v48, %v2318_v50  ;;  %v4077_v28 = vld [vmem:[#allocation14 + $0x2a0] sm:$0xff] }
 0x33f   :  { %v3688_v59 = vpop.f32.mrf.mxu0  ;;  %3940 = vmatprep.subr.bf16.mxu1 %v8183_v0  ;;  %v4105_v0 = vld [vmem:[#allocation14 + $0x380] sm:$0xff]  ;;  %v2298_v61 = vld [vmem:[#allocation11 + $0x718] sm:$0xff] }
 0x340   :  { %7068 = vmatpush1.bf16.msra.mxu0 %v8312_v54  ;;  %v2306_v54 = vld [vmem:[#allocation11 + $0x758] sm:$0xff]  ;;  %v4101_v59 = vld [vmem:[#allocation14 + $0x360] sm:$0xff] }
 0x341   :  { %7069 = vmatprep.subr.bf16.mxu0 %v8305_v55  ;;  %v8384_v55 = vcombine.low %v4113_v45, %v4117_v46  ;;  %v2302_v63 = vld [vmem:[#allocation11 + $0x738] sm:$0xff]  ;;  %v4065_v31 = vld [vmem:[#allocation14 + $0x240] sm:$0xff] }
 0x342   :  { %3941 = vmatpush1.bf16.msra.mxu1 %v8182_v57  ;;  %v8377_v57 = vcombine.high %v4105_v0, %v4109_v1  ;;  %v4069_v36 = vld [vmem:[#allocation14 + $0x260] sm:$0xff] }
 0x343   :  { %3942 = vmatprep.subr.bf16.mxu1 %v8175_v60  ;;  %v8247_v60 = vcombine.high %v2306_v54, %v2310_v13  ;;  %v4057_v45 = vld [vmem:[#allocation14 + $0x200] sm:$0xff]  ;;  %v8336_v48 = vcombine.low %v4065_v31, %v4069_v36 }
 0x344   :  { %7070 = vmatpush1.bf16.msra.mxu0 %v8304_v62  ;;  %v8376_v62 = vcombine.low %v4105_v0, %v4109_v1  ;;  %v4061_v46 = vld [vmem:[#allocation14 + $0x220] sm:$0xff]  ;;  %v8206_v0 = vcombine.low %v2266_v40, %v2270_v41 }
 0x345   :  { %7071 = vmatprep.subr.bf16.mxu0 %v8297_v21  ;;  %v8369_v21 = vcombine.high %v4097_v23, %v4101_v59  ;;  %v4177_v50 = vld [vmem:[#allocation14 + $0x5c0] sm:$0xff] }
 0x346   :  { %3943 = vmatpush1.bf16.msra.mxu1 %v8174_v3  ;;  %v8246_v3 = vcombine.low %v2306_v54, %v2310_v13  ;;  %v9568_v1 = vld [vmem:[#allocation14 + $0x9c0] sm:$0xff] }
 0x347   :  { %3944 = vmatprep.subr.bf16.mxu1 %v8167_v8  ;;  %v8239_v8 = vcombine.high %v2298_v61, %v2302_v63 }
 0x348   :  { %7072 = vmatpush1.bf16.msra.mxu0 %v8296_v15  ;;  %v8368_v15 = vcombine.low %v4097_v23, %v4101_v59 }
 0x349   :  { %7073 = vmatprep.subr.bf16.mxu0 %v8289_v16  ;;  %v8361_v16 = vcombine.high %v4089_v4, %v4093_v5 }
 0x34a   :  { %3945 = vmatpush1.bf16.msra.mxu1 %v8166_v6  ;;  %v8238_v6 = vcombine.low %v2298_v61, %v2302_v63 }
 0x34b   :  { %3946 = vmatprep.subr.bf16.mxu1 %v8159_v22  ;;  %v8231_v22 = vcombine.high %v2290_v9, %v2294_v10 }
 0x34c   :  { %7074 = vmatpush1.bf16.msra.mxu0 %v8288_v26  ;;  %v8360_v26 = vcombine.low %v4089_v4, %v4093_v5 }
 0x34d   :  { %7075 = vmatprep.subr.bf16.mxu0 %v8281_v17  ;;  %v8353_v17 = vcombine.high %v4081_v7, %v4085_v20 }
 0x34e   :  { %3947 = vmatpush1.bf16.msra.mxu1 %v8158_v18  ;;  %v8230_v18 = vcombine.low %v2290_v9, %v2294_v10 }
 0x34f   :  { %3948 = vmatprep.subr.bf16.mxu1 %v8151_v29  ;;  %v8223_v29 = vcombine.high %v2282_v24, %v2286_v25 }
 0x350   :  { %7076 = vmatpush1.bf16.msra.mxu0 %v8280_v33  ;;  %v8352_v33 = vcombine.low %v4081_v7, %v4085_v20 }
 0x351   :  { %7077 = vmatprep.subr.bf16.mxu0 %v8273_v34  ;;  %v8345_v34 = vcombine.high %v4073_v19, %v4077_v28 }
 0x352   :  { %3949 = vmatpush1.bf16.msra.mxu1 %v8150_v35  ;;  %v8222_v35 = vcombine.low %v2282_v24, %v2286_v25  ;;  %v4297_v24 = vld [vmem:[#allocation14 + $0x980] sm:$0xff] }
 0x353   :  { %3950 = vmatprep.subr.bf16.mxu1 %v8143_v37  ;;  %v8215_v37 = vcombine.high %v2274_v30, %v2278_v32  ;;  %v4301_v25 = vld [vmem:[#allocation14 + $0x9a0] sm:$0xff] }
 0x354   :  { %7078 = vmatpush1.bf16.msra.mxu0 %v8272_v42  ;;  %v8344_v42 = vcombine.low %v4073_v19, %v4077_v28  ;;  %v4145_v19 = vld [vmem:[#allocation14 + $0x4c0] sm:$0xff] }
 0x355   :  { %7079 = vmatprep.subr.bf16.mxu0 %v8265_v43  ;;  %v8337_v43 = vcombine.high %v4065_v31, %v4069_v36  ;;  %v4149_v28 = vld [vmem:[#allocation14 + $0x4e0] sm:$0xff] }
 0x356   :  { %3951 = vmatpush1.bf16.msra.mxu1 %v8142_v44  ;;  %v8214_v44 = vcombine.low %v2274_v30, %v2278_v32  ;;  %v9589_v30 = vld [vmem:[#allocation14 + $0x1c8] sm:$0xff]  ;;  %v4289_v31 = vld [vmem:[#allocation14 + $0x940] sm:$0xff] }
 0x357   :  { %3952 = vmatprep.subr.bf16.mxu1 %v8263_v47  ;;  %v8207_v47 = vcombine.high %v2266_v40, %v2270_v41  ;;  %v4293_v36 = vld [vmem:[#allocation14 + $0x960] sm:$0xff]  ;;  %v8417_v40 = vcombine.high %v4145_v19, %v4149_v28 }
 0x358   :  { %7080 = vmatpush1.bf16.msra.mxu0 %v8264_v51  ;;  %v4181_v51 = vld [vmem:[#allocation14 + $0x5e0] sm:$0xff] }
 0x359   :  { %7081 = vmatprep.subr.bf16.mxu0 %v8385_v38  ;;  %v9566_v38 = vld [vmem:[#allocation13] sm:$0xff]  ;;  %v8449_v54 = vcombine.high %v4177_v50, %v4181_v51  ;;  %v4137_v41 = vld [vmem:[#allocation14 + $0x480] sm:$0xff] }
 0x35a   :  { %3953 = vmatpush2.bf16.msra.mxu1 %v8262_v52  ;;  %v8329_v52 = vcombine.high %v4057_v45, %v4061_v46  ;;  %v2332_v13 = vrot.slane %v9566_v38, %v9472_v12  ;;  %v2336_v59 = vrot.slane %v9566_v38, %v9477_v14  ;;  %v4165_v12 = vld [vmem:[#allocation14 + $0x560] sm:$0xff] }
 0x35b   :  { %3954 = vmatprep.subr.bf16.mxu1 %v8255_v2  ;;  %v9570_v2 = vld [vmem:[#allocation14 + $0x9e0] sm:$0xff] }
 0x35c   :  { %7082 = vmatpush2.bf16.msra.mxu0 %v8384_v55  ;;  %v8328_v55 = vcombine.low %v4057_v45, %v4061_v46  ;;  %v8577_v23 = vcombine.high %v9568_v1, %v9570_v2  ;;  %v3684_v63 = vadd.f32 %v9560_v49, %v2332_v13  ;;  %v3686_v4 = vadd.f32 %v9564_v53, %v2336_v59  ;;  %v4281_v46 = vld [vmem:[#allocation14 + $0x900] sm:$0xff] }
 0x35d   :  { %7083 = vmatprep.subr.bf16.mxu0 %v8377_v57  ;;  %v4169_v57 = vld [vmem:[#allocation14 + $0x580] sm:$0xff]  ;;  %v8416_v45 = vcombine.low %v4145_v19, %v4149_v28 }
 0x35e   :  { %3955 = vmatpush2.bf16.msra.mxu1 %v8254_v39  ;;  %v4173_v39 = vld [vmem:[#allocation14 + $0x5a0] sm:$0xff] }
 0x35f   :  { %3956 = vmatprep.subr.bf16.mxu1 %v8247_v60  ;;  %v8448_v60 = vcombine.low %v4177_v50, %v4181_v51  ;;  %v8441_v61 = vcombine.high %v4169_v57, %v4173_v39  ;;  %v8440_v14 = vcombine.low %v4169_v57, %v4173_v39  ;;  %v4129_v50 = vld [vmem:[#allocation14 + $0x440] sm:$0xff] }
 0x360   :  { %7084 = vmatpush2.bf16.msra.mxu0 %v8376_v62  ;;  %v4161_v62 = vld [vmem:[#allocation14 + $0x540] sm:$0xff] }
 0x361   :  { %7085 = vmatprep.subr.bf16.mxu0 %v8369_v21  ;;  %v8433_v10 = vcombine.high %v4161_v62, %v4165_v12  ;;  %v4133_v51 = vld [vmem:[#allocation14 + $0x460] sm:$0xff] }
 0x362   :  { %3957 = vmatpush2.bf16.msra.mxu1 %v8246_v3  ;;  %v8401_v13 = vcombine.high %v4129_v50, %v4133_v51  ;;  %v4125_v57 = vld [vmem:[#allocation14 + $0x420] sm:$0xff]  ;;  %v8400_v59 = vcombine.low %v4129_v50, %v4133_v51 }
 0x363   :  { %3958 = vmatprep.subr.bf16.mxu1 %v8239_v8  ;;  %v4369_v19 = vld [vmem:[#allocation14 + $0xbc0] sm:$0xff] }
 0x364   :  { %7086 = vmatpush2.bf16.msra.mxu0 %v8368_v15  ;;  %v4153_v15 = vld [vmem:[#allocation14 + $0x500] sm:$0xff] }
 0x365   :  { %7087 = vmatprep.subr.bf16.mxu0 %v8361_v16  ;;  %v4157_v16 = vld [vmem:[#allocation14 + $0x520] sm:$0xff] }
 0x366   :  { %3959 = vmatpush2.bf16.msra.mxu1 %v8238_v6  ;;  %v4373_v28 = vld [vmem:[#allocation14 + $0xbe0] sm:$0xff] }
 0x367   :  { %3960 = vmatprep.subr.bf16.mxu1 %v8231_v22  ;;  %v8432_v22 = vcombine.low %v4161_v62, %v4165_v12  ;;  %v4241_v62 = vld [vmem:[#allocation14 + $0x7c0] sm:$0xff] }
 0x368   :  { %7088 = vmatpush2.bf16.msra.mxu0 %v8360_v26  ;;  %v4245_v12 = vld [vmem:[#allocation14 + $0x7e0] sm:$0xff] }
 0x369   :  { %7089 = vmatprep.subr.bf16.mxu0 %v8353_v17  ;;  %v8425_v17 = vcombine.high %v4153_v15, %v4157_v16  ;;  %v4353_v50 = vld [vmem:[#allocation14 + $0xb40] sm:$0xff] }
 0x36a   :  { %3961 = vmatpush2.bf16.msra.mxu1 %v8230_v18  ;;  %v4357_v51 = vld [vmem:[#allocation14 + $0xb60] sm:$0xff] }
 0x36b   :  { %3962 = vmatprep.subr.bf16.mxu1 %v8223_v29  ;;  %v8576_v29 = vcombine.low %v9568_v1, %v9570_v2  ;;  %v4273_v2 = vld [vmem:[#allocation14 + $0x8c0] sm:$0xff] }
 0x36c   :  { %7090 = vmatpush2.bf16.msra.mxu0 %v8352_v33  ;;  %v8569_v33 = vcombine.high %v4297_v24, %v4301_v25 }
 0x36d   :  { %7091 = vmatprep.subr.bf16.mxu0 %v8345_v34  ;;  %v9593_v34 = vld [vmem:[#allocation14 + $0x1e8] sm:$0xff] }
 0x36e   :  { %3963 = vmatpush2.bf16.msra.mxu1 %v8222_v35  ;;  %v8424_v35 = vcombine.low %v4153_v15, %v4157_v16  ;;  %v4237_v15 = vld [vmem:[#allocation14 + $0x7a0] sm:$0xff] }
 0x36f   :  { %3964 = vmatprep.subr.bf16.mxu1 %v8215_v37  ;;  %v8322_v37 = vcombine.low %v9589_v30, %v9593_v34 }
 0x370   :  { %7092 = vmatpush2.bf16.msra.mxu0 %v8344_v42  ;;  %v4141_v42 = vld [vmem:[#allocation14 + $0x4a0] sm:$0xff] }
 0x371   :  { %7093 = vmatprep.subr.bf16.mxu0 %v8337_v43  ;;  %v8568_v43 = vcombine.low %v4297_v24, %v4301_v25  ;;  %v8408_v1 = vcombine.low %v4137_v41, %v4141_v42  ;;  %v4225_v24 = vld [vmem:[#allocation14 + $0x740] sm:$0xff] }
 0x372   :  { %3965 = vmatpush2.bf16.msra.mxu1 %v8214_v44  ;;  %v8561_v44 = vcombine.high %v4289_v31, %v4293_v36  ;;  %v4229_v25 = vld [vmem:[#allocation14 + $0x760] sm:$0xff] }
 0x373   :  { %3966 = vmatprep.subr.bf16.mxu1 %v8207_v47  ;;  %v4285_v47 = vld [vmem:[#allocation14 + $0x920] sm:$0xff] }
 0x374   :  { %7094 = vmatpush2.bf16.msra.mxu0 %v8336_v48  ;;  %v8409_v48 = vcombine.high %v4137_v41, %v4141_v42  ;;  %v8552_v39 = vcombine.low %v4281_v46, %v4285_v47  ;;  %v4361_v41 = vld [vmem:[#allocation14 + $0xb80] sm:$0xff] }
 0x375   :  { %7095 = vmatprep.subr.bf16.mxu0 %v8329_v52  ;;  %v8560_v52 = vcombine.low %v4289_v31, %v4293_v36  ;;  %v8641_v36 = vcombine.high %v4369_v19, %v4373_v28  ;;  %v4365_v42 = vld [vmem:[#allocation14 + $0xba0] sm:$0xff] }
 0x376   :  { %3967 = vmatpush2.bf16.msra.mxu1 %v8206_v0  ;;  %v8553_v0 = vcombine.high %v4281_v46, %v4285_v47  ;;  %v8640_v46 = vcombine.low %v4369_v19, %v4373_v28  ;;  %v8633_v47 = vcombine.high %v4361_v41, %v4365_v42  ;;  %v2344_v28 = vrot.slane %v9566_v38, %v9490_v58 }
 0x377   :  { %7106 = vmatprep.subr.bf16.mxu1 %v8449_v54  ;;  %v4277_v54 = vld [vmem:[#allocation14 + $0x8e0] sm:$0xff] }
 0x378   :  { %7096 = vmatpush2.bf16.msra.mxu0 %v8328_v55  ;;  %v4121_v55 = vld [vmem:[#allocation14 + $0x400] sm:$0xff] }
 0x379   :  { %3969 = vmatmul.mubr.bf16.vlgmr.msra.gmra.mxu1 %v9545_v27  ;;  %v3724_v21 = vpop.f32.mrf.mxu1  ;;  %v9580_v3 = vpop.f32.mrf.mxu0  ;;  %7147 = vmatprep.subr.bf16.mxu0 %v8577_v23  ;;  %v8545_v23 = vcombine.high %v4273_v2, %v4277_v54 }
 0x37a   :  { %v3725_v5 = vadd.f32 %v3724_v21, %v3684_v63  ;;  %7107 = vmatpush1.bf16.msra.mxu1 %v8448_v60  ;;  %v4265_v60 = vld [vmem:[#allocation14 + $0x880] sm:$0xff]  ;;  %v8393_v63 = vcombine.high %v4121_v55, %v4125_v57  ;;  %v8544_v21 = vcombine.low %v4273_v2, %v4277_v54  ;;  %v8632_v2 = vcombine.low %v4361_v41, %v4365_v42 }
 0x37b   :  { %v3726_v8 = vpop.f32.mrf.mxu1  ;;  %v9583_v9 = vpop.f32.mrf.mxu0  ;;  %7108 = vmatprep.subr.bf16.mxu1 %v8441_v61  ;;  %v4269_v61 = vld [vmem:[#allocation14 + $0x8a0] sm:$0xff]  ;;  %v8625_v54 = vcombine.high %v4353_v50, %v4357_v51 }
 0x37c   :  { %v3727_v49 = vadd.f32 %v3726_v8, %v3686_v4  ;;  %v3977_v6 = vmax.f32 %v3725_v5, 0.0  ;;  %v8537_v4 = vcombine.high %v4265_v60, %v4269_v61  ;;  %v8392_v5 = vcombine.low %v4121_v55, %v4125_v57  ;;  %v4261_v8 = vld [vmem:[#allocation14 + $0x860] sm:$0xff] }
 0x37d   :  { %v3728_v7 = vpop.f32.mrf.mxu1  ;;  %v3769_v27 = vpop.f32.mrf.mxu0  ;;  %v8536_v16 = vcombine.low %v4265_v60, %v4269_v61  ;;  %v4345_v55 = vld [vmem:[#allocation14 + $0xb00] sm:$0xff]  ;;  %v8624_v60 = vcombine.low %v4353_v50, %v4357_v51 }
 0x37e   :  { %v3978_v20 = vmax.f32 %v3727_v49, 0.0  ;;  %7109 = vmatpush1.bf16.msra.mxu1 %v8440_v14  ;;  %v9591_v32 = vpack.c.bf16 %v3977_v6, %v3977_v6  ;;  %v4257_v14 = vld [vmem:[#allocation14 + $0x840] sm:$0xff]  ;;  %v8512_v7 = vcombine.low %v4241_v62, %v4245_v12 }
 0x37f   :  { %v3729_v53 = vpop.f32.mrf.mxu1  ;;  %v3770_v26 = vpop.f32.mrf.mxu0  ;;  %7110 = vmatprep.subr.bf16.mxu1 %v8433_v10  ;;  %v8513_v10 = vcombine.high %v4241_v62, %v4245_v12  ;;  %v4233_v49 = vld [vmem:[#allocation14 + $0x780] sm:$0xff]  ;;  %v8529_v6 = vcombine.high %v4257_v14, %v4261_v8 }
 0x380   :  { %v9585_v18 = vpack.c.bf16 %v3978_v20, %v3978_v20  ;;  %v4249_v27 = vld [vmem:[#allocation14 + $0x800] sm:$0xff]  ;;  %v8528_v53 = vcombine.low %v4257_v14, %v4261_v8 }
 0x381   :  { %v4253_v20 = vld [vmem:[#allocation14 + $0x820] sm:$0xff] }
 0x382   :  { %7097 = vmatprep.mubr.bf16.mxu0 %v9585_v18  ;;  %7111 = vmatpush1.bf16.msra.mxu1 %v8432_v22  ;;  %v8505_v22 = vcombine.high %v4233_v49, %v4237_v15  ;;  %v8521_v26 = vcombine.high %v4249_v27, %v4253_v20  ;;  %v8520_v31 = vcombine.low %v4249_v27, %v4253_v20  ;;  %v4349_v57 = vld [vmem:[#allocation14 + $0xb20] sm:$0xff] }
 0x383   :  { %7098 = vmatmul.mubr.bf16.vlgmr.msra.gmra.mxu0 %v9591_v32  ;;  %7112 = vmatprep.subr.bf16.mxu1 %v8425_v17  ;;  %v8504_v17 = vcombine.low %v4233_v49, %v4237_v15  ;;  %v8617_v61 = vcombine.high %v4345_v55, %v4349_v57  ;;  %v4337_v62 = vld [vmem:[#allocation14 + $0xac0] sm:$0xff]  ;;  %v8616_v14 = vcombine.low %v4345_v55, %v4349_v57 }
 0x384   :  { %7148 = vmatpush1.bf16.msra.mxu0 %v8576_v29  ;;  %v8497_v29 = vcombine.high %v4225_v24, %v4229_v25  ;;  %v4341_v12 = vld [vmem:[#allocation14 + $0xae0] sm:$0xff] }
 0x385   :  { %7149 = vmatprep.subr.bf16.mxu0 %v8569_v33  ;;  %v4217_v33 = vld [vmem:[#allocation14 + $0x700] sm:$0xff]  ;;  %v8609_v8 = vcombine.high %v4337_v62, %v4341_v12 }
 0x386   :  { %7113 = vmatpush1.bf16.msra.mxu1 %v8424_v35  ;;  %v4221_v35 = vld [vmem:[#allocation14 + $0x720] sm:$0xff] }
 0x387   :  { %7114 = vmatprep.subr.bf16.mxu1 %v8417_v40  ;;  %v8496_v40 = vcombine.low %v4225_v24, %v4229_v25  ;;  %v4329_v49 = vld [vmem:[#allocation14 + $0xa80] sm:$0xff] }
 0x388   :  { %7150 = vmatpush1.bf16.msra.mxu0 %v8568_v43  ;;  %v8489_v43 = vcombine.high %v4217_v33, %v4221_v35  ;;  %v4333_v15 = vld [vmem:[#allocation14 + $0xaa0] sm:$0xff] }
 0x389   :  { %7151 = vmatprep.subr.bf16.mxu0 %v8561_v44  ;;  %v4209_v44 = vld [vmem:[#allocation14 + $0x6c0] sm:$0xff]  ;;  %v8601_v20 = vcombine.high %v4329_v49, %v4333_v15 }
 0x38a   :  { %7115 = vmatpush1.bf16.msra.mxu1 %v8416_v45  ;;  %v4213_v45 = vld [vmem:[#allocation14 + $0x6e0] sm:$0xff] }
 0x38b   :  { %7116 = vmatprep.subr.bf16.mxu1 %v8409_v48  ;;  %v8488_v48 = vcombine.low %v4217_v33, %v4221_v35  ;;  %v4437_v27 = vld [vmem:[#allocation14 + $0xde0] sm:$0xff] }
 0x38c   :  { %7152 = vmatpush1.bf16.msra.mxu0 %v8560_v52  ;;  %v8481_v52 = vcombine.high %v4209_v44, %v4213_v45  ;;  %v4321_v24 = vld [vmem:[#allocation14 + $0xa40] sm:$0xff] }
 0x38d   :  { %7153 = vmatprep.subr.bf16.mxu0 %v8553_v0  ;;  %v4201_v0 = vld [vmem:[#allocation14 + $0x680] sm:$0xff] }
 0x38e   :  { %7117 = vmatpush1.bf16.msra.mxu1 %v8408_v1  ;;  %v4205_v1 = vld [vmem:[#allocation14 + $0x6a0] sm:$0xff] }
 0x38f   :  { %7118 = vmatprep.subr.bf16.mxu1 %v8401_v13  ;;  %v8480_v13 = vcombine.low %v4209_v44, %v4213_v45  ;;  %v4325_v25 = vld [vmem:[#allocation14 + $0xa60] sm:$0xff] }
 0x390   :  { %7154 = vmatpush1.bf16.msra.mxu0 %v8552_v39  ;;  %v8473_v39 = vcombine.high %v4201_v0, %v4205_v1  ;;  %v8593_v19 = vcombine.high %v4321_v24, %v4325_v25  ;;  %v4317_v33 = vld [vmem:[#allocation14 + $0xa20] sm:$0xff] }
 0x391   :  { %7155 = vmatprep.subr.bf16.mxu0 %v8545_v23  ;;  %v4193_v23 = vld [vmem:[#allocation14 + $0x640] sm:$0xff] }
 0x392   :  { %7119 = vmatpush1.bf16.msra.mxu1 %v8400_v59  ;;  %v4197_v59 = vld [vmem:[#allocation14 + $0x660] sm:$0xff] }
 0x393   :  { %7120 = vmatprep.subr.bf16.mxu1 %v8393_v63  ;;  %v8472_v63 = vcombine.low %v4201_v0, %v4205_v1  ;;  %v4425_v51 = vld [vmem:[#allocation14 + $0xd80] sm:$0xff] }
 0x394   :  { %7156 = vmatpush1.bf16.msra.mxu0 %v8544_v21  ;;  %v8465_v21 = vcombine.high %v4193_v23, %v4197_v59 }
 0x395   :  { %7157 = vmatprep.subr.bf16.mxu0 %v8537_v4  ;;  %v4185_v4 = vld [vmem:[#allocation14 + $0x600] sm:$0xff] }
 0x396   :  { %7121 = vmatpush1.bf16.msra.mxu1 %v8392_v5  ;;  %v4189_v5 = vld [vmem:[#allocation14 + $0x620] sm:$0xff] }
 0x397   :  { %7122 = vmatprep.subr.bf16.mxu1 %v8513_v10  ;;  %v8464_v10 = vcombine.low %v4193_v23, %v4197_v59  ;;  %v4421_v23 = vld [vmem:[#allocation14 + $0xd60] sm:$0xff] }
 0x398   :  { %7158 = vmatpush1.bf16.msra.mxu0 %v8536_v16  ;;  %v8457_v16 = vcombine.high %v4185_v4, %v4189_v5 }
 0x399   :  { %7159 = vmatprep.subr.bf16.mxu0 %v8529_v6  ;;  %v8608_v6 = vcombine.low %v4337_v62, %v4341_v12  ;;  %v4413_v62 = vld [vmem:[#allocation14 + $0xd20] sm:$0xff] }
 0x39a   :  { %7123 = vmatpush2.bf16.msra.mxu1 %v8512_v7  ;;  %v4433_v7 = vld [vmem:[#allocation14 + $0xdc0] sm:$0xff] }
 0x39b   :  { %7124 = vmatprep.subr.bf16.mxu1 %v8505_v22  ;;  %v8456_v22 = vcombine.low %v4185_v4, %v4189_v5  ;;  %v4401_v4 = vld [vmem:[#allocation14 + $0xcc0] sm:$0xff] }
 0x39c   :  { %7160 = vmatpush1.bf16.msra.mxu0 %v8528_v53  ;;  %v8705_v53 = vcombine.high %v4433_v7, %v4437_v27  ;;  %v4405_v5 = vld [vmem:[#allocation14 + $0xce0] sm:$0xff] }
 0x39d   :  { %7161 = vmatprep.subr.bf16.mxu0 %v8521_v26  ;;  %v2340_v26 = vrot.slane %v9566_v38, %v9487_v56  ;;  %v3768_v56 = vadd.f32 %v9583_v9, %v2344_v28 }
 0x39e   :  { %7125 = vmatpush2.bf16.msra.mxu1 %v8504_v17  ;;  %v8600_v17 = vcombine.low %v4329_v49, %v4333_v15  ;;  %v4397_v49 = vld [vmem:[#allocation14 + $0xca0] sm:$0xff]  ;;  %v8672_v15 = vcombine.low %v4401_v4, %v4405_v5 }
 0x39f   :  { %7126 = vmatprep.subr.bf16.mxu1 %v8497_v29  ;;  %v4313_v29 = vld [vmem:[#allocation14 + $0xa00] sm:$0xff]  ;;  %v3766_v35 = vadd.f32 %v9580_v3, %v2340_v26  ;;  %v8323_v3 = vcombine.high %v9589_v30, %v9593_v34  ;;  %v4014_v30 = vld [vmem:[#allocation14 + $0xa8] sm:$0xff] }
 0x3a0   :  { %7162 = vmatpush1.bf16.msra.mxu0 %v8520_v31  ;;  %v8592_v31 = vcombine.low %v4321_v24, %v4325_v25  ;;  %v8584_v58 = vcombine.low %v4313_v29, %v4317_v33  ;;  %v4381_v24 = vld [vmem:[#allocation14 + $0xc20] sm:$0xff] }
 0x3a1   :  { %7163 = vmatprep.subr.bf16.mxu0 %v8641_v36  ;;  %v4497_v26 = vld [vmem:[#allocation14 + $0xfc0] sm:$0xff] }
 0x3a2   :  { %7127 = vmatpush2.bf16.msra.mxu1 %v8496_v40  ;;  %v8585_v40 = vcombine.high %v4313_v29, %v4317_v33  ;;  %v4489_v29 = vld [vmem:[#allocation14 + $0xf80] sm:$0xff] }
 0x3a3   :  { %7128 = vmatprep.subr.bf16.mxu1 %v8489_v43  ;;  %v4493_v33 = vld [vmem:[#allocation14 + $0xfa0] sm:$0xff] }
 0x3a4   :  { %7164 = vmatpush2.bf16.msra.mxu0 %v8640_v46 }
 0x3a5   :  { %7165 = vmatprep.subr.bf16.mxu0 %v8633_v47 }
 0x3a6   :  { %7129 = vmatpush2.bf16.msra.mxu1 %v8488_v48 }
 0x3a7   :  { %7130 = vmatprep.subr.bf16.mxu1 %v8481_v52  ;;  %v4429_v52 = vld [vmem:[#allocation14 + $0xda0] sm:$0xff] }
 0x3a8   :  { %7166 = vmatpush2.bf16.msra.mxu0 %v8632_v2  ;;  %v8704_v2 = vcombine.low %v4433_v7, %v4437_v27  ;;  %v8697_v57 = vcombine.high %v4425_v51, %v4429_v52  ;;  %v4389_v7 = vld [vmem:[#allocation14 + $0xc60] sm:$0xff] }
 0x3a9   :  { %7167 = vmatprep.subr.bf16.mxu0 %v8625_v54  ;;  %v9613_v54 = vld [vmem:[#allocation14 + $0x5c8] sm:$0xff] }
 0x3aa   :  { %7131 = vmatpush2.bf16.msra.mxu1 %v8480_v13  ;;  %v9615_v13 = vld [vmem:[#allocation14 + $0x5e8] sm:$0xff] }
 0x3ab   :  { %7132 = vmatprep.subr.bf16.mxu1 %v8473_v39  ;;  %v4417_v39 = vld [vmem:[#allocation14 + $0xd40] sm:$0xff]  ;;  %v8450_v59 = vcombine.low %v9613_v54, %v9615_v13 }
 0x3ac   :  { %7168 = vmatpush2.bf16.msra.mxu0 %v8624_v60  ;;  %v8696_v60 = vcombine.low %v4425_v51, %v4429_v52  ;;  %v8688_v12 = vcombine.low %v4417_v39, %v4421_v23  ;;  %v4457_v51 = vld [vmem:[#allocation14 + $0xe80] sm:$0xff] }
 0x3ad   :  { %7169 = vmatprep.subr.bf16.mxu0 %v8617_v61  ;;  %v8689_v61 = vcombine.high %v4417_v39, %v4421_v23  ;;  %v4461_v52 = vld [vmem:[#allocation14 + $0xea0] sm:$0xff] }
 0x3ae   :  { %7133 = vmatpush2.bf16.msra.mxu1 %v8472_v63  ;;  %v4409_v63 = vld [vmem:[#allocation14 + $0xd00] sm:$0xff] }
 0x3af   :  { %7134 = vmatprep.subr.bf16.mxu1 %v8465_v21  ;;  %v8681_v21 = vcombine.high %v4409_v63, %v4413_v62  ;;  %v4449_v39 = vld [vmem:[#allocation14 + $0xe40] sm:$0xff] }
 0x3b0   :  { %7170 = vmatpush2.bf16.msra.mxu0 %v8616_v14  ;;  %v8680_v14 = vcombine.low %v4409_v63, %v4413_v62  ;;  %v4453_v23 = vld [vmem:[#allocation14 + $0xe60] sm:$0xff] }
 0x3b1   :  { %7171 = vmatprep.subr.bf16.mxu0 %v8609_v8  ;;  %v8673_v8 = vcombine.high %v4401_v4, %v4405_v5  ;;  %v8721_v63 = vcombine.high %v4449_v39, %v4453_v23  ;;  %v8720_v5 = vcombine.low %v4449_v39, %v4453_v23  ;;  %v4114_v39 = vld [vmem:[#allocation14 + $0x3c8] sm:$0xff] }
 0x3b2   :  { %7135 = vmatpush2.bf16.msra.mxu1 %v8464_v10  ;;  %v4393_v10 = vld [vmem:[#allocation14 + $0xc80] sm:$0xff]  ;;  %v4118_v23 = vld [vmem:[#allocation14 + $0x3e8] sm:$0xff] }
 0x3b3   :  { %7136 = vmatprep.subr.bf16.mxu1 %v8457_v16  ;;  %v8665_v16 = vcombine.high %v4393_v10, %v4397_v49  ;;  %v8664_v27 = vcombine.low %v4393_v10, %v4397_v49 }
 0x3b4   :  { %7172 = vmatpush2.bf16.msra.mxu0 %v8608_v6  ;;  %v4385_v6 = vld [vmem:[#allocation14 + $0xc40] sm:$0xff] }
 0x3b5   :  { %7173 = vmatprep.subr.bf16.mxu0 %v8601_v20  ;;  %v8657_v20 = vcombine.high %v4385_v6, %v4389_v7  ;;  %v8656_v25 = vcombine.low %v4385_v6, %v4389_v7 }
 0x3b6   :  { %7137 = vmatpush2.bf16.msra.mxu1 %v8456_v22  ;;  %v4377_v22 = vld [vmem:[#allocation14 + $0xc00] sm:$0xff] }
 0x3b7   :  { %7188 = vmatprep.subr.bf16.mxu1 %v8705_v53  ;;  %v8649_v53 = vcombine.high %v4377_v22, %v4381_v24 }
 0x3b8   :  { %7174 = vmatpush2.bf16.msra.mxu0 %v8600_v17  ;;  %v4501_v17 = vld [vmem:[#allocation14 + $0xfe0] sm:$0xff] }
 0x3b9   :  { %v3806_v36 = vpop.f32.mrf.mxu1  ;;  %7175 = vmatprep.subr.bf16.mxu0 %v8593_v19  ;;  %v8648_v19 = vcombine.low %v4377_v22, %v4381_v24  ;;  %v8769_v28 = vcombine.high %v4497_v26, %v4501_v17 }
 0x3ba   :  { %v3807_v41 = vadd.f32 %v3806_v36, %v3766_v35  ;;  %v9605_v42 = vpop.f32.mrf.mxu0  ;;  %v8768_v35 = vcombine.low %v4497_v26, %v4501_v17  ;;  %v4481_v36 = vld [vmem:[#allocation14 + $0xf40] sm:$0xff]  ;;  %v4046_v26 = vld [vmem:[#allocation14 + $0x1a8] sm:$0xff] }
 0x3bb   :  { %v3808_v43 = vpop.f32.mrf.mxu1 }
 0x3bc   :  { %v3809_v44 = vadd.f32 %v3808_v43, %v3768_v56  ;;  %v9607_v45 = vpop.f32.mrf.mxu0  ;;  %7176 = vmatpush2.bf16.msra.mxu0 %v8592_v31  ;;  %v3979_v46 = vmax.f32 %v3807_v41, 0.0  ;;  %v8761_v31 = vcombine.high %v4489_v29, %v4493_v33  ;;  %v8760_v56 = vcombine.low %v4489_v29, %v4493_v33  ;;  %v4473_v43 = vld [vmem:[#allocation14 + $0xf00] sm:$0xff]  ;;  %v4034_v33 = vld [vmem:[#allocation14 + $0x148] sm:$0xff] }
 0x3bd   :  { %v3810_v47 = vpop.f32.mrf.mxu1  ;;  %7177 = vmatprep.subr.bf16.mxu0 %v8585_v40  ;;  %v4485_v40 = vld [vmem:[#allocation14 + $0xf60] sm:$0xff] }
 0x3be   :  { %v3980_v48 = vmax.f32 %v3809_v44, 0.0  ;;  %v3851_v50 = vpop.f32.mrf.mxu0  ;;  %v9617_v55 = vpack.c.bf16 %v3979_v46, %v3979_v46  ;;  %v8753_v41 = vcombine.high %v4481_v36, %v4485_v40  ;;  %v4477_v44 = vld [vmem:[#allocation14 + $0xf20] sm:$0xff] }
 0x3bf   :  { %v3811_v9 = vpop.f32.mrf.mxu1  ;;  %v8745_v46 = vcombine.high %v4473_v43, %v4477_v44  ;;  %v4465_v47 = vld [vmem:[#allocation14 + $0xec0] sm:$0xff] }
 0x3c0   :  { %v9611_v0 = vpack.c.bf16 %v3980_v48, %v3980_v48  ;;  %v3852_v1 = vpop.f32.mrf.mxu0  ;;  %7178 = vmatpush2.bf16.msra.mxu0 %v8584_v58  ;;  %v8752_v58 = vcombine.low %v4481_v36, %v4485_v40  ;;  %v8744_v48 = vcombine.low %v4473_v43, %v4477_v44  ;;  %v2347_v9 = vsub.s32 4, %v9469_v11  ;;  %v4026_v40 = vld [vmem:[#allocation14 + $0x108] sm:$0xff] }
 0x3c1   :  { %7229 = vmatprep.subr.bf16.mxu0 %v8323_v3  ;;  %v4469_v3 = vld [vmem:[#allocation14 + $0xee0] sm:$0xff]  ;;  %v4018_v44 = vld [vmem:[#allocation14 + $0xc8] sm:$0xff] }
 0x3c2   :  { %7138 = vmatprep.mubr.bf16.mxu1 %v9611_v0  ;;  %v8737_v50 = vcombine.high %v4465_v47, %v4469_v3  ;;  %v8736_v1 = vcombine.low %v4465_v47, %v4469_v3  ;;  %v4010_v3 = vld [vmem:[#allocation14 + $0x88] sm:$0xff] }
 0x3c3   :  { %7139 = vmatmul.mubr.bf16.vlgmr.msra.gmra.mxu1 %v9617_v55 }
 0x3c4   :  { %7189 = vmatpush1.bf16.msra.mxu1 %v8704_v2  ;;  %v8729_v2 = vcombine.high %v4457_v51, %v4461_v52 }
 0x3c5   :  { %7190 = vmatprep.subr.bf16.mxu1 %v8697_v57  ;;  %v2351_v57 = vsub.s32 5, %v9469_v11 }
 0x3c7   :  { %v2352_v62 = vrot.slane %v9566_v38, %v2351_v57 }
 0x3c8   :  { %7191 = vmatpush1.bf16.msra.mxu1 %v8696_v60  ;;  %v2348_v60 = vrot.slane %v9566_v38, %v2347_v9  ;;  %v3994_v9 = vld [vmem:[#allocation14 + $0x8] sm:$0xff] }
 0x3c9   :  { %7192 = vmatprep.subr.bf16.mxu1 %v8689_v61  ;;  %v8728_v61 = vcombine.low %v4457_v51, %v4461_v52  ;;  %v3850_v10 = vadd.f32 %v9607_v45, %v2352_v62  ;;  %v8282_v51 = vcombine.low %v4010_v3, %v4014_v30  ;;  %v4110_v62 = vld [vmem:[#allocation14 + $0x3a8] sm:$0xff] }
 0x3ca   :  { %v3848_v4 = vadd.f32 %v9605_v42, %v2348_v60  ;;  %v8451_v42 = vcombine.high %v9613_v54, %v9615_v13 }
 0x3cc   :  { %7193 = vmatpush1.bf16.msra.mxu1 %v8688_v12  ;;  %v4441_v12 = vld [vmem:[#allocation14 + $0xe00] sm:$0xff] }
 0x3cd   :  { %7194 = vmatprep.subr.bf16.mxu1 %v8681_v21  ;;  %v4445_v21 = vld [vmem:[#allocation14 + $0xe20] sm:$0xff] }
 0x3d0   :  { %7195 = vmatpush1.bf16.msra.mxu1 %v8680_v14 }
 0x3d1   :  { %7196 = vmatprep.subr.bf16.mxu1 %v8673_v8  ;;  %v8713_v8 = vcombine.high %v4441_v12, %v4445_v21 }
 0x3d4   :  { %7197 = vmatpush1.bf16.msra.mxu1 %v8672_v15 }
 0x3d5   :  { %7198 = vmatprep.subr.bf16.mxu1 %v8665_v16 }
 0x3d8   :  { %7199 = vmatpush1.bf16.msra.mxu1 %v8664_v27  ;;  %v8712_v27 = vcombine.low %v4441_v12, %v4445_v21  ;;  %v8386_v12 = vcombine.low %v4114_v39, %v4118_v23 }
 0x3d9   :  { %7200 = vmatprep.subr.bf16.mxu1 %v8657_v20 }
 0x3dc   :  { %7201 = vmatpush1.bf16.msra.mxu1 %v8656_v25 }
 0x3dd   :  { %7202 = vmatprep.subr.bf16.mxu1 %v8649_v53  ;;  %v4042_v53 = vld [vmem:[#allocation14 + $0x188] sm:$0xff] }
 0x3de   :  { %v8315_v29 = vcombine.high %v4042_v53, %v4046_v26 }
 0x3e0   :  { %7203 = vmatpush1.bf16.msra.mxu1 %v8648_v19 }
 0x3e1   :  { %7204 = vmatprep.subr.bf16.mxu1 %v8769_v28 }
 0x3e4   :  { %7205 = vmatpush2.bf16.msra.mxu1 %v8768_v35  ;;  %v4038_v35 = vld [vmem:[#allocation14 + $0x168] sm:$0xff] }
 0x3e5   :  { %7206 = vmatprep.subr.bf16.mxu1 %v8761_v31  ;;  %v8314_v31 = vcombine.low %v4042_v53, %v4046_v26  ;;  %v8307_v36 = vcombine.high %v4034_v33, %v4038_v35  ;;  %v2355_v53 = vsub.s32 6, %v9469_v11 }
 0x3e8   :  { %7207 = vmatpush2.bf16.msra.mxu1 %v8760_v56  ;;  %v4030_v56 = vld [vmem:[#allocation14 + $0x128] sm:$0xff] }
 0x3e9   :  { %7208 = vmatprep.subr.bf16.mxu1 %v8753_v41  ;;  %v8306_v41 = vcombine.low %v4034_v33, %v4038_v35  ;;  %v8299_v43 = vcombine.high %v4026_v40, %v4030_v56  ;;  %v4070_v33 = vld [vmem:[#allocation14 + $0x268] sm:$0xff]  ;;  %v2356_v35 = vrot.slane %v9566_v38, %v2355_v53 }
 0x3ea   :  { %v4150_v53 = vld [vmem:[#allocation14 + $0x4e8] sm:$0xff] }
 0x3ec   :  { %7209 = vmatpush2.bf16.msra.mxu1 %v8752_v58  ;;  %v4022_v58 = vld [vmem:[#allocation14 + $0xe8] sm:$0xff] }
 0x3ed   :  { %7210 = vmatprep.subr.bf16.mxu1 %v8745_v46  ;;  %v8298_v46 = vcombine.low %v4026_v40, %v4030_v56  ;;  %v8291_v47 = vcombine.high %v4018_v44, %v4022_v58  ;;  %v8290_v34 = vcombine.low %v4018_v44, %v4022_v58  ;;  %v4058_v56 = vld [vmem:[#allocation14 + $0x208] sm:$0xff] }
 0x3f0   :  { %7211 = vmatpush2.bf16.msra.mxu1 %v8744_v48  ;;  %v4002_v48 = vld [vmem:[#allocation14 + $0x48] sm:$0xff] }
 0x3f1   :  { %7212 = vmatprep.subr.bf16.mxu1 %v8737_v50  ;;  %v4006_v50 = vld [vmem:[#allocation14 + $0x68] sm:$0xff] }
 0x3f2   :  { %v8275_v52 = vcombine.high %v4002_v48, %v4006_v50 }
 0x3f4   :  { %7213 = vmatpush2.bf16.msra.mxu1 %v8736_v1  ;;  %v3998_v1 = vld [vmem:[#allocation14 + $0x28] sm:$0xff] }
 0x3f5   :  { %7214 = vmatprep.subr.bf16.mxu1 %v8729_v2  ;;  %v8274_v2 = vcombine.low %v4002_v48, %v4006_v50  ;;  %v8267_v57 = vcombine.high %v3994_v9, %v3998_v1  ;;  %v8266_v60 = vcombine.low %v3994_v9, %v3998_v1  ;;  %v4174_v1 = vld [vmem:[#allocation14 + $0x5a8] sm:$0xff] }
 0x3f8   :  { %7215 = vmatpush2.bf16.msra.mxu1 %v8728_v61  ;;  %v8387_v61 = vcombine.high %v4114_v39, %v4118_v23 }
 0x3f9   :  { %v3888_v14 = vpop.f32.mrf.mxu1  ;;  %7216 = vmatprep.subr.bf16.mxu1 %v8721_v63  ;;  %v4106_v63 = vld [vmem:[#allocation14 + $0x388] sm:$0xff] }
 0x3fa   :  { %v3889_v49 = vadd.f32 %v3888_v14, %v3848_v4  ;;  %v9629_v15 = vpop.f32.mrf.mxu0  ;;  %v8379_v21 = vcombine.high %v4106_v63, %v4110_v62  ;;  %v4098_v4 = vld [vmem:[#allocation14 + $0x348] sm:$0xff]  ;;  %v8378_v14 = vcombine.low %v4106_v63, %v4110_v62 }
 0x3fb   :  { %v3890_v16 = vpop.f32.mrf.mxu1  ;;  %v4166_v62 = vld [vmem:[#allocation14 + $0x568] sm:$0xff] }
 0x3fc   :  { %v3891_v6 = vadd.f32 %v3890_v16, %v3850_v10  ;;  %v9631_v7 = vpop.f32.mrf.mxu0  ;;  %7217 = vmatpush2.bf16.msra.mxu1 %v8720_v5  ;;  %v3981_v20 = vmax.f32 %v3889_v49, 0.0  ;;  %v4102_v5 = vld [vmem:[#allocation14 + $0x368] sm:$0xff] }
 0x3fd   :  { %v3892_v22 = vpop.f32.mrf.mxu1  ;;  %7218 = vmatprep.subr.bf16.mxu1 %v8713_v8  ;;  %v8371_v8 = vcombine.high %v4098_v4, %v4102_v5  ;;  %v4090_v10 = vld [vmem:[#allocation14 + $0x308] sm:$0xff]  ;;  %v8370_v16 = vcombine.low %v4098_v4, %v4102_v5 }
 0x3fe   :  { %v3982_v24 = vmax.f32 %v3891_v6, 0.0  ;;  %v3933_v25 = vpop.f32.mrf.mxu0  ;;  %v9637_v28 = vpack.c.bf16 %v3981_v20, %v3981_v20  ;;  %v4094_v49 = vld [vmem:[#allocation14 + $0x328] sm:$0xff] }
 0x3ff   :  { %v3893_v45 = vpop.f32.mrf.mxu1  ;;  %v8363_v6 = vcombine.high %v4090_v10, %v4094_v49  ;;  %v4086_v20 = vld [vmem:[#allocation14 + $0x2e8] sm:$0xff]  ;;  %v8362_v22 = vcombine.low %v4090_v10, %v4094_v49 }
 0x400   :  { %v9635_v17 = vpack.c.bf16 %v3982_v24, %v3982_v24  ;;  %v3934_v19 = vpop.f32.mrf.mxu0  ;;  %7219 = vmatpush2.bf16.msra.mxu1 %v8712_v27  ;;  %v4082_v27 = vld [vmem:[#allocation14 + $0x2c8] sm:$0xff] }
 0x401   :  { %7270 = vmatprep.subr.bf16.mxu1 %v8451_v42  ;;  %v8355_v42 = vcombine.high %v4082_v27, %v4086_v20  ;;  %v4074_v24 = vld [vmem:[#allocation14 + $0x288] sm:$0xff]  ;;  %v8354_v26 = vcombine.low %v4082_v27, %v4086_v20  ;;  %v2359_v19 = vsub.s32 7, %v9469_v11 }
 0x402   :  { %7179 = vmatprep.mubr.bf16.mxu0 %v9635_v17  ;;  %v4078_v25 = vld [vmem:[#allocation14 + $0x2a8] sm:$0xff] }
 0x403   :  { %7180 = vmatmul.mubr.bf16.vlgmr.msra.gmra.mxu0 %v9637_v28  ;;  %v8347_v45 = vcombine.high %v4074_v24, %v4078_v25  ;;  %v2360_v40 = vrot.slane %v9566_v38, %v2359_v19  ;;  %v4282_v27 = vld [vmem:[#allocation14 + $0x908] sm:$0xff] }
 0x404   :  { %7230 = vmatpush1.bf16.msra.mxu0 %v8322_v37  ;;  %7261 = vmatprep.mubr.bf16.mxu0 %v9585_v18  ;;  %v8283_v37 = vcombine.high %v4010_v3, %v4014_v30  ;;  %v4306_v3 = vld [vmem:[#allocation14 + $0x9c8] sm:$0xff] }
 0x405   :  { %7231 = vmatprep.subr.bf16.mxu0 %v8315_v29  ;;  %v4066_v29 = vld [vmem:[#allocation14 + $0x248] sm:$0xff]  ;;  %v3932_v11 = vadd.f32 %v9631_v7, %v2360_v40 }
 0x406   :  { %v8338_v44 = vcombine.low %v4066_v29, %v4070_v33  ;;  %v4310_v30 = vld [vmem:[#allocation14 + $0x9e8] sm:$0xff] }
 0x407   :  { %v8578_v7 = vcombine.low %v4306_v3, %v4310_v30  ;;  %v4286_v20 = vld [vmem:[#allocation14 + $0x928] sm:$0xff] }
 0x408   :  { %7232 = vmatpush1.bf16.msra.mxu0 %v8314_v31  ;;  %v8346_v31 = vcombine.low %v4074_v24, %v4078_v25  ;;  %v8555_v24 = vcombine.high %v4282_v27, %v4286_v20  ;;  %v4146_v25 = vld [vmem:[#allocation14 + $0x4c8] sm:$0xff] }
 0x409   :  { %7233 = vmatprep.subr.bf16.mxu0 %v8307_v36  ;;  %v8339_v36 = vcombine.high %v4066_v29, %v4070_v33  ;;  %v8554_v29 = vcombine.low %v4282_v27, %v4286_v20  ;;  %v8419_v33 = vcombine.high %v4146_v25, %v4150_v53  ;;  %v4266_v40 = vld [vmem:[#allocation14 + $0x888] sm:$0xff] }
 0x40c   :  { %7234 = vmatpush1.bf16.msra.mxu0 %v8306_v41  ;;  %v4062_v41 = vld [vmem:[#allocation14 + $0x228] sm:$0xff] }
 0x40d   :  { %7235 = vmatprep.subr.bf16.mxu0 %v8299_v43  ;;  %v3930_v43 = vadd.f32 %v9629_v15, %v2356_v35  ;;  %v8330_v48 = vcombine.low %v4058_v56, %v4062_v41  ;;  %v4170_v15 = vld [vmem:[#allocation14 + $0x588] sm:$0xff] }
 0x40e   :  { %v8442_v5 = vcombine.low %v4170_v15, %v4174_v1 }
 0x410   :  { %7236 = vmatpush1.bf16.msra.mxu0 %v8298_v46  ;;  %v8331_v46 = vcombine.high %v4058_v56, %v4062_v41  ;;  %v4270_v56 = vld [vmem:[#allocation14 + $0x8a8] sm:$0xff]  ;;  %v8418_v41 = vcombine.low %v4146_v25, %v4150_v53 }
 0x411   :  { %7237 = vmatprep.subr.bf16.mxu0 %v8291_v47 }
 0x414   :  { %7238 = vmatpush1.bf16.msra.mxu0 %v8290_v34 }
 0x415   :  { %7239 = vmatprep.subr.bf16.mxu0 %v8283_v37 }
 0x418   :  { %7240 = vmatpush1.bf16.msra.mxu0 %v8282_v51  ;;  %v8579_v51 = vcombine.high %v4306_v3, %v4310_v30  ;;  %v4262_v3 = vld [vmem:[#allocation14 + $0x868] sm:$0xff] }
 0x419   :  { %7241 = vmatprep.subr.bf16.mxu0 %v8275_v52 }
 0x41c   :  { %7242 = vmatpush1.bf16.msra.mxu0 %v8274_v2  ;;  %v4298_v2 = vld [vmem:[#allocation14 + $0x988] sm:$0xff] }
 0x41d   :  { %7243 = vmatprep.subr.bf16.mxu0 %v8267_v57  ;;  %v4302_v57 = vld [vmem:[#allocation14 + $0x9a8] sm:$0xff] }
 0x41e   :  { %v8571_v63 = vcombine.high %v4298_v2, %v4302_v57 }
 0x420   :  { %7244 = vmatpush1.bf16.msra.mxu0 %v8266_v60  ;;  %v4162_v60 = vld [vmem:[#allocation14 + $0x548] sm:$0xff] }
 0x421   :  { %7245 = vmatprep.subr.bf16.mxu0 %v8387_v61  ;;  %v8443_v61 = vcombine.high %v4170_v15, %v4174_v1  ;;  %v8435_v10 = vcombine.high %v4162_v60, %v4166_v62  ;;  %v8434_v54 = vcombine.low %v4162_v60, %v4166_v62  ;;  %v4370_v60 = vld [vmem:[#allocation14 + $0xbc8] sm:$0xff] }
 0x424   :  { %7246 = vmatpush2.bf16.msra.mxu0 %v8386_v12  ;;  %v4290_v12 = vld [vmem:[#allocation14 + $0x948] sm:$0xff] }
 0x425   :  { %7247 = vmatprep.subr.bf16.mxu0 %v8379_v21  ;;  %v4294_v21 = vld [vmem:[#allocation14 + $0x968] sm:$0xff] }
 0x426   :  { %v8563_v49 = vcombine.high %v4290_v12, %v4294_v21  ;;  %v8562_v13 = vcombine.low %v4290_v12, %v4294_v21 }
 0x428   :  { %7248 = vmatpush2.bf16.msra.mxu0 %v8378_v14  ;;  %v8570_v14 = vcombine.low %v4298_v2, %v4302_v57  ;;  %v4242_v57 = vld [vmem:[#allocation14 + $0x7c8] sm:$0xff] }
 0x429   :  { %7249 = vmatprep.subr.bf16.mxu0 %v8371_v8 }
 0x42c   :  { %7250 = vmatpush2.bf16.msra.mxu0 %v8370_v16  ;;  %v4154_v16 = vld [vmem:[#allocation14 + $0x508] sm:$0xff] }
 0x42d   :  { %7251 = vmatprep.subr.bf16.mxu0 %v8363_v6  ;;  %v4158_v6 = vld [vmem:[#allocation14 + $0x528] sm:$0xff] }
 0x42e   :  { %v8426_v19 = vcombine.low %v4154_v16, %v4158_v6 }
 0x430   :  { %7252 = vmatpush2.bf16.msra.mxu0 %v8362_v22 }
 0x431   :  { %7253 = vmatprep.subr.bf16.mxu0 %v8355_v42  ;;  %v8427_v42 = vcombine.high %v4154_v16, %v4158_v6 }
 0x434   :  { %7254 = vmatpush2.bf16.msra.mxu0 %v8354_v26  ;;  %v4274_v26 = vld [vmem:[#allocation14 + $0x8c8] sm:$0xff] }
 0x435   :  { %7255 = vmatprep.subr.bf16.mxu0 %v8347_v45  ;;  %v4278_v45 = vld [vmem:[#allocation14 + $0x8e8] sm:$0xff] }
 0x436   :  { %v8547_v35 = vcombine.high %v4274_v26, %v4278_v45 }
 0x438   :  { %7256 = vmatpush2.bf16.msra.mxu0 %v8346_v31  ;;  %v4138_v31 = vld [vmem:[#allocation14 + $0x488] sm:$0xff] }
 0x439   :  { %v3970_v58 = vpop.f32.mrf.mxu1  ;;  %7257 = vmatprep.subr.bf16.mxu0 %v8339_v36  ;;  %v4142_v36 = vld [vmem:[#allocation14 + $0x4a8] sm:$0xff] }
 0x43a   :  { %v3971_v47 = vadd.f32 %v3970_v58, %v3930_v43  ;;  %v8546_v43 = vcombine.low %v4274_v26, %v4278_v45  ;;  %v8539_v58 = vcombine.high %v4266_v40, %v4270_v56  ;;  %v8410_v30 = vcombine.low %v4138_v31, %v4142_v36  ;;  %v4218_v26 = vld [vmem:[#allocation14 + $0x708] sm:$0xff] }
 0x43b   :  { %v3972_v34 = vpop.f32.mrf.mxu1  ;;  %v4222_v45 = vld [vmem:[#allocation14 + $0x728] sm:$0xff] }
 0x43c   :  { %v3973_v37 = vadd.f32 %v3972_v34, %v3932_v11  ;;  %7258 = vmatpush2.bf16.msra.mxu0 %v8338_v44  ;;  %v3983_v50 = vmax.f32 %v3971_v47, 0.0  ;;  %v8411_v44 = vcombine.high %v4138_v31, %v4142_v36  ;;  %v4134_v11 = vld [vmem:[#allocation14 + $0x468] sm:$0xff]  ;;  %v8538_v34 = vcombine.low %v4266_v40, %v4270_v56 }
 0x43d   :  { %v3974_v38 = vpop.f32.mrf.mxu1  ;;  %7259 = vmatprep.subr.bf16.mxu0 %v8331_v46  ;;  %v4130_v46 = vld [vmem:[#allocation14 + $0x448] sm:$0xff]  ;;  %v8491_v31 = vcombine.high %v4218_v26, %v4222_v45 }
 0x43e   :  { %v3984_v52 = vmax.f32 %v3973_v37, 0.0  ;;  %v9653_v23 = vpack.c.bf16 %v3983_v50, %v3983_v50  ;;  %v4258_v47 = vld [vmem:[#allocation14 + $0x848] sm:$0xff]  ;;  %v8403_v37 = vcombine.high %v4130_v46, %v4134_v11  ;;  %v8402_v15 = vcombine.low %v4130_v46, %v4134_v11 }
 0x43f   :  { %v3975_v9 = vpop.f32.mrf.mxu1  ;;  %v4122_v50 = vld [vmem:[#allocation14 + $0x408] sm:$0xff] }
 0x440   :  { %v9651_v39 = vpack.c.bf16 %v3984_v52, %v3984_v52  ;;  %7260 = vmatpush2.bf16.msra.mxu0 %v8330_v48  ;;  %v8531_v48 = vcombine.high %v4258_v47, %v4262_v3  ;;  %v4126_v38 = vld [vmem:[#allocation14 + $0x428] sm:$0xff]  ;;  %v8530_v9 = vcombine.low %v4258_v47, %v4262_v3 }
 0x441   :  { %7311 = vmatprep.subr.bf16.mxu0 %v8579_v51  ;;  %v4250_v51 = vld [vmem:[#allocation14 + $0x808] sm:$0xff]  ;;  %v8395_v1 = vcombine.high %v4122_v50, %v4126_v38 }
 0x442   :  { %7220 = vmatprep.mubr.bf16.mxu1 %v9651_v39  ;;  %v4254_v52 = vld [vmem:[#allocation14 + $0x828] sm:$0xff] }
 0x443   :  { %7262 = vmatmul.mubr.bf16.vlgmr.msra.gmra.mxu0 %v9591_v32  ;;  %7221 = vmatmul.mubr.bf16.vlgmr.msra.gmra.mxu1 %v9653_v23  ;;  %v9658_v4 = vpop.f32.mrf.mxu0  ;;  %v8523_v2 = vcombine.high %v4250_v51, %v4254_v52  ;;  %v8522_v62 = vcombine.low %v4250_v51, %v4254_v52  ;;  %v4210_v40 = vld [vmem:[#allocation14 + $0x6c8] sm:$0xff] }
 0x444   :  { %7271 = vmatpush1.bf16.msra.mxu1 %v8450_v59  ;;  %7312 = vmatpush1.bf16.msra.mxu0 %v8578_v7  ;;  %v4246_v7 = vld [vmem:[#allocation14 + $0x7e8] sm:$0xff] }
 0x445   :  { %7343 = vmatprep.mubr.bf16.mxu0 %v9635_v17  ;;  %7302 = vmatprep.mubr.bf16.mxu1 %v9611_v0  ;;  %v9665_v8 = vpop.f32.mrf.mxu0  ;;  %v8515_v12 = vcombine.high %v4242_v57, %v4246_v7  ;;  %v8514_v16 = vcombine.low %v4242_v57, %v4246_v7  ;;  %v4214_v56 = vld [vmem:[#allocation14 + $0x6e8] sm:$0xff] }
 0x446   :  { %7272 = vmatprep.subr.bf16.mxu1 %v8443_v61  ;;  %7313 = vmatprep.subr.bf16.mxu0 %v8571_v63  ;;  %v4374_v61 = vld [vmem:[#allocation14 + $0xbe8] sm:$0xff]  ;;  %v8394_v63 = vcombine.low %v4122_v50, %v4126_v38  ;;  %v8483_v46 = vcombine.high %v4210_v40, %v4214_v56 }
 0x447   :  { %v7103_v22 = vpop.f32.mrf.mxu0  ;;  %v8643_v21 = vcombine.high %v4370_v60, %v4374_v61  ;;  %v8642_v6 = vcombine.low %v4370_v60, %v4374_v61  ;;  %v4202_v47 = vld [vmem:[#allocation14 + $0x688] sm:$0xff] }
 0x448   :  { %7273 = vmatpush1.bf16.msra.mxu1 %v8442_v5  ;;  %7314 = vmatpush1.bf16.msra.mxu0 %v8570_v14  ;;  %v4234_v5 = vld [vmem:[#allocation14 + $0x788] sm:$0xff] }
 0x449   :  { %v7104_v59 = vpop.f32.mrf.mxu0  ;;  %7274 = vmatprep.subr.bf16.mxu1 %v8435_v10  ;;  %7315 = vmatprep.subr.bf16.mxu0 %v8563_v49  ;;  %v4238_v14 = vld [vmem:[#allocation14 + $0x7a8] sm:$0xff] }
 0x44a   :  { %v4362_v10 = vld [vmem:[#allocation14 + $0xb88] sm:$0xff]  ;;  %v8507_v27 = vcombine.high %v4234_v5, %v4238_v14 }
 0x44b   :  { %v4366_v49 = vld [vmem:[#allocation14 + $0xba8] sm:$0xff] }
 0x44c   :  { %7275 = vmatpush1.bf16.msra.mxu1 %v8434_v54  ;;  %7316 = vmatpush1.bf16.msra.mxu0 %v8562_v13  ;;  %v8635_v20 = vcombine.high %v4362_v10, %v4366_v49  ;;  %v4226_v22 = vld [vmem:[#allocation14 + $0x748] sm:$0xff] }
 0x44d   :  { %7276 = vmatprep.subr.bf16.mxu1 %v8427_v42  ;;  %7317 = vmatprep.subr.bf16.mxu0 %v8555_v24  ;;  %v4230_v54 = vld [vmem:[#allocation14 + $0x768] sm:$0xff]  ;;  %v8506_v42 = vcombine.low %v4234_v5, %v4238_v14  ;;  %v8634_v24 = vcombine.low %v4362_v10, %v4366_v49 }
 0x44e   :  { %v4354_v13 = vld [vmem:[#allocation14 + $0xb48] sm:$0xff]  ;;  %v8499_v25 = vcombine.high %v4226_v22, %v4230_v54 }
 0x44f   :  { %v4358_v59 = vld [vmem:[#allocation14 + $0xb68] sm:$0xff] }
 0x450   :  { %7277 = vmatpush1.bf16.msra.mxu1 %v8426_v19  ;;  %7318 = vmatpush1.bf16.msra.mxu0 %v8554_v29  ;;  %v8627_v53 = vcombine.high %v4354_v13, %v4358_v59  ;;  %v4346_v19 = vld [vmem:[#allocation14 + $0xb08] sm:$0xff] }
 0x451   :  { %7278 = vmatprep.subr.bf16.mxu1 %v8419_v33  ;;  %7319 = vmatprep.subr.bf16.mxu0 %v8547_v35  ;;  %v4350_v29 = vld [vmem:[#allocation14 + $0xb28] sm:$0xff]  ;;  %v8498_v33 = vcombine.low %v4226_v22, %v4230_v54  ;;  %v8626_v35 = vcombine.low %v4354_v13, %v4358_v59 }
 0x452   :  { %v8619_v36 = vcombine.high %v4346_v19, %v4350_v29  ;;  %v4206_v3 = vld [vmem:[#allocation14 + $0x6a8] sm:$0xff] }
 0x453   :  { %v8475_v50 = vcombine.high %v4202_v47, %v4206_v3  ;;  %v4194_v51 = vld [vmem:[#allocation14 + $0x648] sm:$0xff] }
 0x454   :  { %7279 = vmatpush1.bf16.msra.mxu1 %v8418_v41  ;;  %7320 = vmatpush1.bf16.msra.mxu0 %v8546_v43  ;;  %v4338_v41 = vld [vmem:[#allocation14 + $0xac8] sm:$0xff] }
 0x455   :  { %7280 = vmatprep.subr.bf16.mxu1 %v8411_v44  ;;  %7321 = vmatprep.subr.bf16.mxu0 %v8539_v58  ;;  %v4342_v43 = vld [vmem:[#allocation14 + $0xae8] sm:$0xff]  ;;  %v8490_v44 = vcombine.low %v4218_v26, %v4222_v45  ;;  %v8618_v58 = vcombine.low %v4346_v19, %v4350_v29 }
 0x456   :  { %v8611_v11 = vcombine.high %v4338_v41, %v4342_v43  ;;  %v4198_v52 = vld [vmem:[#allocation14 + $0x668] sm:$0xff] }
 0x457   :  { %v8467_v57 = vcombine.high %v4194_v51, %v4198_v52  ;;  %v4186_v60 = vld [vmem:[#allocation14 + $0x608] sm:$0xff] }
 0x458   :  { %7281 = vmatpush1.bf16.msra.mxu1 %v8410_v30  ;;  %7322 = vmatpush1.bf16.msra.mxu0 %v8538_v34  ;;  %v4330_v30 = vld [vmem:[#allocation14 + $0xa88] sm:$0xff] }
 0x459   :  { %7282 = vmatprep.subr.bf16.mxu1 %v8403_v37  ;;  %7323 = vmatprep.subr.bf16.mxu0 %v8531_v48  ;;  %v4334_v34 = vld [vmem:[#allocation14 + $0xaa8] sm:$0xff]  ;;  %v8482_v37 = vcombine.low %v4210_v40, %v4214_v56  ;;  %v8610_v48 = vcombine.low %v4338_v41, %v4342_v43 }
 0x45a   :  { %v8603_v38 = vcombine.high %v4330_v30, %v4334_v34  ;;  %v4190_v61 = vld [vmem:[#allocation14 + $0x628] sm:$0xff] }
 0x45b   :  { %v8459_v5 = vcombine.high %v4186_v60, %v4190_v61  ;;  %v4434_v10 = vld [vmem:[#allocation14 + $0xdc8] sm:$0xff] }
 0x45c   :  { %7283 = vmatpush1.bf16.msra.mxu1 %v8402_v15  ;;  %7324 = vmatpush1.bf16.msra.mxu0 %v8530_v9  ;;  %v4322_v15 = vld [vmem:[#allocation14 + $0xa48] sm:$0xff] }
 0x45d   :  { %7284 = vmatprep.subr.bf16.mxu1 %v8395_v1  ;;  %7325 = vmatprep.subr.bf16.mxu0 %v8523_v2  ;;  %v4326_v9 = vld [vmem:[#allocation14 + $0xa68] sm:$0xff]  ;;  %v8474_v1 = vcombine.low %v4202_v47, %v4206_v3  ;;  %v8602_v2 = vcombine.low %v4330_v30, %v4334_v34  ;;  %v4027_v47 = vld [vmem:[#allocation14 + $0x110] sm:$0xff] }
 0x45e   :  { %v8595_v7 = vcombine.high %v4322_v15, %v4326_v9  ;;  %v4438_v49 = vld [vmem:[#allocation14 + $0xde8] sm:$0xff]  ;;  %v4031_v3 = vld [vmem:[#allocation14 + $0x130] sm:$0xff] }
 0x45f   :  { %v8707_v22 = vcombine.high %v4434_v10, %v4438_v49  ;;  %v4426_v13 = vld [vmem:[#allocation14 + $0xd88] sm:$0xff] }
 0x460   :  { %7285 = vmatpush1.bf16.msra.mxu1 %v8394_v63  ;;  %7326 = vmatpush1.bf16.msra.mxu0 %v8522_v62  ;;  %v4314_v63 = vld [vmem:[#allocation14 + $0xa08] sm:$0xff] }
 0x461   :  { %7286 = vmatprep.subr.bf16.mxu1 %v8515_v12  ;;  %7327 = vmatprep.subr.bf16.mxu0 %v8643_v21  ;;  %v4318_v62 = vld [vmem:[#allocation14 + $0xa28] sm:$0xff]  ;;  %v8466_v12 = vcombine.low %v4194_v51, %v4198_v52  ;;  %v8594_v21 = vcombine.low %v4322_v15, %v4326_v9  ;;  %v4019_v51 = vld [vmem:[#allocation14 + $0xd0] sm:$0xff]  ;;  %v8300_v9 = vcombine.low %v4027_v47, %v4031_v3 }
 0x462   :  { %v8587_v14 = vcombine.high %v4314_v63, %v4318_v62  ;;  %v4430_v59 = vld [vmem:[#allocation14 + $0xda8] sm:$0xff]  ;;  %v4023_v52 = vld [vmem:[#allocation14 + $0xf0] sm:$0xff] }
 0x463   :  { %v8699_v26 = vcombine.high %v4426_v13, %v4430_v59  ;;  %v4418_v19 = vld [vmem:[#allocation14 + $0xd48] sm:$0xff]  ;;  %v8698_v40 = vcombine.low %v4426_v13, %v4430_v59  ;;  %v3995_v13 = vld [vmem:[#allocation14 + $0x10] sm:$0xff] }
 0x464   :  { %7287 = vmatpush2.bf16.msra.mxu1 %v8514_v16  ;;  %7328 = vmatpush2.bf16.msra.mxu0 %v8642_v6  ;;  %v4051_v16 = vld [vmem:[#allocation14 + $0x1d0] sm:$0xff]  ;;  %v4422_v29 = vld [vmem:[#allocation14 + $0xd68] sm:$0xff] }
 0x465   :  { %7288 = vmatprep.subr.bf16.mxu1 %v8507_v27  ;;  %7329 = vmatprep.subr.bf16.mxu0 %v8635_v20  ;;  %v4055_v6 = vld [vmem:[#allocation14 + $0x1f0] sm:$0xff]  ;;  %v8458_v27 = vcombine.low %v4186_v60, %v4190_v61  ;;  %v8586_v20 = vcombine.low %v4314_v63, %v4318_v62  ;;  %v8691_v43 = vcombine.high %v4418_v19, %v4422_v29 }
 0x466   :  { %v8325_v54 = vcombine.high %v4051_v16, %v4055_v6  ;;  %v8690_v30 = vcombine.low %v4418_v19, %v4422_v29  ;;  %v4011_v60 = vld [vmem:[#allocation14 + $0x90] sm:$0xff]  ;;  %v8292_v62 = vcombine.low %v4019_v51, %v4023_v52 }
 0x467   :  { %v4015_v61 = vld [vmem:[#allocation14 + $0xb0] sm:$0xff] }
 0x468   :  { %7289 = vmatpush2.bf16.msra.mxu1 %v8506_v42  ;;  %7330 = vmatpush2.bf16.msra.mxu0 %v8634_v24  ;;  %v4043_v42 = vld [vmem:[#allocation14 + $0x190] sm:$0xff] }
 0x469   :  { %7290 = vmatprep.subr.bf16.mxu1 %v8499_v25  ;;  %7331 = vmatprep.subr.bf16.mxu0 %v8627_v53  ;;  %v4047_v24 = vld [vmem:[#allocation14 + $0x1b0] sm:$0xff]  ;;  %v8706_v25 = vcombine.low %v4434_v10, %v4438_v49  ;;  %v8324_v53 = vcombine.low %v4051_v16, %v4055_v6  ;;  %v8284_v6 = vcombine.low %v4011_v60, %v4015_v61 }
 0x46a   :  { %v8317_v45 = vcombine.high %v4043_v42, %v4047_v24  ;;  %v8316_v41 = vcombine.low %v4043_v42, %v4047_v24  ;;  %v4003_v10 = vld [vmem:[#allocation14 + $0x50] sm:$0xff] }
 0x46b   :  { %v4007_v49 = vld [vmem:[#allocation14 + $0x70] sm:$0xff] }
 0x46c   :  { %7291 = vmatpush2.bf16.msra.mxu1 %v8498_v33  ;;  %7332 = vmatpush2.bf16.msra.mxu0 %v8626_v35  ;;  %v4035_v35 = vld [vmem:[#allocation14 + $0x150] sm:$0xff]  ;;  %v8276_v24 = vcombine.low %v4003_v10, %v4007_v49 }
 0x46d   :  { %7292 = vmatprep.subr.bf16.mxu1 %v8491_v31  ;;  %7333 = vmatprep.subr.bf16.mxu0 %v8619_v36  ;;  %v4039_v31 = vld [vmem:[#allocation14 + $0x170] sm:$0xff] }
 0x46e   :  { %v3999_v59 = vld [vmem:[#allocation14 + $0x30] sm:$0xff] }
 0x46f   :  { %v4115_v19 = vld [vmem:[#allocation14 + $0x3d0] sm:$0xff] }
 0x470   :  { %7293 = vmatpush2.bf16.msra.mxu1 %v8490_v44  ;;  %7334 = vmatpush2.bf16.msra.mxu0 %v8618_v58  ;;  %v8309_v58 = vcombine.high %v4035_v35, %v4039_v31  ;;  %v4119_v29 = vld [vmem:[#allocation14 + $0x3f0] sm:$0xff] }
 0x471   :  { %7294 = vmatprep.subr.bf16.mxu1 %v8483_v46  ;;  %7335 = vmatprep.subr.bf16.mxu0 %v8611_v11  ;;  %v4410_v46 = vld [vmem:[#allocation14 + $0xd08] sm:$0xff] }
 0x472   :  { %v4414_v11 = vld [vmem:[#allocation14 + $0xd28] sm:$0xff] }
 0x473   :  { %v8682_v15 = vcombine.low %v4410_v46, %v4414_v11 }
 0x474   :  { %7295 = vmatpush2.bf16.msra.mxu1 %v8482_v37  ;;  %7336 = vmatpush2.bf16.msra.mxu0 %v8610_v48  ;;  %v8308_v37 = vcombine.low %v4035_v35, %v4039_v31  ;;  %v8683_v48 = vcombine.high %v4410_v46, %v4414_v11  ;;  %v8268_v35 = vcombine.low %v3995_v13, %v3999_v59 }
 0x475   :  { %7296 = vmatprep.subr.bf16.mxu1 %v8475_v50  ;;  %7337 = vmatprep.subr.bf16.mxu0 %v8603_v38  ;;  %v8301_v50 = vcombine.high %v4027_v47, %v4031_v3  ;;  %v4402_v38 = vld [vmem:[#allocation14 + $0xcc8] sm:$0xff]  ;;  %v8388_v11 = vcombine.low %v4115_v19, %v4119_v29 }
 0x476   :  { %v4482_v3 = vld [vmem:[#allocation14 + $0xf48] sm:$0xff] }
 0x478   :  { %7297 = vmatpush2.bf16.msra.mxu1 %v8474_v1  ;;  %7338 = vmatpush2.bf16.msra.mxu0 %v8602_v2  ;;  %v8293_v2 = vcombine.high %v4019_v51, %v4023_v52  ;;  %v4474_v51 = vld [vmem:[#allocation14 + $0xf08] sm:$0xff] }
 0x479   :  { %7298 = vmatprep.subr.bf16.mxu1 %v8467_v57  ;;  %7339 = vmatprep.subr.bf16.mxu0 %v8595_v7  ;;  %v4394_v57 = vld [vmem:[#allocation14 + $0xc88] sm:$0xff] }
 0x47a   :  { %v4398_v7 = vld [vmem:[#allocation14 + $0xca8] sm:$0xff] }
 0x47b   :  { %v8666_v16 = vcombine.low %v4394_v57, %v4398_v7  ;;  %v4478_v52 = vld [vmem:[#allocation14 + $0xf28] sm:$0xff] }
 0x47c   :  { %7299 = vmatpush2.bf16.msra.mxu1 %v8466_v12  ;;  %7340 = vmatpush2.bf16.msra.mxu0 %v8594_v21  ;;  %v8667_v12 = vcombine.high %v4394_v57, %v4398_v7  ;;  %v8285_v21 = vcombine.high %v4011_v60, %v4015_v61  ;;  %v8747_v57 = vcombine.high %v4474_v51, %v4478_v52  ;;  %v4466_v60 = vld [vmem:[#allocation14 + $0xec8] sm:$0xff] }
 0x47d   :  { %7300 = vmatprep.subr.bf16.mxu1 %v8459_v5  ;;  %7341 = vmatprep.subr.bf16.mxu0 %v8587_v14  ;;  %v4386_v5 = vld [vmem:[#allocation14 + $0xc48] sm:$0xff] }
 0x47e   :  { %v4390_v14 = vld [vmem:[#allocation14 + $0xc68] sm:$0xff] }
 0x47f   :  { %v8658_v42 = vcombine.low %v4386_v5, %v4390_v14  ;;  %v4470_v61 = vld [vmem:[#allocation14 + $0xee8] sm:$0xff] }
 0x480   :  { %7301 = vmatpush2.bf16.msra.mxu1 %v8458_v27  ;;  %7342 = vmatpush2.bf16.msra.mxu0 %v8586_v20  ;;  %v8659_v27 = vcombine.high %v4386_v5, %v4390_v14  ;;  %v8277_v20 = vcombine.high %v4003_v10, %v4007_v49  ;;  %v8739_v5 = vcombine.high %v4466_v60, %v4470_v61  ;;  %v4458_v10 = vld [vmem:[#allocation14 + $0xe88] sm:$0xff] }
 0x481   :  { %7352 = vmatprep.subr.bf16.mxu1 %v8707_v22  ;;  %7393 = vmatprep.subr.bf16.mxu0 %v8325_v54  ;;  %v4378_v22 = vld [vmem:[#allocation14 + $0xc08] sm:$0xff] }
 0x482   :  { %v4382_v54 = vld [vmem:[#allocation14 + $0xc28] sm:$0xff] }
 0x483   :  { %7303 = vmatmul.mubr.bf16.vlgmr.msra.gmra.mxu1 %v9617_v55  ;;  %7344 = vmatmul.mubr.bf16.vlgmr.msra.gmra.mxu0 %v9637_v28  ;;  %v7140_v33 = vpop.f32.mrf.mxu1  ;;  %v4462_v49 = vld [vmem:[#allocation14 + $0xea8] sm:$0xff] }
 0x484   :  { %v9670_v36 = vadd.f32 %v7140_v33, %v9658_v4  ;;  %7353 = vmatpush1.bf16.msra.mxu1 %v8706_v25  ;;  %7384 = vmatprep.mubr.bf16.mxu1 %v9651_v39  ;;  %v8651_v25 = vcombine.high %v4378_v22, %v4382_v54  ;;  %v8650_v33 = vcombine.low %v4378_v22, %v4382_v54 }
 0x485   :  { %7394 = vmatpush1.bf16.msra.mxu0 %v8324_v53  ;;  %7425 = vmatprep.mubr.bf16.mxu0 %v9585_v18  ;;  %v7142_v56 = vpop.f32.mrf.mxu1  ;;  %v8269_v53 = vcombine.high %v3995_v13, %v3999_v59  ;;  %v8731_v22 = vcombine.high %v4458_v10, %v4462_v49  ;;  %v4450_v13 = vld [vmem:[#allocation14 + $0xe48] sm:$0xff] }
 0x486   :  { %v9675_v44 = vadd.f32 %v7142_v56, %v9665_v8  ;;  %7354 = vmatprep.subr.bf16.mxu1 %v8699_v26  ;;  %7395 = vmatprep.subr.bf16.mxu0 %v8317_v45  ;;  %v4406_v8 = vld [vmem:[#allocation14 + $0xce8] sm:$0xff] }
 0x487   :  { %v7144_v4 = vpop.f32.mrf.mxu1  ;;  %v8675_v1 = vcombine.high %v4402_v38, %v4406_v8  ;;  %v8674_v63 = vcombine.low %v4402_v38, %v4406_v8  ;;  %v4498_v26 = vld [vmem:[#allocation14 + $0xfc8] sm:$0xff] }
 0x488   :  { %7355 = vmatpush1.bf16.msra.mxu1 %v8698_v40  ;;  %v4502_v45 = vld [vmem:[#allocation14 + $0xfe8] sm:$0xff]  ;;  %v8389_v40 = vcombine.high %v4115_v19, %v4119_v29 }
 0x489   :  { %7396 = vmatpush1.bf16.msra.mxu0 %v8316_v41  ;;  %v7145_v34 = vpop.f32.mrf.mxu1  ;;  %7356 = vmatprep.subr.bf16.mxu1 %v8691_v43  ;;  %v8771_v31 = vcombine.high %v4498_v26, %v4502_v45  ;;  %v4490_v56 = vld [vmem:[#allocation14 + $0xf88] sm:$0xff]  ;;  %v4107_v43 = vld [vmem:[#allocation14 + $0x390] sm:$0xff]  ;;  %v8770_v46 = vcombine.low %v4498_v26, %v4502_v45 }
 0x48a   :  { %7397 = vmatprep.subr.bf16.mxu0 %v8309_v58  ;;  %v4494_v41 = vld [vmem:[#allocation14 + $0xfa8] sm:$0xff]  ;;  %v4111_v58 = vld [vmem:[#allocation14 + $0x3b0] sm:$0xff] }
 0x48b   :  { %v8763_v4 = vcombine.high %v4490_v56, %v4494_v41  ;;  %v8381_v47 = vcombine.high %v4107_v43, %v4111_v58  ;;  %v4099_v34 = vld [vmem:[#allocation14 + $0x350] sm:$0xff]  ;;  %v4454_v59 = vld [vmem:[#allocation14 + $0xe68] sm:$0xff] }
 0x48c   :  { %7357 = vmatpush1.bf16.msra.mxu1 %v8690_v30  ;;  %v4486_v30 = vld [vmem:[#allocation14 + $0xf68] sm:$0xff]  ;;  %v8723_v26 = vcombine.high %v4450_v13, %v4454_v59 }
 0x48d   :  { %7398 = vmatpush1.bf16.msra.mxu0 %v8308_v37  ;;  %7358 = vmatprep.subr.bf16.mxu1 %v8683_v48  ;;  %v4103_v37 = vld [vmem:[#allocation14 + $0x370] sm:$0xff]  ;;  %v8762_v48 = vcombine.low %v4490_v56, %v4494_v41  ;;  %v8755_v38 = vcombine.high %v4482_v3, %v4486_v30  ;;  %v4442_v19 = vld [vmem:[#allocation14 + $0xe08] sm:$0xff] }
 0x48e   :  { %7399 = vmatprep.subr.bf16.mxu0 %v8301_v50  ;;  %v8380_v50 = vcombine.low %v4107_v43, %v4111_v58  ;;  %v8373_v8 = vcombine.high %v4099_v34, %v4103_v37  ;;  %v4446_v29 = vld [vmem:[#allocation14 + $0xe28] sm:$0xff]  ;;  %v4179_v43 = vld [vmem:[#allocation14 + $0x5d0] sm:$0xff] }
 0x48f   :  { %v8715_v56 = vcombine.high %v4442_v19, %v4446_v29  ;;  %v4183_v58 = vld [vmem:[#allocation14 + $0x5f0] sm:$0xff] }
 0x490   :  { %7359 = vmatpush1.bf16.msra.mxu1 %v8682_v15  ;;  %v4091_v15 = vld [vmem:[#allocation14 + $0x310] sm:$0xff] }
 0x491   :  { %7400 = vmatpush1.bf16.msra.mxu0 %v8300_v9  ;;  %7360 = vmatprep.subr.bf16.mxu1 %v8675_v1  ;;  %v4095_v9 = vld [vmem:[#allocation14 + $0x330] sm:$0xff]  ;;  %v8754_v1 = vcombine.low %v4482_v3, %v4486_v30  ;;  %v8453_v3 = vcombine.high %v4179_v43, %v4183_v58 }
 0x492   :  { %7401 = vmatprep.subr.bf16.mxu0 %v8293_v2  ;;  %v8372_v2 = vcombine.low %v4099_v34, %v4103_v37  ;;  %v8365_v7 = vcombine.high %v4091_v15, %v4095_v9  ;;  %v4171_v34 = vld [vmem:[#allocation14 + $0x590] sm:$0xff] }
 0x493   :  { %v4175_v37 = vld [vmem:[#allocation14 + $0x5b0] sm:$0xff] }
 0x494   :  { %7361 = vmatpush1.bf16.msra.mxu1 %v8674_v63  ;;  %v4083_v63 = vld [vmem:[#allocation14 + $0x2d0] sm:$0xff] }
 0x495   :  { %7402 = vmatpush1.bf16.msra.mxu0 %v8292_v62  ;;  %7362 = vmatprep.subr.bf16.mxu1 %v8667_v12  ;;  %v4087_v62 = vld [vmem:[#allocation14 + $0x2f0] sm:$0xff]  ;;  %v8746_v12 = vcombine.low %v4474_v51, %v4478_v52  ;;  %v8445_v51 = vcombine.high %v4171_v34, %v4175_v37 }
 0x496   :  { %7403 = vmatprep.subr.bf16.mxu0 %v8285_v21  ;;  %v8364_v21 = vcombine.low %v4091_v15, %v4095_v9  ;;  %v8357_v14 = vcombine.high %v4083_v63, %v4087_v62  ;;  %v4163_v52 = vld [vmem:[#allocation14 + $0x550] sm:$0xff] }
 0x497   :  { %v4167_v15 = vld [vmem:[#allocation14 + $0x570] sm:$0xff] }
 0x498   :  { %7363 = vmatpush1.bf16.msra.mxu1 %v8666_v16  ;;  %v4075_v16 = vld [vmem:[#allocation14 + $0x290] sm:$0xff] }
 0x499   :  { %7404 = vmatpush1.bf16.msra.mxu0 %v8284_v6  ;;  %7364 = vmatprep.subr.bf16.mxu1 %v8659_v27  ;;  %v4079_v6 = vld [vmem:[#allocation14 + $0x2b0] sm:$0xff]  ;;  %v8738_v27 = vcombine.low %v4466_v60, %v4470_v61 }
 0x49a   :  { %7405 = vmatprep.subr.bf16.mxu0 %v8277_v20  ;;  %v8356_v20 = vcombine.low %v4083_v63, %v4087_v62  ;;  %v8349_v54 = vcombine.high %v4075_v16, %v4079_v6  ;;  %v8437_v63 = vcombine.high %v4163_v52, %v4167_v15 }
 0x49c   :  { %7365 = vmatpush1.bf16.msra.mxu1 %v8658_v42  ;;  %v4067_v42 = vld [vmem:[#allocation14 + $0x250] sm:$0xff] }
 0x49d   :  { %7406 = vmatpush1.bf16.msra.mxu0 %v8276_v24  ;;  %7366 = vmatprep.subr.bf16.mxu1 %v8651_v25  ;;  %v4071_v24 = vld [vmem:[#allocation14 + $0x270] sm:$0xff]  ;;  %v8730_v25 = vcombine.low %v4458_v10, %v4462_v49  ;;  %v8436_v49 = vcombine.low %v4163_v52, %v4167_v15 }
 0x49e   :  { %7407 = vmatprep.subr.bf16.mxu0 %v8269_v53  ;;  %v8348_v53 = vcombine.low %v4075_v16, %v4079_v6  ;;  %v8341_v45 = vcombine.high %v4067_v42, %v4071_v24  ;;  %v4287_v10 = vld [vmem:[#allocation14 + $0x930] sm:$0xff] }
 0x49f   :  { %v4247_v52 = vld [vmem:[#allocation14 + $0x7f0] sm:$0xff] }
 0x4a0   :  { %7367 = vmatpush1.bf16.msra.mxu1 %v8650_v33  ;;  %v4059_v33 = vld [vmem:[#allocation14 + $0x210] sm:$0xff] }
 0x4a1   :  { %7408 = vmatpush1.bf16.msra.mxu0 %v8268_v35  ;;  %7368 = vmatprep.subr.bf16.mxu1 %v8771_v31  ;;  %v4063_v35 = vld [vmem:[#allocation14 + $0x230] sm:$0xff]  ;;  %v8722_v31 = vcombine.low %v4450_v13, %v4454_v59 }
 0x4a2   :  { %7409 = vmatprep.subr.bf16.mxu0 %v8389_v40  ;;  %v8340_v40 = vcombine.low %v4067_v42, %v4071_v24  ;;  %v8333_v41 = vcombine.high %v4059_v33, %v4063_v35  ;;  %v4275_v13 = vld [vmem:[#allocation14 + $0x8d0] sm:$0xff] }
 0x4a3   :  { %v4279_v59 = vld [vmem:[#allocation14 + $0x8f0] sm:$0xff] }
 0x4a4   :  { %7369 = vmatpush2.bf16.msra.mxu1 %v8770_v46  ;;  %v4307_v46 = vld [vmem:[#allocation14 + $0x9d0] sm:$0xff] }
 0x4a5   :  { %7410 = vmatpush2.bf16.msra.mxu0 %v8388_v11  ;;  %7370 = vmatprep.subr.bf16.mxu1 %v8763_v4  ;;  %v4311_v11 = vld [vmem:[#allocation14 + $0x9f0] sm:$0xff]  ;;  %v8714_v4 = vcombine.low %v4442_v19, %v4446_v29 }
 0x4a6   :  { %7411 = vmatprep.subr.bf16.mxu0 %v8381_v47  ;;  %v8332_v47 = vcombine.low %v4059_v33, %v4063_v35  ;;  %v8581_v30 = vcombine.high %v4307_v46, %v4311_v11  ;;  %v4267_v19 = vld [vmem:[#allocation14 + $0x890] sm:$0xff]  ;;  %v8548_v35 = vcombine.low %v4275_v13, %v4279_v59 }
 0x4a7   :  { %v4271_v29 = vld [vmem:[#allocation14 + $0x8b0] sm:$0xff] }
 0x4a8   :  { %7371 = vmatpush2.bf16.msra.mxu1 %v8762_v48  ;;  %v8452_v48 = vcombine.low %v4179_v43, %v4183_v58  ;;  %v4259_v43 = vld [vmem:[#allocation14 + $0x850] sm:$0xff] }
 0x4a9   :  { %7412 = vmatpush2.bf16.msra.mxu0 %v8380_v50  ;;  %7372 = vmatprep.subr.bf16.mxu1 %v8755_v38  ;;  %v4299_v50 = vld [vmem:[#allocation14 + $0x990] sm:$0xff] }
 0x4aa   :  { %7413 = vmatprep.subr.bf16.mxu0 %v8373_v8  ;;  %v4303_v38 = vld [vmem:[#allocation14 + $0x9b0] sm:$0xff]  ;;  %v8580_v8 = vcombine.low %v4307_v46, %v4311_v11  ;;  %v8540_v11 = vcombine.low %v4267_v19, %v4271_v29 }
 0x4ab   :  { %v8572_v61 = vcombine.low %v4299_v50, %v4303_v38  ;;  %v4263_v58 = vld [vmem:[#allocation14 + $0x870] sm:$0xff] }
 0x4ac   :  { %7373 = vmatpush2.bf16.msra.mxu1 %v8754_v1  ;;  %v8573_v1 = vcombine.high %v4299_v50, %v4303_v38  ;;  %v8532_v50 = vcombine.low %v4259_v43, %v4263_v58  ;;  %v4371_v15 = vld [vmem:[#allocation14 + $0xbd0] sm:$0xff] }
 0x4ad   :  { %7414 = vmatpush2.bf16.msra.mxu0 %v8372_v2  ;;  %7374 = vmatprep.subr.bf16.mxu1 %v8747_v57  ;;  %v4291_v2 = vld [vmem:[#allocation14 + $0x950] sm:$0xff] }
 0x4ae   :  { %7415 = vmatprep.subr.bf16.mxu0 %v8365_v7  ;;  %v4295_v57 = vld [vmem:[#allocation14 + $0x970] sm:$0xff]  ;;  %v8444_v7 = vcombine.low %v4171_v34, %v4175_v37 }
 0x4af   :  { %v8565_v62 = vcombine.high %v4291_v2, %v4295_v57  ;;  %v8564_v6 = vcombine.low %v4291_v2, %v4295_v57  ;;  %v4251_v34 = vld [vmem:[#allocation14 + $0x810] sm:$0xff] }
 0x4b0   :  { %7375 = vmatpush2.bf16.msra.mxu1 %v8746_v12  ;;  %v4155_v12 = vld [vmem:[#allocation14 + $0x510] sm:$0xff] }
 0x4b1   :  { %7416 = vmatpush2.bf16.msra.mxu0 %v8364_v21  ;;  %7376 = vmatprep.subr.bf16.mxu1 %v8739_v5  ;;  %v4159_v21 = vld [vmem:[#allocation14 + $0x530] sm:$0xff] }
 0x4b2   :  { %7417 = vmatprep.subr.bf16.mxu0 %v8357_v14  ;;  %v4283_v14 = vld [vmem:[#allocation14 + $0x910] sm:$0xff]  ;;  %v8428_v42 = vcombine.low %v4155_v12, %v4159_v21 }
 0x4b3   :  { %v8556_v24 = vcombine.low %v4283_v14, %v4287_v10  ;;  %v4255_v37 = vld [vmem:[#allocation14 + $0x830] sm:$0xff] }
 0x4b4   :  { %7377 = vmatpush2.bf16.msra.mxu1 %v8738_v27  ;;  %v8429_v27 = vcombine.high %v4155_v12, %v4159_v21  ;;  %v8524_v57 = vcombine.low %v4251_v34, %v4255_v37  ;;  %v4363_v12 = vld [vmem:[#allocation14 + $0xb90] sm:$0xff] }
 0x4b5   :  { %7418 = vmatpush2.bf16.msra.mxu0 %v8356_v20  ;;  %7378 = vmatprep.subr.bf16.mxu1 %v8731_v22  ;;  %v8557_v20 = vcombine.high %v4283_v14, %v4287_v10  ;;  %v4147_v22 = vld [vmem:[#allocation14 + $0x4d0] sm:$0xff] }
 0x4b6   :  { %7419 = vmatprep.subr.bf16.mxu0 %v8349_v54  ;;  %v4151_v54 = vld [vmem:[#allocation14 + $0x4f0] sm:$0xff] }
 0x4b7   :  { %v8420_v33 = vcombine.low %v4147_v22, %v4151_v54  ;;  %v4367_v21 = vld [vmem:[#allocation14 + $0xbb0] sm:$0xff] }
 0x4b8   :  { %7379 = vmatpush2.bf16.msra.mxu1 %v8730_v25  ;;  %v8421_v25 = vcombine.high %v4147_v22, %v4151_v54  ;;  %v8636_v54 = vcombine.low %v4363_v12, %v4367_v21 }
 0x4b9   :  { %7420 = vmatpush2.bf16.msra.mxu0 %v8348_v53  ;;  %7380 = vmatprep.subr.bf16.mxu1 %v8723_v26  ;;  %v8549_v53 = vcombine.high %v4275_v13, %v4279_v59  ;;  %v4139_v26 = vld [vmem:[#allocation14 + $0x490] sm:$0xff] }
 0x4ba   :  { %7421 = vmatprep.subr.bf16.mxu0 %v8341_v45  ;;  %v4143_v45 = vld [vmem:[#allocation14 + $0x4b0] sm:$0xff] }
 0x4bb   :  { %v8412_v46 = vcombine.low %v4139_v26, %v4143_v45 }
 0x4bc   :  { %7381 = vmatpush2.bf16.msra.mxu1 %v8722_v31  ;;  %v8413_v31 = vcombine.high %v4139_v26, %v4143_v45 }
 0x4bd   :  { %7422 = vmatpush2.bf16.msra.mxu0 %v8340_v40  ;;  %7382 = vmatprep.subr.bf16.mxu1 %v8715_v56  ;;  %v8541_v40 = vcombine.high %v4267_v19, %v4271_v29  ;;  %v4131_v56 = vld [vmem:[#allocation14 + $0x450] sm:$0xff] }
 0x4be   :  { %7423 = vmatprep.subr.bf16.mxu0 %v8333_v41  ;;  %v4135_v41 = vld [vmem:[#allocation14 + $0x470] sm:$0xff] }
 0x4c0   :  { %7383 = vmatpush2.bf16.msra.mxu1 %v8714_v4  ;;  %v8405_v4 = vcombine.high %v4131_v56, %v4135_v41 }
 0x4c1   :  { %7424 = vmatpush2.bf16.msra.mxu0 %v8332_v47  ;;  %7434 = vmatprep.subr.bf16.mxu1 %v8453_v3  ;;  %v8533_v47 = vcombine.high %v4259_v43, %v4263_v58  ;;  %v4123_v3 = vld [vmem:[#allocation14 + $0x410] sm:$0xff] }
 0x4c2   :  { %7475 = vmatprep.subr.bf16.mxu0 %v8581_v30  ;;  %v4127_v30 = vld [vmem:[#allocation14 + $0x430] sm:$0xff] }
 0x4c3   :  { %7385 = vmatmul.mubr.bf16.vlgmr.msra.gmra.mxu1 %v9653_v23  ;;  %v9678_v9 = vpop.f32.mrf.mxu0  ;;  %v8397_v38 = vcombine.high %v4123_v3, %v4127_v30  ;;  %v8396_v2 = vcombine.low %v4123_v3, %v4127_v30 }
 0x4c4   :  { %7426 = vmatmul.mubr.bf16.vlgmr.msra.gmra.mxu0 %v9591_v32  ;;  %7435 = vmatpush1.bf16.msra.mxu1 %v8452_v48  ;;  %v8404_v48 = vcombine.low %v4131_v56, %v4135_v41 }
 0x4c5   :  { %7466 = vmatprep.mubr.bf16.mxu1 %v9611_v0  ;;  %7476 = vmatpush1.bf16.msra.mxu0 %v8580_v8  ;;  %v9682_v60 = vpop.f32.mrf.mxu0  ;;  %v8525_v8 = vcombine.high %v4251_v34, %v4255_v37 }
 0x4c6   :  { %7507 = vmatprep.mubr.bf16.mxu0 %v9635_v17  ;;  %7436 = vmatprep.subr.bf16.mxu1 %v8445_v51  ;;  %v4243_v51 = vld [vmem:[#allocation14 + $0x7d0] sm:$0xff] }
 0x4c7   :  { %7477 = vmatprep.subr.bf16.mxu0 %v8573_v1  ;;  %v7185_v5 = vpop.f32.mrf.mxu0  ;;  %v4375_v1 = vld [vmem:[#allocation14 + $0xbf0] sm:$0xff] }
 0x4c8   :  { %7437 = vmatpush1.bf16.msra.mxu1 %v8444_v7  ;;  %v8517_v7 = vcombine.high %v4243_v51, %v4247_v52  ;;  %v8516_v5 = vcombine.low %v4243_v51, %v4247_v52  ;;  %v8644_v14 = vcombine.low %v4371_v15, %v4375_v1 }
 0x4c9   :  { %7478 = vmatpush1.bf16.msra.mxu0 %v8572_v61  ;;  %v7186_v16 = vpop.f32.mrf.mxu0  ;;  %7438 = vmatprep.subr.bf16.mxu1 %v8437_v63  ;;  %v8645_v61 = vcombine.high %v4371_v15, %v4375_v1  ;;  %v4235_v63 = vld [vmem:[#allocation14 + $0x790] sm:$0xff] }
 0x4ca   :  { %7479 = vmatprep.subr.bf16.mxu0 %v8565_v62  ;;  %v4239_v62 = vld [vmem:[#allocation14 + $0x7b0] sm:$0xff] }
 0x4cb   :  { %v8509_v10 = vcombine.high %v4235_v63, %v4239_v62  ;;  %v4227_v16 = vld [vmem:[#allocation14 + $0x750] sm:$0xff]  ;;  %v8508_v22 = vcombine.low %v4235_v63, %v4239_v62 }
 0x4cc   :  { %7439 = vmatpush1.bf16.msra.mxu1 %v8436_v49  ;;  %v8637_v49 = vcombine.high %v4363_v12, %v4367_v21 }
 0x4cd   :  { %7480 = vmatpush1.bf16.msra.mxu0 %v8564_v6  ;;  %7440 = vmatprep.subr.bf16.mxu1 %v8429_v27  ;;  %v4231_v6 = vld [vmem:[#allocation14 + $0x770] sm:$0xff] }
 0x4ce   :  { %7481 = vmatprep.subr.bf16.mxu0 %v8557_v20  ;;  %v4355_v27 = vld [vmem:[#allocation14 + $0xb50] sm:$0xff]  ;;  %v8501_v13 = vcombine.high %v4227_v16, %v4231_v6  ;;  %v8500_v26 = vcombine.low %v4227_v16, %v4231_v6 }
 0x4cf   :  { %v4359_v20 = vld [vmem:[#allocation14 + $0xb70] sm:$0xff] }
 0x4d0   :  { %7441 = vmatpush1.bf16.msra.mxu1 %v8428_v42  ;;  %v8629_v59 = vcombine.high %v4355_v27, %v4359_v20  ;;  %v4219_v42 = vld [vmem:[#allocation14 + $0x710] sm:$0xff]  ;;  %v8628_v45 = vcombine.low %v4355_v27, %v4359_v20 }
 0x4d1   :  { %7482 = vmatpush1.bf16.msra.mxu0 %v8556_v24  ;;  %7442 = vmatprep.subr.bf16.mxu1 %v8421_v25  ;;  %v4223_v24 = vld [vmem:[#allocation14 + $0x730] sm:$0xff] }
 0x4d2   :  { %7483 = vmatprep.subr.bf16.mxu0 %v8549_v53  ;;  %v4347_v25 = vld [vmem:[#allocation14 + $0xb10] sm:$0xff]  ;;  %v8493_v19 = vcombine.high %v4219_v42, %v4223_v24  ;;  %v8492_v56 = vcombine.low %v4219_v42, %v4223_v24  ;;  %v4048_v42 = vld [vmem:[#allocation14 + $0x1b8] sm:$0xff] }
 0x4d3   :  { %v4351_v53 = vld [vmem:[#allocation14 + $0xb30] sm:$0xff] }
 0x4d4   :  { %7443 = vmatpush1.bf16.msra.mxu1 %v8420_v33  ;;  %v8621_v29 = vcombine.high %v4347_v25, %v4351_v53  ;;  %v4211_v33 = vld [vmem:[#allocation14 + $0x6d0] sm:$0xff]  ;;  %v8620_v41 = vcombine.low %v4347_v25, %v4351_v53  ;;  %v7182_v25 = vadd.f32 %v9678_v9, %v9670_v36 }
 0x4d5   :  { %7484 = vmatpush1.bf16.msra.mxu0 %v8548_v35  ;;  %7444 = vmatprep.subr.bf16.mxu1 %v8413_v31  ;;  %v4215_v35 = vld [vmem:[#allocation14 + $0x6f0] sm:$0xff] }
 0x4d6   :  { %7485 = vmatprep.subr.bf16.mxu0 %v8541_v40  ;;  %v4339_v31 = vld [vmem:[#allocation14 + $0xad0] sm:$0xff]  ;;  %v8485_v43 = vcombine.high %v4211_v33, %v4215_v35  ;;  %v8484_v3 = vcombine.low %v4211_v33, %v4215_v35  ;;  %v4036_v35 = vld [vmem:[#allocation14 + $0x158] sm:$0xff] }
 0x4d7   :  { %v4343_v40 = vld [vmem:[#allocation14 + $0xaf0] sm:$0xff] }
 0x4d8   :  { %7445 = vmatpush1.bf16.msra.mxu1 %v8412_v46  ;;  %v8613_v58 = vcombine.high %v4339_v31, %v4343_v40  ;;  %v4203_v46 = vld [vmem:[#allocation14 + $0x690] sm:$0xff]  ;;  %v8612_v30 = vcombine.low %v4339_v31, %v4343_v40  ;;  %v4040_v31 = vld [vmem:[#allocation14 + $0x178] sm:$0xff]  ;;  %v7184_v40 = vadd.f32 %v9682_v60, %v9675_v44 }
 0x4d9   :  { %7486 = vmatpush1.bf16.msra.mxu0 %v8540_v11  ;;  %7446 = vmatprep.subr.bf16.mxu1 %v8405_v4  ;;  %v4207_v11 = vld [vmem:[#allocation14 + $0x6b0] sm:$0xff] }
 0x4da   :  { %7487 = vmatprep.subr.bf16.mxu0 %v8533_v47  ;;  %v4331_v4 = vld [vmem:[#allocation14 + $0xa90] sm:$0xff]  ;;  %v8477_v34 = vcombine.high %v4203_v46, %v4207_v11  ;;  %v8476_v51 = vcombine.low %v4203_v46, %v4207_v11  ;;  %v8311_v11 = vcombine.high %v4036_v35, %v4040_v31 }
 0x4db   :  { %v4335_v47 = vld [vmem:[#allocation14 + $0xab0] sm:$0xff] }
 0x4dc   :  { %7447 = vmatpush1.bf16.msra.mxu1 %v8404_v48  ;;  %v8605_v37 = vcombine.high %v4331_v4, %v4335_v47  ;;  %v4195_v48 = vld [vmem:[#allocation14 + $0x650] sm:$0xff]  ;;  %v8604_v52 = vcombine.low %v4331_v4, %v4335_v47 }
 0x4dd   :  { %7488 = vmatpush1.bf16.msra.mxu0 %v8532_v50  ;;  %7448 = vmatprep.subr.bf16.mxu1 %v8397_v38  ;;  %v4199_v50 = vld [vmem:[#allocation14 + $0x670] sm:$0xff] }
 0x4de   :  { %7489 = vmatprep.subr.bf16.mxu0 %v8525_v8  ;;  %v4323_v38 = vld [vmem:[#allocation14 + $0xa50] sm:$0xff]  ;;  %v8469_v15 = vcombine.high %v4195_v48, %v4199_v50  ;;  %v8468_v63 = vcombine.low %v4195_v48, %v4199_v50  ;;  %v8310_v50 = vcombine.low %v4036_v35, %v4040_v31  ;;  %v4116_v31 = vld [vmem:[#allocation14 + $0x3d8] sm:$0xff] }
 0x4df   :  { %v4327_v8 = vld [vmem:[#allocation14 + $0xa70] sm:$0xff] }
 0x4e0   :  { %7449 = vmatpush1.bf16.msra.mxu1 %v8396_v2  ;;  %v8597_v1 = vcombine.high %v4323_v38, %v4327_v8  ;;  %v4187_v2 = vld [vmem:[#allocation14 + $0x610] sm:$0xff]  ;;  %v8596_v62 = vcombine.low %v4323_v38, %v4327_v8 }
 0x4e1   :  { %7490 = vmatpush1.bf16.msra.mxu0 %v8524_v57  ;;  %7450 = vmatprep.subr.bf16.mxu1 %v8517_v7  ;;  %v4191_v57 = vld [vmem:[#allocation14 + $0x630] sm:$0xff] }
 0x4e2   :  { %7491 = vmatprep.subr.bf16.mxu0 %v8645_v61  ;;  %v4315_v7 = vld [vmem:[#allocation14 + $0xa10] sm:$0xff]  ;;  %v8461_v12 = vcombine.high %v4187_v2, %v4191_v57  ;;  %v8460_v16 = vcombine.low %v4187_v2, %v4191_v57 }
 0x4e3   :  { %v4319_v61 = vld [vmem:[#allocation14 + $0xa30] sm:$0xff] }
 0x4e4   :  { %7451 = vmatpush2.bf16.msra.mxu1 %v8516_v5  ;;  %v8589_v21 = vcombine.high %v4315_v7, %v4319_v61  ;;  %v4435_v5 = vld [vmem:[#allocation14 + $0xdd0] sm:$0xff]  ;;  %v8588_v6 = vcombine.low %v4315_v7, %v4319_v61 }
 0x4e5   :  { %7492 = vmatpush2.bf16.msra.mxu0 %v8644_v14  ;;  %7452 = vmatprep.subr.bf16.mxu1 %v8509_v10  ;;  %v4439_v14 = vld [vmem:[#allocation14 + $0xdf0] sm:$0xff]  ;;  %v4052_v10 = vld [vmem:[#allocation14 + $0x1d8] sm:$0xff] }
 0x4e6   :  { %7493 = vmatprep.subr.bf16.mxu0 %v8637_v49  ;;  %v4056_v49 = vld [vmem:[#allocation14 + $0x1f8] sm:$0xff]  ;;  %v8709_v27 = vcombine.high %v4435_v5, %v4439_v14  ;;  %v4411_v44 = vld [vmem:[#allocation14 + $0xd10] sm:$0xff] }
 0x4e7   :  { %v8327_v20 = vcombine.high %v4052_v10, %v4056_v49  ;;  %v8326_v24 = vcombine.low %v4052_v10, %v4056_v49  ;;  %v4415_v60 = vld [vmem:[#allocation14 + $0xd30] sm:$0xff] }
 0x4e8   :  { %7453 = vmatpush2.bf16.msra.mxu1 %v8508_v22  ;;  %v4427_v22 = vld [vmem:[#allocation14 + $0xd90] sm:$0xff]  ;;  %v8685_v38 = vcombine.high %v4411_v44, %v4415_v60 }
 0x4e9   :  { %7494 = vmatpush2.bf16.msra.mxu0 %v8636_v54  ;;  %7454 = vmatprep.subr.bf16.mxu1 %v8501_v13  ;;  %v4431_v54 = vld [vmem:[#allocation14 + $0xdb0] sm:$0xff]  ;;  %v8708_v13 = vcombine.low %v4435_v5, %v4439_v14 }
 0x4ea   :  { %7495 = vmatprep.subr.bf16.mxu0 %v8629_v59  ;;  %v4044_v59 = vld [vmem:[#allocation14 + $0x198] sm:$0xff]  ;;  %v8701_v53 = vcombine.high %v4427_v22, %v4431_v54  ;;  %v8700_v36 = vcombine.low %v4427_v22, %v4431_v54  ;;  %v4403_v8 = vld [vmem:[#allocation14 + $0xcd0] sm:$0xff] }
 0x4eb   :  { %v8319_v33 = vcombine.high %v4044_v59, %v4048_v42  ;;  %v4395_v61 = vld [vmem:[#allocation14 + $0xc90] sm:$0xff] }
 0x4ec   :  { %7455 = vmatpush2.bf16.msra.mxu1 %v8500_v26  ;;  %v4419_v26 = vld [vmem:[#allocation14 + $0xd50] sm:$0xff] }
 0x4ed   :  { %7496 = vmatpush2.bf16.msra.mxu0 %v8628_v45  ;;  %7456 = vmatprep.subr.bf16.mxu1 %v8493_v19  ;;  %v4423_v45 = vld [vmem:[#allocation14 + $0xd70] sm:$0xff] }
 0x4ee   :  { %7497 = vmatprep.subr.bf16.mxu0 %v8621_v29  ;;  %v4387_v49 = vld [vmem:[#allocation14 + $0xc50] sm:$0xff] }
 0x4ef   :  { %v4503_v35 = vld [vmem:[#allocation14 + $0xff0] sm:$0xff] }
 0x4f0   :  { %7457 = vmatpush2.bf16.msra.mxu1 %v8492_v56 }
 0x4f1   :  { %7498 = vmatpush2.bf16.msra.mxu0 %v8620_v41  ;;  %7458 = vmatprep.subr.bf16.mxu1 %v8485_v43  ;;  %v8318_v43 = vcombine.low %v4044_v59, %v4048_v42  ;;  %v4379_v59 = vld [vmem:[#allocation14 + $0xc10] sm:$0xff] }
 0x4f2   :  { %7499 = vmatprep.subr.bf16.mxu0 %v8613_v58  ;;  %v8693_v58 = vcombine.high %v4419_v26, %v4423_v45  ;;  %v4383_v42 = vld [vmem:[#allocation14 + $0xc30] sm:$0xff] }
 0x4f4   :  { %7459 = vmatpush2.bf16.msra.mxu1 %v8484_v3  ;;  %v4028_v3 = vld [vmem:[#allocation14 + $0x118] sm:$0xff] }
 0x4f5   :  { %7500 = vmatpush2.bf16.msra.mxu0 %v8612_v30  ;;  %7460 = vmatprep.subr.bf16.mxu1 %v8477_v34  ;;  %v4032_v30 = vld [vmem:[#allocation14 + $0x138] sm:$0xff]  ;;  %v8692_v34 = vcombine.low %v4419_v26, %v4423_v45  ;;  %v8653_v45 = vcombine.high %v4379_v59, %v4383_v42 }
 0x4f6   :  { %7501 = vmatprep.subr.bf16.mxu0 %v8605_v37  ;;  %v8302_v2 = vcombine.low %v4028_v3, %v4032_v30 }
 0x4f8   :  { %7461 = vmatpush2.bf16.msra.mxu1 %v8476_v51  ;;  %v4407_v51 = vld [vmem:[#allocation14 + $0xcf0] sm:$0xff] }
 0x4f9   :  { %7502 = vmatpush2.bf16.msra.mxu0 %v8604_v52  ;;  %7462 = vmatprep.subr.bf16.mxu1 %v8469_v15  ;;  %v4020_v52 = vld [vmem:[#allocation14 + $0xd8] sm:$0xff]  ;;  %v8677_v57 = vcombine.high %v4403_v8, %v4407_v51 }
 0x4fa   :  { %7503 = vmatprep.subr.bf16.mxu0 %v8597_v1  ;;  %v4024_v15 = vld [vmem:[#allocation14 + $0xf8] sm:$0xff]  ;;  %v8684_v1 = vcombine.low %v4411_v44, %v4415_v60 }
 0x4fb   :  { %v8295_v7 = vcombine.high %v4020_v52, %v4024_v15  ;;  %v8294_v5 = vcombine.low %v4020_v52, %v4024_v15  ;;  %v4112_v44 = vld [vmem:[#allocation14 + $0x3b8] sm:$0xff]  ;;  %v4479_v52 = vld [vmem:[#allocation14 + $0xf30] sm:$0xff] }
 0x4fc   :  { %7463 = vmatpush2.bf16.msra.mxu1 %v8468_v63  ;;  %v4399_v63 = vld [vmem:[#allocation14 + $0xcb0] sm:$0xff]  ;;  %v4092_v15 = vld [vmem:[#allocation14 + $0x318] sm:$0xff] }
 0x4fd   :  { %7504 = vmatpush2.bf16.msra.mxu0 %v8596_v62  ;;  %7464 = vmatprep.subr.bf16.mxu1 %v8461_v12  ;;  %v4012_v62 = vld [vmem:[#allocation14 + $0x98] sm:$0xff]  ;;  %v8669_v14 = vcombine.high %v4395_v61, %v4399_v63 }
 0x4fe   :  { %7505 = vmatprep.subr.bf16.mxu0 %v8589_v21  ;;  %v4016_v12 = vld [vmem:[#allocation14 + $0xb8] sm:$0xff]  ;;  %v8676_v21 = vcombine.low %v4403_v8, %v4407_v51  ;;  %v4475_v51 = vld [vmem:[#allocation14 + $0xf10] sm:$0xff] }
 0x4ff   :  { %v8287_v10 = vcombine.high %v4012_v62, %v4016_v12  ;;  %v8286_v22 = vcombine.low %v4012_v62, %v4016_v12  ;;  %v4471_v62 = vld [vmem:[#allocation14 + $0xef0] sm:$0xff]  ;;  %v4084_v12 = vld [vmem:[#allocation14 + $0x2d8] sm:$0xff] }
 0x500   :  { %7465 = vmatpush2.bf16.msra.mxu1 %v8460_v16  ;;  %v4391_v16 = vld [vmem:[#allocation14 + $0xc70] sm:$0xff] }
 0x501   :  { %7506 = vmatpush2.bf16.msra.mxu0 %v8588_v6  ;;  %7516 = vmatprep.subr.bf16.mxu1 %v8709_v27  ;;  %v4004_v6 = vld [vmem:[#allocation14 + $0x58] sm:$0xff]  ;;  %v8661_v54 = vcombine.high %v4387_v49, %v4391_v16 }
 0x502   :  { %7557 = vmatprep.subr.bf16.mxu0 %v8327_v20  ;;  %v4008_v27 = vld [vmem:[#allocation14 + $0x78] sm:$0xff]  ;;  %v8668_v20 = vcombine.low %v4395_v61, %v4399_v63  ;;  %v4467_v63 = vld [vmem:[#allocation14 + $0xed0] sm:$0xff] }
 0x503   :  { %v9687_v19 = vpop.f32.mrf.mxu0  ;;  %7467 = vmatmul.mubr.bf16.vlgmr.msra.gmra.mxu1 %v9617_v55  ;;  %v7222_v29 = vpop.f32.mrf.mxu1  ;;  %v8278_v26 = vcombine.low %v4004_v6, %v4008_v27 }
 0x504   :  { %7508 = vmatmul.mubr.bf16.vlgmr.msra.gmra.mxu0 %v9637_v28  ;;  %v7223_v56 = vadd.f32 %v7222_v29, %v7182_v25  ;;  %7517 = vmatpush1.bf16.msra.mxu1 %v8708_v13  ;;  %v8279_v13 = vcombine.high %v4004_v6, %v4008_v27  ;;  %v4000_v25 = vld [vmem:[#allocation14 + $0x38] sm:$0xff]  ;;  %v4463_v6 = vld [vmem:[#allocation14 + $0xeb0] sm:$0xff] }
 0x505   :  { %7548 = vmatprep.mubr.bf16.mxu1 %v9651_v39  ;;  %7558 = vmatpush1.bf16.msra.mxu0 %v8326_v24  ;;  %v9694_v9 = vpop.f32.mrf.mxu0  ;;  %v7224_v41 = vpop.f32.mrf.mxu1  ;;  %v3996_v24 = vld [vmem:[#allocation14 + $0x18] sm:$0xff] }
 0x506   :  { %7721 = vst [vmem:[#allocation16] sm:$0xff] %v7223_v56  ;;  %7589 = vmatprep.mubr.bf16.mxu0 %v9585_v18  ;;  %v7225_v46 = vadd.f32 %v7224_v41, %v7184_v40  ;;  %7518 = vmatprep.subr.bf16.mxu1 %v8701_v53  ;;  %v8303_v18 = vcombine.high %v4028_v3, %v4032_v30  ;;  %v4120_v40 = vld [vmem:[#allocation14 + $0x3f8] sm:$0xff]  ;;  %v4483_v30 = vld [vmem:[#allocation14 + $0xf50] sm:$0xff] }
 0x507   :  { %v7267_v4 = vpop.f32.mrf.mxu0  ;;  %7559 = vmatprep.subr.bf16.mxu0 %v8319_v33  ;;  %v7226_v47 = vpop.f32.mrf.mxu1  ;;  %v8660_v53 = vcombine.low %v4387_v49, %v4391_v16  ;;  %v8271_v29 = vcombine.high %v3996_v24, %v4000_v25  ;;  %v4499_v33 = vld [vmem:[#allocation14 + $0xfd0] sm:$0xff]  ;;  %v8652_v56 = vcombine.low %v4379_v59, %v4383_v42  ;;  %v4076_v27 = vld [vmem:[#allocation14 + $0x298] sm:$0xff] }
 0x508   :  { %7722 = vst [vmem:[#allocation16 + $0x8] sm:$0xff] %v7225_v46  ;;  %7519 = vmatpush1.bf16.msra.mxu1 %v8700_v36  ;;  %v8270_v36 = vcombine.low %v3996_v24, %v4000_v25  ;;  %v8773_v41 = vcombine.high %v4499_v33, %v4503_v35  ;;  %v4495_v46 = vld [vmem:[#allocation14 + $0xfb0] sm:$0xff]  ;;  %v8772_v60 = vcombine.low %v4499_v33, %v4503_v35  ;;  %v4068_v25 = vld [vmem:[#allocation14 + $0x258] sm:$0xff] }
 0x509   :  { %7560 = vmatpush1.bf16.msra.mxu0 %v8318_v43  ;;  %v7268_v37 = vpop.f32.mrf.mxu0  ;;  %v7227_v48 = vpop.f32.mrf.mxu1  ;;  %7520 = vmatprep.subr.bf16.mxu1 %v8693_v58  ;;  %v8391_v43 = vcombine.high %v4116_v31, %v4120_v40  ;;  %v4491_v58 = vld [vmem:[#allocation14 + $0xf90] sm:$0xff]  ;;  %v8390_v4 = vcombine.low %v4116_v31, %v4120_v40  ;;  %v4060_v40 = vld [vmem:[#allocation14 + $0x218] sm:$0xff] }
 0x50a   :  { %7561 = vmatprep.subr.bf16.mxu0 %v8311_v11  ;;  %v4108_v11 = vld [vmem:[#allocation14 + $0x398] sm:$0xff]  ;;  %v8765_v47 = vcombine.high %v4491_v58, %v4495_v46  ;;  %v4459_v16 = vld [vmem:[#allocation14 + $0xe90] sm:$0xff] }
 0x50b   :  { %v8383_v3 = vcombine.high %v4108_v11, %v4112_v44  ;;  %v4100_v37 = vld [vmem:[#allocation14 + $0x358] sm:$0xff]  ;;  %v4451_v42 = vld [vmem:[#allocation14 + $0xe50] sm:$0xff] }
 0x50c   :  { %7521 = vmatpush1.bf16.msra.mxu1 %v8692_v34  ;;  %v4487_v34 = vld [vmem:[#allocation14 + $0xf70] sm:$0xff]  ;;  %v4104_v48 = vld [vmem:[#allocation14 + $0x378] sm:$0xff] }
 0x50d   :  { %7562 = vmatpush1.bf16.msra.mxu0 %v8310_v50  ;;  %7522 = vmatprep.subr.bf16.mxu1 %v8685_v38  ;;  %v8764_v50 = vcombine.low %v4491_v58, %v4495_v46  ;;  %v8382_v38 = vcombine.low %v4108_v11, %v4112_v44  ;;  %v8375_v8 = vcombine.high %v4100_v37, %v4104_v48  ;;  %v4455_v24 = vld [vmem:[#allocation14 + $0xe70] sm:$0xff]  ;;  %v4180_v46 = vld [vmem:[#allocation14 + $0x5d8] sm:$0xff] }
 0x50e   :  { %7563 = vmatprep.subr.bf16.mxu0 %v8303_v18  ;;  %v8757_v18 = vcombine.high %v4483_v30, %v4487_v34  ;;  %v4443_v35 = vld [vmem:[#allocation14 + $0xe10] sm:$0xff]  ;;  %v4184_v11 = vld [vmem:[#allocation14 + $0x5f8] sm:$0xff] }
 0x50f   :  { %v4447_v31 = vld [vmem:[#allocation14 + $0xe30] sm:$0xff]  ;;  %v4308_v44 = vld [vmem:[#allocation14 + $0x9d8] sm:$0xff] }
 0x510   :  { %7523 = vmatpush1.bf16.msra.mxu1 %v8684_v1  ;;  %v4096_v1 = vld [vmem:[#allocation14 + $0x338] sm:$0xff] }
 0x511   :  { %7564 = vmatpush1.bf16.msra.mxu0 %v8302_v2  ;;  %7524 = vmatprep.subr.bf16.mxu1 %v8677_v57  ;;  %v8756_v2 = vcombine.low %v4483_v30, %v4487_v34  ;;  %v8374_v57 = vcombine.low %v4100_v37, %v4104_v48  ;;  %v8367_v61 = vcombine.high %v4092_v15, %v4096_v1  ;;  %v4172_v34 = vld [vmem:[#allocation14 + $0x598] sm:$0xff] }
 0x512   :  { %7565 = vmatprep.subr.bf16.mxu0 %v8295_v7  ;;  %v8749_v7 = vcombine.high %v4475_v51, %v4479_v52  ;;  %v4176_v37 = vld [vmem:[#allocation14 + $0x5b8] sm:$0xff]  ;;  %v8454_v48 = vcombine.low %v4180_v46, %v4184_v11 }
 0x514   :  { %7525 = vmatpush1.bf16.msra.mxu1 %v8676_v21  ;;  %v4088_v21 = vld [vmem:[#allocation14 + $0x2f8] sm:$0xff] }
 0x515   :  { %7566 = vmatpush1.bf16.msra.mxu0 %v8294_v5  ;;  %7526 = vmatprep.subr.bf16.mxu1 %v8669_v14  ;;  %v8748_v5 = vcombine.low %v4475_v51, %v4479_v52  ;;  %v8366_v14 = vcombine.low %v4092_v15, %v4096_v1  ;;  %v8359_v49 = vcombine.high %v4084_v12, %v4088_v21  ;;  %v4164_v51 = vld [vmem:[#allocation14 + $0x558] sm:$0xff] }
 0x516   :  { %7567 = vmatprep.subr.bf16.mxu0 %v8287_v10  ;;  %v8741_v10 = vcombine.high %v4467_v63, %v4471_v62  ;;  %v4168_v52 = vld [vmem:[#allocation14 + $0x578] sm:$0xff] }
 0x518   :  { %7527 = vmatpush1.bf16.msra.mxu1 %v8668_v20  ;;  %v4080_v20 = vld [vmem:[#allocation14 + $0x2b8] sm:$0xff] }
 0x519   :  { %7568 = vmatpush1.bf16.msra.mxu0 %v8286_v22  ;;  %7528 = vmatprep.subr.bf16.mxu1 %v8661_v54  ;;  %v8740_v22 = vcombine.low %v4467_v63, %v4471_v62  ;;  %v8358_v54 = vcombine.low %v4084_v12, %v4088_v21  ;;  %v8351_v59 = vcombine.high %v4076_v27, %v4080_v20 }
 0x51a   :  { %7569 = vmatprep.subr.bf16.mxu0 %v8279_v13  ;;  %v8733_v13 = vcombine.high %v4459_v16, %v4463_v6  ;;  %v8439_v21 = vcombine.high %v4164_v51, %v4168_v52 }
 0x51c   :  { %7529 = vmatpush1.bf16.msra.mxu1 %v8660_v53  ;;  %v4072_v53 = vld [vmem:[#allocation14 + $0x278] sm:$0xff] }
 0x51d   :  { %7570 = vmatpush1.bf16.msra.mxu0 %v8278_v26  ;;  %7530 = vmatprep.subr.bf16.mxu1 %v8653_v45  ;;  %v8732_v26 = vcombine.low %v4459_v16, %v4463_v6  ;;  %v8350_v45 = vcombine.low %v4076_v27, %v4080_v20  ;;  %v8343_v33 = vcombine.high %v4068_v25, %v4072_v53  ;;  %v4288_v6 = vld [vmem:[#allocation14 + $0x938] sm:$0xff] }
 0x51e   :  { %7571 = vmatprep.subr.bf16.mxu0 %v8271_v29  ;;  %v8725_v29 = vcombine.high %v4451_v42, %v4455_v24 }
 0x520   :  { %7531 = vmatpush1.bf16.msra.mxu1 %v8652_v56  ;;  %v4064_v56 = vld [vmem:[#allocation14 + $0x238] sm:$0xff] }
 0x521   :  { %7572 = vmatpush1.bf16.msra.mxu0 %v8270_v36  ;;  %7532 = vmatprep.subr.bf16.mxu1 %v8773_v41  ;;  %v8724_v36 = vcombine.low %v4451_v42, %v4455_v24  ;;  %v8342_v41 = vcombine.low %v4068_v25, %v4072_v53  ;;  %v8335_v58 = vcombine.high %v4060_v40, %v4064_v56  ;;  %v4276_v42 = vld [vmem:[#allocation14 + $0x8d8] sm:$0xff] }
 0x522   :  { %7573 = vmatprep.subr.bf16.mxu0 %v8391_v43  ;;  %v8717_v43 = vcombine.high %v4443_v35, %v4447_v31  ;;  %v4280_v24 = vld [vmem:[#allocation14 + $0x8f8] sm:$0xff] }
 0x524   :  { %7533 = vmatpush2.bf16.msra.mxu1 %v8772_v60  ;;  %v4312_v60 = vld [vmem:[#allocation14 + $0x9f8] sm:$0xff] }
 0x525   :  { %7574 = vmatpush2.bf16.msra.mxu0 %v8390_v4  ;;  %7534 = vmatprep.subr.bf16.mxu1 %v8765_v47  ;;  %v8716_v4 = vcombine.low %v4443_v35, %v4447_v31  ;;  %v8334_v47 = vcombine.low %v4060_v40, %v4064_v56  ;;  %v8583_v30 = vcombine.high %v4308_v44, %v4312_v60  ;;  %v4268_v35 = vld [vmem:[#allocation14 + $0x898] sm:$0xff] }
 0x526   :  { %7575 = vmatprep.subr.bf16.mxu0 %v8383_v3  ;;  %v8455_v3 = vcombine.high %v4180_v46, %v4184_v11  ;;  %v4272_v31 = vld [vmem:[#allocation14 + $0x8b8] sm:$0xff]  ;;  %v8550_v56 = vcombine.low %v4276_v42, %v4280_v24 }
 0x527   :  { %v4260_v46 = vld [vmem:[#allocation14 + $0x858] sm:$0xff] }
 0x528   :  { %7535 = vmatpush2.bf16.msra.mxu1 %v8764_v50  ;;  %v4300_v50 = vld [vmem:[#allocation14 + $0x998] sm:$0xff] }
 0x529   :  { %7576 = vmatpush2.bf16.msra.mxu0 %v8382_v38  ;;  %7536 = vmatprep.subr.bf16.mxu1 %v8757_v18  ;;  %v4304_v38 = vld [vmem:[#allocation14 + $0x9b8] sm:$0xff]  ;;  %v8582_v18 = vcombine.low %v4308_v44, %v4312_v60  ;;  %v8542_v60 = vcombine.low %v4268_v35, %v4272_v31 }
 0x52a   :  { %7577 = vmatprep.subr.bf16.mxu0 %v8375_v8  ;;  %v8447_v8 = vcombine.high %v4172_v34, %v4176_v37  ;;  %v8574_v12 = vcombine.low %v4300_v50, %v4304_v38  ;;  %v4264_v11 = vld [vmem:[#allocation14 + $0x878] sm:$0xff] }
 0x52c   :  { %7537 = vmatpush2.bf16.msra.mxu1 %v8756_v2  ;;  %v8575_v2 = vcombine.high %v4300_v50, %v4304_v38  ;;  %v8534_v50 = vcombine.low %v4260_v46, %v4264_v11 }
 0x52d   :  { %7578 = vmatpush2.bf16.msra.mxu0 %v8374_v57  ;;  %7538 = vmatprep.subr.bf16.mxu1 %v8749_v7  ;;  %v4292_v57 = vld [vmem:[#allocation14 + $0x958] sm:$0xff] }
 0x52e   :  { %7579 = vmatprep.subr.bf16.mxu0 %v8367_v61  ;;  %v4296_v7 = vld [vmem:[#allocation14 + $0x978] sm:$0xff]  ;;  %v8446_v61 = vcombine.low %v4172_v34, %v4176_v37 }
 0x52f   :  { %v4252_v34 = vld [vmem:[#allocation14 + $0x818] sm:$0xff] }
 0x530   :  { %7539 = vmatpush2.bf16.msra.mxu1 %v8748_v5  ;;  %v8567_v5 = vcombine.high %v4292_v57, %v4296_v7  ;;  %v4256_v37 = vld [vmem:[#allocation14 + $0x838] sm:$0xff] }
 0x531   :  { %7580 = vmatpush2.bf16.msra.mxu0 %v8366_v14  ;;  %7540 = vmatprep.subr.bf16.mxu1 %v8741_v10  ;;  %v4156_v14 = vld [vmem:[#allocation14 + $0x518] sm:$0xff] }
 0x532   :  { %7581 = vmatprep.subr.bf16.mxu0 %v8359_v49  ;;  %v4160_v10 = vld [vmem:[#allocation14 + $0x538] sm:$0xff] }
 0x533   :  { %v8430_v25 = vcombine.low %v4156_v14, %v4160_v10 }
 0x534   :  { %7541 = vmatpush2.bf16.msra.mxu1 %v8740_v22  ;;  %v8566_v22 = vcombine.low %v4292_v57, %v4296_v7  ;;  %v8526_v7 = vcombine.low %v4252_v34, %v4256_v37 }
 0x535   :  { %7582 = vmatpush2.bf16.msra.mxu0 %v8358_v54  ;;  %7542 = vmatprep.subr.bf16.mxu1 %v8733_v13  ;;  %v8431_v54 = vcombine.high %v4156_v14, %v4160_v10  ;;  %v4364_v14 = vld [vmem:[#allocation14 + $0xb98] sm:$0xff] }
 0x536   :  { %7583 = vmatprep.subr.bf16.mxu0 %v8351_v59  ;;  %v4152_v59 = vld [vmem:[#allocation14 + $0x4f8] sm:$0xff] }
 0x537   :  { %v4368_v10 = vld [vmem:[#allocation14 + $0xbb8] sm:$0xff] }
 0x538   :  { %7543 = vmatpush2.bf16.msra.mxu1 %v8732_v26 }
 0x539   :  { %7584 = vmatpush2.bf16.msra.mxu0 %v8350_v45  ;;  %7544 = vmatprep.subr.bf16.mxu1 %v8725_v29  ;;  %v8551_v45 = vcombine.high %v4276_v42, %v4280_v24  ;;  %v4140_v29 = vld [vmem:[#allocation14 + $0x498] sm:$0xff] }
 0x53a   :  { %7585 = vmatprep.subr.bf16.mxu0 %v8343_v33  ;;  %v4144_v33 = vld [vmem:[#allocation14 + $0x4b8] sm:$0xff] }
 0x53b   :  { %v8414_v44 = vcombine.low %v4140_v29, %v4144_v33  ;;  %v4220_v42 = vld [vmem:[#allocation14 + $0x718] sm:$0xff] }
 0x53c   :  { %7545 = vmatpush2.bf16.msra.mxu1 %v8724_v36  ;;  %v8415_v36 = vcombine.high %v4140_v29, %v4144_v33  ;;  %v4224_v24 = vld [vmem:[#allocation14 + $0x738] sm:$0xff] }
 0x53d   :  { %7586 = vmatpush2.bf16.msra.mxu0 %v8342_v41  ;;  %7546 = vmatprep.subr.bf16.mxu1 %v8717_v43  ;;  %v8543_v41 = vcombine.high %v4268_v35, %v4272_v31  ;;  %v4132_v43 = vld [vmem:[#allocation14 + $0x458] sm:$0xff]  ;;  %v8495_v29 = vcombine.high %v4220_v42, %v4224_v24 }
 0x53e   :  { %7587 = vmatprep.subr.bf16.mxu0 %v8335_v58  ;;  %v4136_v58 = vld [vmem:[#allocation14 + $0x478] sm:$0xff] }
 0x53f   :  { %v4212_v35 = vld [vmem:[#allocation14 + $0x6d8] sm:$0xff] }
 0x540   :  { %7547 = vmatpush2.bf16.msra.mxu1 %v8716_v4  ;;  %v8407_v4 = vcombine.high %v4132_v43, %v4136_v58  ;;  %v4216_v31 = vld [vmem:[#allocation14 + $0x6f8] sm:$0xff] }
 0x541   :  { %7588 = vmatpush2.bf16.msra.mxu0 %v8334_v47  ;;  %7598 = vmatprep.subr.bf16.mxu1 %v8455_v3  ;;  %v8535_v47 = vcombine.high %v4260_v46, %v4264_v11  ;;  %v4124_v3 = vld [vmem:[#allocation14 + $0x418] sm:$0xff] }
 0x542   :  { %7639 = vmatprep.subr.bf16.mxu0 %v8583_v30  ;;  %v4128_v30 = vld [vmem:[#allocation14 + $0x438] sm:$0xff] }
 0x543   :  { %v9697_v15 = vpop.f32.mrf.mxu1  ;;  %v9699_v1 = vpop.f32.mrf.mxu0  ;;  %7549 = vmatmul.mubr.bf16.vlgmr.msra.gmra.mxu1 %v9653_v23  ;;  %v8399_v38 = vcombine.high %v4124_v3, %v4128_v30  ;;  %v8398_v57 = vcombine.low %v4124_v3, %v4128_v30  ;;  %v4204_v46 = vld [vmem:[#allocation14 + $0x698] sm:$0xff] }
 0x544   :  { %7590 = vmatmul.mubr.bf16.vlgmr.msra.gmra.mxu0 %v9591_v32  ;;  %7599 = vmatpush1.bf16.msra.mxu1 %v8454_v48  ;;  %v4284_v32 = vld [vmem:[#allocation14 + $0x918] sm:$0xff]  ;;  %v8406_v48 = vcombine.low %v4132_v43, %v4136_v58  ;;  %v8487_v43 = vcombine.high %v4212_v35, %v4216_v31 }
 0x545   :  { %7630 = vmatprep.mubr.bf16.mxu1 %v9611_v0  ;;  %7640 = vmatpush1.bf16.msra.mxu0 %v8582_v18  ;;  %v9704_v63 = vpop.f32.mrf.mxu1  ;;  %v9706_v62 = vpop.f32.mrf.mxu0  ;;  %v8438_v0 = vcombine.low %v4164_v51, %v4168_v52  ;;  %v8559_v13 = vcombine.high %v4284_v32, %v4288_v6  ;;  %v8558_v53 = vcombine.low %v4284_v32, %v4288_v6  ;;  %v4248_v51 = vld [vmem:[#allocation14 + $0x7f8] sm:$0xff] }
 0x546   :  { %7671 = vmatprep.mubr.bf16.mxu0 %v9635_v17  ;;  %7600 = vmatprep.subr.bf16.mxu1 %v8447_v8  ;;  %v4148_v17 = vld [vmem:[#allocation14 + $0x4d8] sm:$0xff]  ;;  %v8527_v18 = vcombine.high %v4252_v34, %v4256_v37  ;;  %v8639_v6 = vcombine.high %v4364_v14, %v4368_v10 }
 0x547   :  { %v7308_v49 = vpop.f32.mrf.mxu1  ;;  %v7349_v16 = vpop.f32.mrf.mxu0  ;;  %7641 = vmatprep.subr.bf16.mxu0 %v8575_v2  ;;  %v8423_v26 = vcombine.high %v4148_v17, %v4152_v59  ;;  %v8422_v40 = vcombine.low %v4148_v17, %v4152_v59  ;;  %v4244_v8 = vld [vmem:[#allocation14 + $0x7d8] sm:$0xff] }
 0x548   :  { %7601 = vmatpush1.bf16.msra.mxu1 %v8446_v61  ;;  %v4372_v52 = vld [vmem:[#allocation14 + $0xbd8] sm:$0xff]  ;;  %v8519_v61 = vcombine.high %v4244_v8, %v4248_v51  ;;  %v8518_v49 = vcombine.low %v4244_v8, %v4248_v51 }
 0x549   :  { %7642 = vmatpush1.bf16.msra.mxu0 %v8574_v12  ;;  %v7309_v27 = vpop.f32.mrf.mxu1  ;;  %v7350_v20 = vpop.f32.mrf.mxu0  ;;  %7602 = vmatprep.subr.bf16.mxu1 %v8439_v21  ;;  %v4376_v2 = vld [vmem:[#allocation14 + $0xbf8] sm:$0xff] }
 0x54a   :  { %7643 = vmatprep.subr.bf16.mxu0 %v8567_v5  ;;  %v8647_v12 = vcombine.high %v4372_v52, %v4376_v2  ;;  %v4236_v21 = vld [vmem:[#allocation14 + $0x798] sm:$0xff]  ;;  %v8646_v16 = vcombine.low %v4372_v52, %v4376_v2 }
 0x54b   :  { %v4240_v5 = vld [vmem:[#allocation14 + $0x7b8] sm:$0xff] }
 0x54c   :  { %7603 = vmatpush1.bf16.msra.mxu1 %v8438_v0  ;;  %v8511_v32 = vcombine.high %v4236_v21, %v4240_v5  ;;  %v4228_v0 = vld [vmem:[#allocation14 + $0x758] sm:$0xff] }
 0x54d   :  { %7644 = vmatpush1.bf16.msra.mxu0 %v8566_v22  ;;  %7604 = vmatprep.subr.bf16.mxu1 %v8431_v54  ;;  %v4232_v27 = vld [vmem:[#allocation14 + $0x778] sm:$0xff]  ;;  %v8510_v54 = vcombine.low %v4236_v21, %v4240_v5 }
 0x54e   :  { %7645 = vmatprep.subr.bf16.mxu0 %v8559_v13  ;;  %v4356_v20 = vld [vmem:[#allocation14 + $0xb58] sm:$0xff]  ;;  %v8638_v13 = vcombine.low %v4364_v14, %v4368_v10  ;;  %v8503_v17 = vcombine.high %v4228_v0, %v4232_v27 }
 0x54f   :  { %v4360_v22 = vld [vmem:[#allocation14 + $0xb78] sm:$0xff] }
 0x550   :  { %7605 = vmatpush1.bf16.msra.mxu1 %v8430_v25  ;;  %v8631_v59 = vcombine.high %v4356_v20, %v4360_v22  ;;  %v4348_v25 = vld [vmem:[#allocation14 + $0xb18] sm:$0xff] }
 0x551   :  { %7646 = vmatpush1.bf16.msra.mxu0 %v8558_v53  ;;  %7606 = vmatprep.subr.bf16.mxu1 %v8423_v26  ;;  %v4352_v53 = vld [vmem:[#allocation14 + $0xb38] sm:$0xff]  ;;  %v8502_v26 = vcombine.low %v4228_v0, %v4232_v27 }
 0x552   :  { %7647 = vmatprep.subr.bf16.mxu0 %v8551_v45  ;;  %v8630_v45 = vcombine.low %v4356_v20, %v4360_v22  ;;  %v8623_v33 = vcombine.high %v4348_v25, %v4352_v53  ;;  %v4208_v11 = vld [vmem:[#allocation14 + $0x6b8] sm:$0xff]  ;;  %v7307_v20 = vadd.f32 %v9704_v63, %v9694_v9 }
 0x553   :  { %v8479_v3 = vcombine.high %v4204_v46, %v4208_v11  ;;  %v4196_v34 = vld [vmem:[#allocation14 + $0x658] sm:$0xff] }
 0x554   :  { %7607 = vmatpush1.bf16.msra.mxu1 %v8422_v40  ;;  %v4340_v40 = vld [vmem:[#allocation14 + $0xad8] sm:$0xff] }
 0x555   :  { %7648 = vmatpush1.bf16.msra.mxu0 %v8550_v56  ;;  %7608 = vmatprep.subr.bf16.mxu1 %v8415_v36  ;;  %v4344_v56 = vld [vmem:[#allocation14 + $0xaf8] sm:$0xff]  ;;  %v8494_v36 = vcombine.low %v4220_v42, %v4224_v24 }
 0x556   :  { %7649 = vmatprep.subr.bf16.mxu0 %v8543_v41  ;;  %v8622_v41 = vcombine.low %v4348_v25, %v4352_v53  ;;  %v8615_v58 = vcombine.high %v4340_v40, %v4344_v56  ;;  %v4200_v37 = vld [vmem:[#allocation14 + $0x678] sm:$0xff] }
 0x557   :  { %v8471_v8 = vcombine.high %v4196_v34, %v4200_v37  ;;  %v4188_v52 = vld [vmem:[#allocation14 + $0x618] sm:$0xff] }
 0x558   :  { %7609 = vmatpush1.bf16.msra.mxu1 %v8414_v44  ;;  %v4332_v44 = vld [vmem:[#allocation14 + $0xa98] sm:$0xff] }
 0x559   :  { %7650 = vmatpush1.bf16.msra.mxu0 %v8542_v60  ;;  %7610 = vmatprep.subr.bf16.mxu1 %v8407_v4  ;;  %v4336_v60 = vld [vmem:[#allocation14 + $0xab8] sm:$0xff]  ;;  %v8486_v4 = vcombine.low %v4212_v35, %v4216_v31 }
 0x55a   :  { %7651 = vmatprep.subr.bf16.mxu0 %v8535_v47  ;;  %v8614_v47 = vcombine.low %v4340_v40, %v4344_v56  ;;  %v8607_v30 = vcombine.high %v4332_v44, %v4336_v60  ;;  %v4192_v2 = vld [vmem:[#allocation14 + $0x638] sm:$0xff] }
 0x55b   :  { %v8463_v21 = vcombine.high %v4188_v52, %v4192_v2  ;;  %v4436_v14 = vld [vmem:[#allocation14 + $0xdd8] sm:$0xff] }
 0x55c   :  { %7611 = vmatpush1.bf16.msra.mxu1 %v8406_v48  ;;  %v4324_v48 = vld [vmem:[#allocation14 + $0xa58] sm:$0xff] }
 0x55d   :  { %7652 = vmatpush1.bf16.msra.mxu0 %v8534_v50  ;;  %7612 = vmatprep.subr.bf16.mxu1 %v8399_v38  ;;  %v4328_v50 = vld [vmem:[#allocation14 + $0xa78] sm:$0xff]  ;;  %v8478_v38 = vcombine.low %v4204_v46, %v4208_v11 }
 0x55e   :  { %7653 = vmatprep.subr.bf16.mxu0 %v8527_v18  ;;  %v8606_v18 = vcombine.low %v4332_v44, %v4336_v60  ;;  %v8599_v51 = vcombine.high %v4324_v48, %v4328_v50  ;;  %v4440_v10 = vld [vmem:[#allocation14 + $0xdf8] sm:$0xff] }
 0x55f   :  { %v4428_v0 = vld [vmem:[#allocation14 + $0xd98] sm:$0xff]  ;;  %v8710_v22 = vcombine.low %v4436_v14, %v4440_v10 }
 0x560   :  { %7613 = vmatpush1.bf16.msra.mxu1 %v8398_v57  ;;  %v4316_v57 = vld [vmem:[#allocation14 + $0xa18] sm:$0xff] }
 0x561   :  { %7654 = vmatpush1.bf16.msra.mxu0 %v8526_v7  ;;  %7614 = vmatprep.subr.bf16.mxu1 %v8519_v61  ;;  %v4320_v7 = vld [vmem:[#allocation14 + $0xa38] sm:$0xff]  ;;  %v8470_v61 = vcombine.low %v4196_v34, %v4200_v37 }
 0x562   :  { %7655 = vmatprep.subr.bf16.mxu0 %v8647_v12  ;;  %v8598_v12 = vcombine.low %v4324_v48, %v4328_v50  ;;  %v8591_v5 = vcombine.high %v4316_v57, %v4320_v7  ;;  %v4432_v27 = vld [vmem:[#allocation14 + $0xdb8] sm:$0xff] }
 0x563   :  { %v8702_v9 = vcombine.low %v4428_v0, %v4432_v27  ;;  %v4404_v31 = vld [vmem:[#allocation14 + $0xcd8] sm:$0xff] }
 0x564   :  { %7615 = vmatpush2.bf16.msra.mxu1 %v8518_v49  ;;  %v8462_v49 = vcombine.low %v4188_v52, %v4192_v2  ;;  %v4388_v46 = vld [vmem:[#allocation14 + $0xc58] sm:$0xff] }
 0x565   :  { %7656 = vmatpush2.bf16.msra.mxu0 %v8646_v16  ;;  %7616 = vmatprep.subr.bf16.mxu1 %v8511_v32  ;;  %v8590_v16 = vcombine.low %v4316_v57, %v4320_v7  ;;  %v8711_v32 = vcombine.high %v4436_v14, %v4440_v10  ;;  %v4392_v11 = vld [vmem:[#allocation14 + $0xc78] sm:$0xff] }
 0x566   :  { %7657 = vmatprep.subr.bf16.mxu0 %v8639_v6  ;;  %v7305_v6 = vadd.f32 %v9697_v15, %v9687_v19  ;;  %v7348_v19 = vadd.f32 %v9706_v62, %v7307_v20  ;;  %v8663_v60 = vcombine.high %v4388_v46, %v4392_v11  ;;  %v4500_v34 = vld [vmem:[#allocation14 + $0xfd8] sm:$0xff] }
 0x567   :  { %v4504_v37 = vld [vmem:[#allocation14 + $0xff8] sm:$0xff] }
 0x568   :  { %7617 = vmatpush2.bf16.msra.mxu1 %v8510_v54  ;;  %v8703_v54 = vcombine.high %v4428_v0, %v4432_v27  ;;  %v8775_v50 = vcombine.high %v4500_v34, %v4504_v37  ;;  %v4484_v52 = vld [vmem:[#allocation14 + $0xf58] sm:$0xff] }
 0x569   :  { %7658 = vmatpush2.bf16.msra.mxu0 %v8638_v13  ;;  %7618 = vmatprep.subr.bf16.mxu1 %v8503_v17  ;;  %v7346_v13 = vadd.f32 %v9699_v1, %v7305_v6  ;;  %v4420_v17 = vld [vmem:[#allocation14 + $0xd58] sm:$0xff] }
 0x56a   :  { %7659 = vmatprep.subr.bf16.mxu0 %v8631_v59  ;;  %v4424_v59 = vld [vmem:[#allocation14 + $0xd78] sm:$0xff] }
 0x56b   :  { %v8695_v25 = vcombine.high %v4420_v17, %v4424_v59  ;;  %v4488_v2 = vld [vmem:[#allocation14 + $0xf78] sm:$0xff] }
 0x56c   :  { %7619 = vmatpush2.bf16.msra.mxu1 %v8502_v26  ;;  %v4412_v26 = vld [vmem:[#allocation14 + $0xd18] sm:$0xff]  ;;  %v8759_v7 = vcombine.high %v4484_v52, %v4488_v2 }
 0x56d   :  { %7660 = vmatpush2.bf16.msra.mxu0 %v8630_v45  ;;  %7620 = vmatprep.subr.bf16.mxu1 %v8495_v29  ;;  %v8694_v29 = vcombine.low %v4420_v17, %v4424_v59  ;;  %v4468_v14 = vld [vmem:[#allocation14 + $0xed8] sm:$0xff] }
 0x56e   :  { %7661 = vmatprep.subr.bf16.mxu0 %v8623_v33  ;;  %v4472_v10 = vld [vmem:[#allocation14 + $0xef8] sm:$0xff] }
 0x56f   :  { %v4464_v6 = vld [vmem:[#allocation14 + $0xeb8] sm:$0xff]  ;;  %v8742_v0 = vcombine.low %v4468_v14, %v4472_v10 }
 0x570   :  { %7621 = vmatpush2.bf16.msra.mxu1 %v8494_v36  ;;  %v4396_v36 = vld [vmem:[#allocation14 + $0xc98] sm:$0xff] }
 0x571   :  { %7662 = vmatpush2.bf16.msra.mxu0 %v8622_v41  ;;  %7622 = vmatprep.subr.bf16.mxu1 %v8487_v43  ;;  %v4400_v41 = vld [vmem:[#allocation14 + $0xcb8] sm:$0xff] }
 0x572   :  { %7663 = vmatprep.subr.bf16.mxu0 %v8615_v58  ;;  %v8671_v58 = vcombine.high %v4396_v36, %v4400_v41  ;;  %v8670_v44 = vcombine.low %v4396_v36, %v4400_v41  ;;  %v4452_v20 = vld [vmem:[#allocation14 + $0xe58] sm:$0xff] }
 0x573   :  { %v4444_v17 = vld [vmem:[#allocation14 + $0xe18] sm:$0xff] }
 0x574   :  { %7623 = vmatpush2.bf16.msra.mxu1 %v8486_v4  ;;  %v4380_v4 = vld [vmem:[#allocation14 + $0xc18] sm:$0xff] }
 0x575   :  { %7664 = vmatpush2.bf16.msra.mxu0 %v8614_v47  ;;  %7624 = vmatprep.subr.bf16.mxu1 %v8479_v3  ;;  %v4384_v47 = vld [vmem:[#allocation14 + $0xc38] sm:$0xff]  ;;  %v8662_v3 = vcombine.low %v4388_v46, %v4392_v11 }
 0x576   :  { %7665 = vmatprep.subr.bf16.mxu0 %v8607_v30  ;;  %v8655_v30 = vcombine.high %v4380_v4, %v4384_v47  ;;  %v8654_v48 = vcombine.low %v4380_v4, %v4384_v47  ;;  %v4448_v59 = vld [vmem:[#allocation14 + $0xe38] sm:$0xff] }
 0x578   :  { %7625 = vmatpush2.bf16.msra.mxu1 %v8478_v38  ;;  %v4492_v38 = vld [vmem:[#allocation14 + $0xf98] sm:$0xff] }
 0x579   :  { %7666 = vmatpush2.bf16.msra.mxu0 %v8606_v18  ;;  %7626 = vmatprep.subr.bf16.mxu1 %v8471_v8  ;;  %v4496_v18 = vld [vmem:[#allocation14 + $0xfb8] sm:$0xff]  ;;  %v8774_v8 = vcombine.low %v4500_v34, %v4504_v37 }
 0x57a   :  { %7667 = vmatprep.subr.bf16.mxu0 %v8599_v51  ;;  %v8767_v51 = vcombine.high %v4492_v38, %v4496_v18  ;;  %v8766_v57 = vcombine.low %v4492_v38, %v4496_v18 }
 0x57c   :  { %7627 = vmatpush2.bf16.msra.mxu1 %v8470_v61  ;;  %v4476_v61 = vld [vmem:[#allocation14 + $0xf18] sm:$0xff] }
 0x57d   :  { %7668 = vmatpush2.bf16.msra.mxu0 %v8598_v12  ;;  %7628 = vmatprep.subr.bf16.mxu1 %v8463_v21  ;;  %v4480_v12 = vld [vmem:[#allocation14 + $0xf38] sm:$0xff]  ;;  %v8758_v21 = vcombine.low %v4484_v52, %v4488_v2 }
 0x57e   :  { %7669 = vmatprep.subr.bf16.mxu0 %v8591_v5  ;;  %v8751_v5 = vcombine.high %v4476_v61, %v4480_v12 }
 0x580   :  { %7629 = vmatpush2.bf16.msra.mxu1 %v8462_v49  ;;  %v8750_v49 = vcombine.low %v4476_v61, %v4480_v12 }
 0x581   :  { %7670 = vmatpush2.bf16.msra.mxu0 %v8590_v16  ;;  %7680 = vmatprep.subr.bf16.mxu1 %v8711_v32  ;;  %v8743_v16 = vcombine.high %v4468_v14, %v4472_v10  ;;  %v4460_v32 = vld [vmem:[#allocation14 + $0xe98] sm:$0xff] }
 0x582   :  { %v8735_v27 = vcombine.high %v4460_v32, %v4464_v6 }
 0x583   :  { %v7386_v42 = vpop.f32.mrf.mxu1  ;;  %7631 = vmatmul.mubr.bf16.vlgmr.msra.gmra.mxu1 %v9617_v55  ;;  %v4416_v55 = vld [vmem:[#allocation14 + $0xd38] sm:$0xff] }
 0x584   :  { %v7387_v15 = vadd.f32 %v7386_v42, %v7346_v13  ;;  %v9716_v24 = vpop.f32.mrf.mxu0  ;;  %7672 = vmatmul.mubr.bf16.vlgmr.msra.gmra.mxu0 %v9637_v28  ;;  %7681 = vmatpush1.bf16.msra.mxu1 %v8710_v22  ;;  %v8687_v28 = vcombine.high %v4412_v26, %v4416_v55  ;;  %v8686_v40 = vcombine.low %v4412_v26, %v4416_v55  ;;  %v4456_v22 = vld [vmem:[#allocation14 + $0xe78] sm:$0xff] }
 0x585   :  { %7712 = vmatprep.mubr.bf16.mxu1 %v9651_v39  ;;  %v7388_v63 = vpop.f32.mrf.mxu1  ;;  %7682 = vmatprep.subr.bf16.mxu1 %v8703_v54  ;;  %v4408_v39 = vld [vmem:[#allocation14 + $0xcf8] sm:$0xff]  ;;  %v8734_v54 = vcombine.low %v4460_v32, %v4464_v6  ;;  %v8727_v13 = vcombine.high %v4452_v20, %v4456_v22  ;;  %v8726_v42 = vcombine.low %v4452_v20, %v4456_v22 }
 0x586   :  { %7723 = vst [vmem:[#allocation16 + $0x10] sm:$0xff] %v7387_v15  ;;  %v7389_v1 = vadd.f32 %v7388_v63, %v7348_v19  ;;  %v9720_v53 = vpop.f32.mrf.mxu0  ;;  %v8679_v56 = vcombine.high %v4404_v31, %v4408_v39  ;;  %v8678_v43 = vcombine.low %v4404_v31, %v4408_v39  ;;  %v8719_v19 = vcombine.high %v4444_v17, %v4448_v59 }
 0x587   :  { %v7390_v45 = vpop.f32.mrf.mxu1  ;;  %v8718_v15 = vcombine.low %v4444_v17, %v4448_v59 }
 0x588   :  { %7724 = vst [vmem:[#allocation16 + $0x18] sm:$0xff] %v7389_v1  ;;  %v7431_v62 = vpop.f32.mrf.mxu0  ;;  %7683 = vmatpush1.bf16.msra.mxu1 %v8702_v9 }
 0x589   :  { %v7391_v33 = vpop.f32.mrf.mxu1  ;;  %7684 = vmatprep.subr.bf16.mxu1 %v8695_v25 }
 0x58a   :  { %v7432_v35 = vpop.f32.mrf.mxu0 }
 0x58c   :  { %7685 = vmatpush1.bf16.msra.mxu1 %v8694_v29 }
 0x58d   :  { %7686 = vmatprep.subr.bf16.mxu1 %v8687_v28 }
 0x590   :  { %7687 = vmatpush1.bf16.msra.mxu1 %v8686_v40 }
 0x591   :  { %7688 = vmatprep.subr.bf16.mxu1 %v8679_v56 }
 0x594   :  { %7689 = vmatpush1.bf16.msra.mxu1 %v8678_v43 }
 0x595   :  { %7690 = vmatprep.subr.bf16.mxu1 %v8671_v58 }
 0x598   :  { %7691 = vmatpush1.bf16.msra.mxu1 %v8670_v44 }
 0x599   :  { %7692 = vmatprep.subr.bf16.mxu1 %v8663_v60 }
 0x59c   :  { %7693 = vmatpush1.bf16.msra.mxu1 %v8662_v3 }
 0x59d   :  { %7694 = vmatprep.subr.bf16.mxu1 %v8655_v30 }
 0x5a0   :  { %7695 = vmatpush1.bf16.msra.mxu1 %v8654_v48 }
 0x5a1   :  { %7696 = vmatprep.subr.bf16.mxu1 %v8775_v50 }
 0x5a4   :  { %7697 = vmatpush2.bf16.msra.mxu1 %v8774_v8 }
 0x5a5   :  { %7698 = vmatprep.subr.bf16.mxu1 %v8767_v51 }
 0x5a8   :  { %7699 = vmatpush2.bf16.msra.mxu1 %v8766_v57 }
 0x5a9   :  { %7700 = vmatprep.subr.bf16.mxu1 %v8759_v7 }
 0x5ac   :  { %7701 = vmatpush2.bf16.msra.mxu1 %v8758_v21 }
 0x5ad   :  { %7702 = vmatprep.subr.bf16.mxu1 %v8751_v5 }
 0x5b0   :  { %7703 = vmatpush2.bf16.msra.mxu1 %v8750_v49 }
 0x5b1   :  { %7704 = vmatprep.subr.bf16.mxu1 %v8743_v16 }
 0x5b4   :  { %7705 = vmatpush2.bf16.msra.mxu1 %v8742_v0 }
 0x5b5   :  { %7706 = vmatprep.subr.bf16.mxu1 %v8735_v27 }
 0x5b8   :  { %7707 = vmatpush2.bf16.msra.mxu1 %v8734_v54 }
 0x5b9   :  { %7708 = vmatprep.subr.bf16.mxu1 %v8727_v13 }
 0x5bc   :  { %7709 = vmatpush2.bf16.msra.mxu1 %v8726_v42 }
 0x5bd   :  { %7710 = vmatprep.subr.bf16.mxu1 %v8719_v19 }
 0x5c0   :  { %7711 = vmatpush2.bf16.msra.mxu1 %v8718_v15 }
 0x5c3   :  { %v7468_v9 = vpop.f32.mrf.mxu1  ;;  %7713 = vmatmul.mubr.bf16.vlgmr.msra.gmra.mxu1 %v9653_v23 }
 0x5c4   :  { %v7509_v63 = vpop.f32.mrf.mxu0  ;;  %v7469_v29 = vadd.f32 %v7468_v9, %v9716_v24 }
 0x5c5   :  { %v7470_v25 = vpop.f32.mrf.mxu1 }
 0x5c6   :  { %v7511_v1 = vpop.f32.mrf.mxu0  ;;  %v7471_v33 = vadd.f32 %v7470_v25, %v9720_v53  ;;  %v7510_v28 = vadd.f32 %v7509_v63, %v7469_v29 }
 0x5c7   :  { %v7472_v26 = vpop.f32.mrf.mxu1 }
 0x5c8   :  { %v7513_v55 = vpop.f32.mrf.mxu0  ;;  %v7512_v31 = vadd.f32 %v7511_v1, %v7471_v33 }
 0x5c9   :  { %v7473_v45 = vpop.f32.mrf.mxu1 }
 0x5ca   :  { %v7514_v62 = vpop.f32.mrf.mxu0 }
 0x603   :  { %v7550_v35 = vpop.f32.mrf.mxu1 }
 0x604   :  { %v7551_v39 = vadd.f32 %v7550_v35, %v7510_v28  ;;  %v7591_v40 = vpop.f32.mrf.mxu0 }
 0x605   :  { %v7552_v56 = vpop.f32.mrf.mxu1 }
 0x606   :  { %7725 = vst [vmem:[#allocation16 + $0x20] sm:$0xff] %v7551_v39  ;;  %v7553_v36 = vadd.f32 %v7552_v56, %v7512_v31  ;;  %v7593_v23 = vpop.f32.mrf.mxu0 }
 0x607   :  { %v7554_v41 = vpop.f32.mrf.mxu1 }
 0x608   :  { %7726 = vst [vmem:[#allocation16 + $0x28] sm:$0xff] %v7553_v36  ;;  %v7595_v43 = vpop.f32.mrf.mxu0 }
 0x609   :  { %v7555_v58 = vpop.f32.mrf.mxu1 }
 0x60a   :  { %v7596_v46 = vpop.f32.mrf.mxu0 }
 0x643   :  { %v7632_v11 = vpop.f32.mrf.mxu1 }
 0x644   :  { %v7673_v44 = vpop.f32.mrf.mxu0  ;;  %v7633_v30 = vadd.f32 %v7632_v11, %v7591_v40 }
 0x645   :  { %v7634_v60 = vpop.f32.mrf.mxu1 }
 0x646   :  { %v7675_v24 = vpop.f32.mrf.mxu0  ;;  %v7635_v34 = vadd.f32 %v7634_v60, %v7593_v23  ;;  %v7674_v37 = vadd.f32 %v7673_v44, %v7633_v30 }
 0x647   :  { %v7636_v4 = vpop.f32.mrf.mxu1 }
 0x648   :  { %v7677_v53 = vpop.f32.mrf.mxu0  ;;  %v7676_v50 = vadd.f32 %v7675_v24, %v7635_v34 }
 0x649   :  { %v7637_v47 = vpop.f32.mrf.mxu1 }
 0x64a   :  { %v7678_v3 = vpop.f32.mrf.mxu0 }
 0x683   :  { %v7714_v48 = vpop.f32.mrf.mxu1 }
 0x684   :  { %v7715_v38 = vadd.f32 %v7714_v48, %v7674_v37 }
 0x685   :  { %v7716_v18 = vpop.f32.mrf.mxu1 }
 0x686   :  { %7727 = vst [vmem:[#allocation16 + $0x30] sm:$0xff] %v7715_v38  ;;  %v7717_v8 = vadd.f32 %v7716_v18, %v7676_v50 }
 0x687   :  { %v7718_v51 = vpop.f32.mrf.mxu1 }
 0x688   :  { %7728 = vst [vmem:[#allocation16 + $0x38] sm:$0xff] %v7717_v8 }
 0x689   :  { %v7719_v52 = vpop.f32.mrf.mxu1 }
 0x68a   :  { %9348 = shalt.err (!%p9345_p2)
}
 0x68b   :  { %7738 = dma.vmem_to_hbm [thread:$0]  %s7736_s7, 1024, %s9736_s8, [#allocation4]  }
 0x68c   :  { %9367 = dma.done.wait [#allocation4], 1024  }
 0x68d   :  { %9368 = vsyncadd [#allocation4], 4294966272 }
 0x68e   :  { %7742 = vsyncpa [#allocation3], 1 }
 0x68f   :  { %7743 = vsyncpa [#allocation6], 1 }
 0x690   :  { %7744 = vsyncpa [#allocation9], 1 }
 0x691   :  { %7745 = vsyncpa [#allocation12], 1 }
 0x692   :  { %7746 = vsyncpa [#allocation15], 1 }
 0x693   :  { %7747 = vsyncpa [#allocation4], 1 }

</bundles_post_ra>
